<compile_context>
chip_gen: v5e
topology: v5e:2x2
jax: 0.10.0
libtpu: 0.0.40
codegen_flags: <defaults>
</compile_context>

<pallas_src>
import functools
import numpy as np

import jax
import jax.numpy as jnp
from jax.experimental import pallas as pl
from jax.experimental.pallas import tpu as pltpu


MXU_DTYPE = jnp.bfloat16          # MXU operand dtype (f32 accumulation)
LN_EPS = 1e-5                     # torch nn.LayerNorm default

_VMEM_LIMIT = 48 * 1024 * 1024    # <= v7x per-TC VMEM (64 MiB), plenty on v5e/v6e
_TILE_BUDGET = 16 * 1024 * 1024   # per-grid-step activation budget for tile picking


def _cparams(sem):
    return pltpu.CompilerParams(dimension_semantics=sem,
                                vmem_limit_bytes=_VMEM_LIMIT)


def _pick_token_tile(m, bytes_per_row, n_outer):
    """Largest token tile that divides m, is a multiple of 8, fits the per-step VMEM
    budget (double-buffered), and keeps the total program count even so the v7x
    megacore splits the parallel grid evenly across its two TensorCores."""
    if m % 8 != 0:
        return m
    cap = max(8, min(1024, (_TILE_BUDGET // max(bytes_per_row, 1)) // 8 * 8))
    divs = [d for d in range(8, m + 1, 8) if m % d == 0 and d <= cap]
    if not divs:
        return m
    even = [d for d in divs if (n_outer * (m // d)) % 2 == 0]
    return max(even) if even else max(divs)


# ------------------------------ in-kernel math ------------------------------

def _erf(x):
    # Abramowitz & Stegun 7.1.26 rational approximation (max abs err ~1.5e-7),
    # built only from VPU/EUP-friendly ops (exp, mul, add, select).
    # TODO(synk): switch to jax.lax.erf once its Mosaic lowering is confirmed.
    a1, a2, a3, a4, a5 = (0.254829592, -0.284496736, 1.421413741,
                          -1.453152027, 1.061405429)
    p = 0.3275911
    sgn = jnp.where(x >= 0.0, 1.0, -1.0)
    ax = jnp.abs(x)
    t = 1.0 / (1.0 + p * ax)
    poly = ((((a5 * t + a4) * t + a3) * t + a2) * t + a1) * t
    return sgn * (1.0 - poly * jnp.exp(-ax * ax))


def _gelu_exact(x):
    # matches torch nn.GELU() (exact erf form) to ~1e-7
    return 0.5 * x * (1.0 + _erf(x * 0.7071067811865476))


def _layernorm(x, g, b, eps):
    mu = jnp.mean(x, axis=-1, keepdims=True)
    xc = x - mu
    var = jnp.mean(xc * xc, axis=-1, keepdims=True)
    return xc * jax.lax.rsqrt(var + eps) * g.astype(jnp.float32) + b.astype(jnp.float32)


# ------------------------------ Pallas kernels ------------------------------

def _linear_kernel(x_ref, w_ref, b_ref, o_ref):
    x = x_ref[0].astype(MXU_DTYPE)
    w = w_ref[0].astype(MXU_DTYPE)
    y = jnp.dot(x, w, preferred_element_type=jnp.float32) + b_ref[0].astype(jnp.float32)
    o_ref[0] = y.astype(o_ref.dtype)


def linear_streams(x, w, b):
    """Per-stream linear: out[s] = x[s] @ w[s] + b[s].  x:(S,M,K) w:(S,K,N) b:(S,N)."""
    S, M, K = x.shape
    N = w.shape[-1]
    tm = _pick_token_tile(M, 2 * 4 * (K + N), S)
    return pl.pallas_call(
        _linear_kernel,
        out_shape=jax.ShapeDtypeStruct((S, M, N), x.dtype),
        grid=(S, M // tm),
        in_specs=[pl.BlockSpec((1, tm, K), lambda s, i: (s, i, 0)),
                  pl.BlockSpec((1, K, N), lambda s, i: (s, 0, 0)),
                  pl.BlockSpec((1, 1, N), lambda s, i: (s, 0, 0))],
        out_specs=pl.BlockSpec((1, tm, N), lambda s, i: (s, i, 0)),
        compiler_params=_cparams(("parallel", "parallel")),
    )(x, w, b.reshape(S, 1, N))


def _swin_block_kernel(x_ref, ln1g_ref, ln1b_ref, wqkv_ref, bias_ref,
                       wo_ref, bo_ref, ln2g_ref, ln2b_ref,
                       w1_ref, b1_ref, w2_ref, b2_ref, o_ref,
                       *, heads, head_dim, scale, eps):
    """One full SwinBlock for one (stream, batch) element, tokens in raster order."""
    x = x_ref[0].astype(jnp.float32)                   # (T, C) residual stream, f32
    bias = bias_ref[0]                                 # (T, T) rel-pos + window/shift mask
    wqkv = wqkv_ref[0]                                 # (3, heads, C, d)
    wo = wo_ref[0]                                     # (heads, d, C)

    # ---- attention branch: LN1 -> per-head qkv -> attention -> out-proj -> +res ----
    xn = _layernorm(x, ln1g_ref[0], ln1b_ref[0], eps).astype(MXU_DTYPE)
    acc = x + bo_ref[0].astype(jnp.float32)            # residual + out-proj bias
    for h in range(heads):                              # static unroll, heads is small
        wq = wqkv[0, h].astype(MXU_DTYPE)               # (C, d)
        wk = wqkv[1, h].astype(MXU_DTYPE)
        wv = wqkv[2, h].astype(MXU_DTYPE)
        # fold softmax scale into q (moves the multiply off the (T,T) score tensor)
        q = (jnp.dot(xn, wq, preferred_element_type=jnp.float32) * scale).astype(MXU_DTYPE)
        k = jnp.dot(xn, wk, preferred_element_type=jnp.float32).astype(MXU_DTYPE)
        v = jnp.dot(xn, wv, preferred_element_type=jnp.float32).astype(MXU_DTYPE)
        s = jax.lax.dot_general(q, k, (((1,), (1,)), ((), ())),
                                preferred_element_type=jnp.float32) + bias   # (T, T)
        m = jnp.max(s, axis=-1, keepdims=True)          # finite: diagonal never masked
        p = jnp.exp(s - m)
        l = jnp.sum(p, axis=-1, keepdims=True)
        o = jnp.dot(p.astype(MXU_DTYPE), v, preferred_element_type=jnp.float32)   # (T, d)
        # normalize AFTER PV (EUP reciprocal on a (T,1) tensor instead of (T,T))
        o = o * pl.reciprocal(jnp.maximum(l, 1e-30), approx=True)
        acc = acc + jnp.dot(o.astype(MXU_DTYPE), wo[h].astype(MXU_DTYPE),
                            preferred_element_type=jnp.float32)
    x2 = acc                                            # x + to_out(attn(LN1(x)))

    # ---- MLP branch: LN2 -> fc1 -> exact GELU -> fc2 -> +residual ----
    xn2 = _layernorm(x2, ln2g_ref[0], ln2b_ref[0], eps).astype(MXU_DTYPE)
    h1 = jnp.dot(xn2, w1_ref[0].astype(MXU_DTYPE),
                 preferred_element_type=jnp.float32) + b1_ref[0].astype(jnp.float32)
    h1 = _gelu_exact(h1)
    y = jnp.dot(h1.astype(MXU_DTYPE), w2_ref[0].astype(MXU_DTYPE),
                preferred_element_type=jnp.float32) + b2_ref[0].astype(jnp.float32)
    o_ref[0] = (x2 + y).astype(o_ref.dtype)


def swin_block(x, p, cfg, shifted, B):
    """x: (S, B*T, C) raster-order tokens -> (S, B*T, C). One fused kernel, grid=(S,B)."""
    S, M, C = x.shape
    T = M // B
    heads, d = cfg['n_heads'], cfg['head_dim']
    Hd = 4 * C

    rel_i, rel_j, mask = cfg['shifted_tables'] if shifted else cfg['regular_tables']
    # (S,T,T) additive bias in raster token order: learned rel-pos gathered through the
    # static index tables + static window / shift masks (the permuted P^T B P).
    bias = p['pos_emb'][:, rel_i, rel_j] + mask[None]

    # tiny parameter re-layouts (head-major) done once per forward in XLA
    wqkv = p['qkv_w'].reshape(S, C, 3, heads, d).transpose(0, 2, 3, 1, 4)  # (S,3,h,C,d)
    wo = p['out_w'].reshape(S, heads, d, C)

    x_sb = x.reshape(S * B, T, C)

    def stream_spec(shape):
        nd = len(shape)
        return pl.BlockSpec((1,) + shape, lambda s, b, _nd=nd: (s,) + (0,) * _nd)

    tok_spec = pl.BlockSpec((1, T, C), lambda s, b: (s * B + b, 0, 0))

    out = pl.pallas_call(
        functools.partial(_swin_block_kernel, heads=heads, head_dim=d,
                          scale=d ** -0.5, eps=LN_EPS),
        out_shape=jax.ShapeDtypeStruct((S * B, T, C), x.dtype),
        grid=(S, B),
        in_specs=[tok_spec,
                  stream_spec((1, C)), stream_spec((1, C)),        # ln1 gamma/beta
                  stream_spec((3, heads, C, d)),                   # qkv weights
                  stream_spec((T, T)),                             # bias
                  stream_spec((heads, d, C)), stream_spec((1, C)), # out proj w/b
                  stream_spec((1, C)), stream_spec((1, C)),        # ln2 gamma/beta
                  stream_spec((C, Hd)), stream_spec((1, Hd)),      # fc1
                  stream_spec((Hd, C)), stream_spec((1, C))],      # fc2
        out_specs=tok_spec,
        compiler_params=_cparams(("parallel", "parallel")),
    )(x_sb,
      p['ln1_g'].reshape(S, 1, C), p['ln1_b'].reshape(S, 1, C),
      wqkv, bias, wo, p['out_b'].reshape(S, 1, C),
      p['ln2_g'].reshape(S, 1, C), p['ln2_b'].reshape(S, 1, C),
      p['fc1_w'], p['fc1_b'].reshape(S, 1, Hd),
      p['fc2_w'], p['fc2_b'].reshape(S, 1, C))
    return out.reshape(S, M, C)


# ---------------------- static Swin bias / index tables ----------------------

def _relative_indices(ws):
    coords = np.array([[x, y] for x in range(ws) for y in range(ws)])
    rel = coords[None, :, :] - coords[:, None, :]
    return rel + ws - 1                                   # (n, n, 2) in [0, 2ws-2]


def _create_shift_mask(ws, disp, upper_lower, left_right):
    n = ws * ws
    mask = np.zeros((n, n), dtype=np.float32)
    if upper_lower:
        mask[-disp * ws:, :-disp * ws] = -np.inf
        mask[:-disp * ws, -disp * ws:] = -np.inf
    if left_right:
        mask = mask.reshape(ws, ws, ws, ws)
        mask[:, -disp:, :, :-disp] = -np.inf
        mask[:, :-disp, :, -disp:] = -np.inf
        mask = mask.reshape(n, n)
    return mask


def _build_raster_tables(H, W, ws, shifted):
    """Static per-token-pair tables in raster (row-major H,W) order:
      rel_i / rel_j : (T,T) int32 indices into the (2ws-1, 2ws-1) pos-embedding table
      mask          : (T,T) float additive mask (0 in-window, -inf cross-window,
                      Swin shift masks folded in for the shifted partition).
    This is exactly P^T B P for the roll + window-partition permutation P, so the
    activations themselves never need to be rolled or window-partitioned."""
    nw_h, nw_w = H // ws, W // ws
    disp = ws // 2 if shifted else 0
    hh = (np.arange(H) - disp) % H          # shifted row coordinate of each raster row
    ww = (np.arange(W) - disp) % W
    win_r = np.repeat(hh // ws, W)          # (T,) window row of each raster token
    win_c = np.tile(ww // ws, H)
    pos = np.repeat(hh % ws, W) * ws + np.tile(ww % ws, H)   # in-window flat position
    win_id = win_r * nw_w + win_c
    same = win_id[:, None] == win_id[None, :]
    mask = np.where(same, 0.0, -np.inf).astype(np.float32)
    if shifted:
        dsp = ws // 2
        ul = _create_shift_mask(ws, dsp, True, False)
        lr = _create_shift_mask(ws, dsp, False, True)
        pij = (pos[:, None], pos[None, :])
        mask = mask + np.where(same & (win_r == nw_h - 1)[:, None], ul[pij], 0.0)
        mask = mask + np.where(same & (win_c == nw_w - 1)[:, None], lr[pij], 0.0)
    rel = _relative_indices(ws)
    rel_i = rel[pos[:, None], pos[None, :], 0].astype(np.int32)
    rel_j = rel[pos[:, None], pos[None, :], 1].astype(np.int32)
    return rel_i, rel_j, mask


# ---------------------------- Swin / SSModule flow ---------------------------

def ss_module(x, params, cfg):
    """x: (S, B, C_in, H, W) NCHW per stream -> (S, B, n_feats, H//down, W//down)."""
    S, B, C_in, H, W = x.shape
    down = cfg['downsample_factor']
    nh, nw = H // down, W // down

    # --- SwinModule 0: PatchMerging = Unfold(k=down, s=down) (c, kh, kw order) + Linear
    xp = x.reshape(S, B, C_in, nh, down, nw, down).transpose(0, 1, 3, 5, 2, 4, 6)
    xp = xp.reshape(S, B * nh * nw, C_in * down * down)
    h = linear_streams(xp, params['m0']['patch_w'], params['m0']['patch_b'])
    for blk, shifted in zip(params['m0']['blocks'], (False, True)):  # regular, shifted
        h = swin_block(h, blk, cfg, shifted, B)

    # --- SwinModule 1: downsample_factor=1 -> PatchMerging degenerates to a per-token
    #     Linear over channels-last tokens (no layout change needed).
    h = linear_streams(h, params['m1']['patch_w'], params['m1']['patch_b'])
    for blk, shifted in zip(params['m1']['blocks'], (False, True)):
        h = swin_block(h, blk, cfg, shifted, B)

    dim = h.shape[-1]
    return h.reshape(S, B, nh, nw, dim).transpose(0, 1, 4, 2, 3)     # back to NCHW


def encoder_forward(params, streams, cfg):
    """streams: (S, B, C, H, W), S = encoder streams (inter / pan / ms)."""
    return ss_module(streams, params, cfg)


# ------------------------------ parameter init ------------------------------

def _init_linear(key, fan_in, fan_out, bias=True):
    kw, kb = jax.random.split(key)
    bound = 1.0 / np.sqrt(fan_in)
    w = jax.random.uniform(kw, (fan_in, fan_out), jnp.float32, -bound, bound)
    b = jax.random.uniform(kb, (fan_out,), jnp.float32, -bound, bound) if bias else None
    return w, b


def init_block(key, dim, heads, head_dim, win):
    inner = heads * head_dim
    ks = jax.random.split(key, 5)
    qkv_w, _ = _init_linear(ks[0], dim, 3 * inner, bias=False)
    out_w, out_b = _init_linear(ks[1], inner, dim)
    fc1_w, fc1_b = _init_linear(ks[2], dim, 4 * dim)
    fc2_w, fc2_b = _init_linear(ks[3], 4 * dim, dim)
    pos_emb = jax.random.normal(ks[4], (2 * win - 1, 2 * win - 1), jnp.float32)
    return {'ln1_g': jnp.ones((dim,), jnp.float32), 'ln1_b': jnp.zeros((dim,), jnp.float32),
            'qkv_w': qkv_w, 'pos_emb': pos_emb, 'out_w': out_w, 'out_b': out_b,
            'ln2_g': jnp.ones((dim,), jnp.float32), 'ln2_b': jnp.zeros((dim,), jnp.float32),
            'fc1_w': fc1_w, 'fc1_b': fc1_b, 'fc2_w': fc2_w, 'fc2_b': fc2_b}


def init_swin_module(key, in_ch, dim, heads, head_dim, win, down):
    ks = jax.random.split(key, 3)
    patch_w, patch_b = _init_linear(ks[0], in_ch * down * down, dim)
    return {'patch_w': patch_w, 'patch_b': patch_b,
            'blocks': [init_block(ks[1], dim, heads, head_dim, win),
                       init_block(ks[2], dim, heads, head_dim, win)]}


def init_ss_module(key, n_feats, heads, head_dim, win, down):
    k0, k1 = jax.random.split(key)
    return {'m0': init_swin_module(k0, n_feats // down, n_feats, heads, head_dim, win, down),
            'm1': init_swin_module(k1, n_feats, n_feats, heads, head_dim, win, 1)}


# ------------------------------------ main -----------------------------------

if __name__ == "__main__":
    # small config consistent with Encoder(n_feats, n_heads, head_dim, win_size, down)
    n_feats, n_heads, head_dim, win_size, down = 32, 2, 16, 4, 1
    B, H, W = 2, 8, 8
    in_ch = n_feats // down     # SSModule's first SwinModule expects n_feats // down

    key = jax.random.PRNGKey(0)
    kp0, kp1, kp2, k1, k2, k3 = jax.random.split(key, 6)

    # three independent parameter streams (inter / pan / ms), stacked leaf-wise
    per_stream = [init_ss_module(k, n_feats, n_heads, head_dim, win_size, down)
                  for k in (kp0, kp1, kp2)]
    params = jax.tree.map(lambda *xs: jnp.stack(xs), *per_stream)

    intermediate = jax.random.normal(k1, (B, in_ch, H, W), jnp.float32)
    pan_f = jax.random.normal(k2, (B, in_ch, H, W), jnp.float32)
    ms_f = jax.random.normal(k3, (B, in_ch, H, W), jnp.float32)
    streams = jnp.stack([intermediate, pan_f, ms_f])                 # (3, B, C, H, W)

    cfg = dict(n_heads=n_heads, head_dim=head_dim, win_size=win_size,
               downsample_factor=down,
               regular_tables=_build_raster_tables(H // down, W // down, win_size, False),
               shifted_tables=_build_raster_tables(H // down, W // down, win_size, True))

    fwd = jax.jit(functools.partial(encoder_forward, cfg=cfg))
    out = fwd(params, streams)
    jax.block_until_ready(out)
    inter_out, pan_out, ms_out = out[0], out[1], out[2]

    expected = (B, n_feats, H // down, W // down)
    assert inter_out.shape == expected, inter_out.shape
    assert pan_out.shape == expected and ms_out.shape == expected
    assert bool(jnp.all(jnp.isfinite(out)))
    print("KERNEL_OK")
</pallas_src>

<mosaic_0001>
module attributes {stable_mosaic.version = 11 : i64} {
  func.func @_linear_kernel(%arg0: i32, %arg1: i32, %arg2: memref<1x64x32xf32, #tpu.memory_space<vmem>>, %arg3: memref<1x32x32xf32, #tpu.memory_space<vmem>>, %arg4: memref<1x1x32xf32, #tpu.memory_space<vmem>>, %arg5: memref<1x64x32xf32, #tpu.memory_space<vmem>>) attributes {dimension_semantics = [#tpu.dimension_semantics<parallel>, #tpu.dimension_semantics<parallel>], iteration_bounds = array<i64: 3, 2>, scalar_prefetch = 0 : i64, scratch_operands = 0 : i64, tpu.core_type = #tpu.core_type<tc>, window_params = [{transform_indices = @transform_0, window_bounds = array<i64: 1, 64, 32>}, {transform_indices = @transform_1, window_bounds = array<i64: 1, 32, 32>}, {transform_indices = @transform_2, window_bounds = array<i64: 1, 1, 32>}, {transform_indices = @transform_3, window_bounds = array<i64: 1, 64, 32>}]} {
    %c0 = arith.constant 0 : index
    %c0_0 = arith.constant 0 : index
    %c0_1 = arith.constant 0 : index
    %0 = vector.load %arg2[%c0, %c0_0, %c0_1] : memref<1x64x32xf32, #tpu.memory_space<vmem>>, vector<1x64x32xf32>
    %1 = vector.shape_cast %0 : vector<1x64x32xf32> to vector<64x32xf32>
    %2 = arith.truncf %1 : vector<64x32xf32> to vector<64x32xbf16>
    %c0_2 = arith.constant 0 : index
    %c0_3 = arith.constant 0 : index
    %c0_4 = arith.constant 0 : index
    %3 = vector.load %arg3[%c0_2, %c0_3, %c0_4] : memref<1x32x32xf32, #tpu.memory_space<vmem>>, vector<1x32x32xf32>
    %4 = vector.shape_cast %3 : vector<1x32x32xf32> to vector<32x32xf32>
    %5 = arith.truncf %4 : vector<32x32xf32> to vector<32x32xbf16>
    %cst = arith.constant dense<0.000000e+00> : vector<64x32xf32>
    %6 = tpu.matmul %2, %5, %cst {dimension_numbers = #tpu.dot_dimension_numbers<[1], [0], [0], [1], [0, 0, 1, 1], [], []>} : vector<64x32xbf16>, vector<32x32xbf16>, vector<64x32xf32> -> vector<64x32xf32>
    %c0_5 = arith.constant 0 : index
    %c0_6 = arith.constant 0 : index
    %c0_7 = arith.constant 0 : index
    %7 = vector.load %arg4[%c0_5, %c0_6, %c0_7] : memref<1x1x32xf32, #tpu.memory_space<vmem>>, vector<1x1x32xf32>
    %8 = vector.shape_cast %7 : vector<1x1x32xf32> to vector<1x32xf32>
    %9 = vector.broadcast %8 : vector<1x32xf32> to vector<64x32xf32>
    %10 = arith.addf %6, %9 : vector<64x32xf32>
    %c0_8 = arith.constant 0 : index
    %c0_9 = arith.constant 0 : index
    %c0_10 = arith.constant 0 : index
    %11 = vector.load %arg5[%c0_8, %c0_9, %c0_10] : memref<1x64x32xf32, #tpu.memory_space<vmem>>, vector<1x64x32xf32>
    %12 = vector.shape_cast %11 : vector<1x64x32xf32> to vector<64x32xf32>
    %13 = vector.shape_cast %10 : vector<64x32xf32> to vector<1x64x32xf32>
    tpu.vector_store %arg5[%c0_8, %c0_9, %c0_10], %13 {strides = array<i32>} : memref<1x64x32xf32, #tpu.memory_space<vmem>>, vector<1x64x32xf32>,
    return
  }
  func.func @transform_0(%arg0: i32, %arg1: i32) -> (i32, i32, i32) {
    %c0_i32 = arith.constant 0 : i32
    %c0_i32_0 = arith.constant 0 : i32
    return %arg0, %arg1, %c0_i32 : i32, i32, i32
  }
  func.func @transform_1(%arg0: i32, %arg1: i32) -> (i32, i32, i32) {
    %c0_i32 = arith.constant 0 : i32
    %c0_i32_0 = arith.constant 0 : i32
    %c0_i32_1 = arith.constant 0 : i32
    return %arg0, %c0_i32, %c0_i32_0 : i32, i32, i32
  }
  func.func @transform_2(%arg0: i32, %arg1: i32) -> (i32, i32, i32) {
    %c0_i32 = arith.constant 0 : i32
    %c0_i32_0 = arith.constant 0 : i32
    %c0_i32_1 = arith.constant 0 : i32
    return %arg0, %c0_i32, %c0_i32_0 : i32, i32, i32
  }
  func.func @transform_3(%arg0: i32, %arg1: i32) -> (i32, i32, i32) {
    %c0_i32 = arith.constant 0 : i32
    %c0_i32_0 = arith.constant 0 : i32
    return %arg0, %arg1, %c0_i32 : i32, i32, i32
  }
}

module attributes {stable_mosaic.version = 11 : i64} {
  func.func @_swin_block_kernel(%arg0: i32, %arg1: i32, %arg2: memref<1x64x32xf32, #tpu.memory_space<vmem>>, %arg3: memref<1x1x32xf32, #tpu.memory_space<vmem>>, %arg4: memref<1x1x32xf32, #tpu.memory_space<vmem>>, %arg5: memref<1x3x2x32x16xf32, #tpu.memory_space<vmem>>, %arg6: memref<1x64x64xf32, #tpu.memory_space<vmem>>, %arg7: memref<1x2x16x32xf32, #tpu.memory_space<vmem>>, %arg8: memref<1x1x32xf32, #tpu.memory_space<vmem>>, %arg9: memref<1x1x32xf32, #tpu.memory_space<vmem>>, %arg10: memref<1x1x32xf32, #tpu.memory_space<vmem>>, %arg11: memref<1x32x128xf32, #tpu.memory_space<vmem>>, %arg12: memref<1x1x128xf32, #tpu.memory_space<vmem>>, %arg13: memref<1x128x32xf32, #tpu.memory_space<vmem>>, %arg14: memref<1x1x32xf32, #tpu.memory_space<vmem>>, %arg15: memref<1x64x32xf32, #tpu.memory_space<vmem>>) attributes {dimension_semantics = [#tpu.dimension_semantics<parallel>, #tpu.dimension_semantics<parallel>], iteration_bounds = array<i64: 3, 2>, scalar_prefetch = 0 : i64, scratch_operands = 0 : i64, tpu.core_type = #tpu.core_type<tc>, window_params = [{transform_indices = @transform_0, window_bounds = array<i64: 1, 64, 32>}, {transform_indices = @transform_1, window_bounds = array<i64: 1, 1, 32>}, {transform_indices = @transform_2, window_bounds = array<i64: 1, 1, 32>}, {transform_indices = @transform_3, window_bounds = array<i64: 1, 3, 2, 32, 16>}, {transform_indices = @transform_4, window_bounds = array<i64: 1, 64, 64>}, {transform_indices = @transform_5, window_bounds = array<i64: 1, 2, 16, 32>}, {transform_indices = @transform_6, window_bounds = array<i64: 1, 1, 32>}, {transform_indices = @transform_7, window_bounds = array<i64: 1, 1, 32>}, {transform_indices = @transform_8, window_bounds = array<i64: 1, 1, 32>}, {transform_indices = @transform_9, window_bounds = array<i64: 1, 32, 128>}, {transform_indices = @transform_10, window_bounds = array<i64: 1, 1, 128>}, {transform_indices = @transform_11, window_bounds = array<i64: 1, 128, 32>}, {transform_indices = @transform_12, window_bounds = array<i64: 1, 1, 32>}, {transform_indices = @transform_13, window_bounds = array<i64: 1, 64, 32>}]} {
    %c0 = arith.constant 0 : index
    %c0_0 = arith.constant 0 : index
    %c0_1 = arith.constant 0 : index
    %0 = vector.load %arg2[%c0, %c0_0, %c0_1] : memref<1x64x32xf32, #tpu.memory_space<vmem>>, vector<1x64x32xf32>
    %1 = vector.shape_cast %0 : vector<1x64x32xf32> to vector<64x32xf32>
    %c0_2 = arith.constant 0 : index
    %c0_3 = arith.constant 0 : index
    %c0_4 = arith.constant 0 : index
    %2 = vector.load %arg6[%c0_2, %c0_3, %c0_4] : memref<1x64x64xf32, #tpu.memory_space<vmem>>, vector<1x64x64xf32>
    %3 = vector.shape_cast %2 : vector<1x64x64xf32> to vector<64x64xf32>
    %c0_5 = arith.constant 0 : index
    %c0_6 = arith.constant 0 : index
    %c0_7 = arith.constant 0 : index
    %c0_8 = arith.constant 0 : index
    %c0_9 = arith.constant 0 : index
    %4 = vector.load %arg5[%c0_5, %c0_6, %c0_7, %c0_8, %c0_9] : memref<1x3x2x32x16xf32, #tpu.memory_space<vmem>>, vector<1x3x2x32x16xf32>
    %5 = vector.shape_cast %4 : vector<1x3x2x32x16xf32> to vector<3x2x32x16xf32>
    %c0_10 = arith.constant 0 : index
    %c0_11 = arith.constant 0 : index
    %c0_12 = arith.constant 0 : index
    %c0_13 = arith.constant 0 : index
    %6 = vector.load %arg7[%c0_10, %c0_11, %c0_12, %c0_13] : memref<1x2x16x32xf32, #tpu.memory_space<vmem>>, vector<1x2x16x32xf32>
    %7 = vector.shape_cast %6 : vector<1x2x16x32xf32> to vector<2x16x32xf32>
    %c0_14 = arith.constant 0 : index
    %c0_15 = arith.constant 0 : index
    %c0_16 = arith.constant 0 : index
    %8 = vector.load %arg3[%c0_14, %c0_15, %c0_16] : memref<1x1x32xf32, #tpu.memory_space<vmem>>, vector<1x1x32xf32>
    %9 = vector.shape_cast %8 : vector<1x1x32xf32> to vector<1x32xf32>
    %c0_17 = arith.constant 0 : index
    %c0_18 = arith.constant 0 : index
    %c0_19 = arith.constant 0 : index
    %10 = vector.load %arg4[%c0_17, %c0_18, %c0_19] : memref<1x1x32xf32, #tpu.memory_space<vmem>>, vector<1x1x32xf32>
    %11 = vector.shape_cast %10 : vector<1x1x32xf32> to vector<1x32xf32>
    %cst = arith.constant dense<0.000000e+00> : vector<64xf32>
    %12 = vector.multi_reduction <add>, %1, %cst [1] : vector<64x32xf32> to vector<64xf32>
    %13 = vector.shape_cast %12 : vector<64xf32> to vector<64x1xf32>
    %cst_20 = arith.constant 3.200000e+01 : f32
    %14 = vector.broadcast %cst_20 : f32 to vector<64x1xf32>
    %15 = arith.divf %13, %14 : vector<64x1xf32>
    %16 = vector.broadcast %15 : vector<64x1xf32> to vector<64x32xf32>
    %17 = arith.subf %1, %16 : vector<64x32xf32>
    %18 = arith.mulf %17, %17 : vector<64x32xf32>
    %cst_21 = arith.constant dense<0.000000e+00> : vector<64xf32>
    %19 = vector.multi_reduction <add>, %18, %cst_21 [1] : vector<64x32xf32> to vector<64xf32>
    %20 = vector.shape_cast %19 : vector<64xf32> to vector<64x1xf32>
    %cst_22 = arith.constant 3.200000e+01 : f32
    %21 = vector.broadcast %cst_22 : f32 to vector<64x1xf32>
    %22 = arith.divf %20, %21 : vector<64x1xf32>
    %cst_23 = arith.constant 9.99999974E-6 : f32
    %23 = vector.broadcast %cst_23 : f32 to vector<64x1xf32>
    %24 = arith.addf %22, %23 : vector<64x1xf32>
    %25 = math.rsqrt %24 : vector<64x1xf32>
    %26 = vector.broadcast %25 : vector<64x1xf32> to vector<64x32xf32>
    %27 = arith.mulf %17, %26 : vector<64x32xf32>
    %28 = vector.broadcast %9 : vector<1x32xf32> to vector<64x32xf32>
    %29 = arith.mulf %27, %28 : vector<64x32xf32>
    %30 = vector.broadcast %11 : vector<1x32xf32> to vector<64x32xf32>
    %31 = arith.addf %29, %30 : vector<64x32xf32>
    %32 = arith.truncf %31 : vector<64x32xf32> to vector<64x32xbf16>
    %c0_24 = arith.constant 0 : index
    %c0_25 = arith.constant 0 : index
    %c0_26 = arith.constant 0 : index
    %33 = vector.load %arg8[%c0_24, %c0_25, %c0_26] : memref<1x1x32xf32, #tpu.memory_space<vmem>>, vector<1x1x32xf32>
    %34 = vector.shape_cast %33 : vector<1x1x32xf32> to vector<1x32xf32>
    %35 = vector.broadcast %34 : vector<1x32xf32> to vector<64x32xf32>
    %36 = arith.addf %1, %35 : vector<64x32xf32>
    %37 = vector.extract_strided_slice %5 {offsets = [0, 0, 0, 0], sizes = [1, 1, 32, 16], strides = [1, 1, 1, 1]} : vector<3x2x32x16xf32> to vector<1x1x32x16xf32>
    %38 = vector.shape_cast %37 : vector<1x1x32x16xf32> to vector<32x16xf32>
    %39 = arith.truncf %38 : vector<32x16xf32> to vector<32x16xbf16>
    %40 = vector.extract_strided_slice %5 {offsets = [1, 0, 0, 0], sizes = [1, 1, 32, 16], strides = [1, 1, 1, 1]} : vector<3x2x32x16xf32> to vector<1x1x32x16xf32>
    %41 = vector.shape_cast %40 : vector<1x1x32x16xf32> to vector<32x16xf32>
    %42 = arith.truncf %41 : vector<32x16xf32> to vector<32x16xbf16>
    %43 = vector.extract_strided_slice %5 {offsets = [2, 0, 0, 0], sizes = [1, 1, 32, 16], strides = [1, 1, 1, 1]} : vector<3x2x32x16xf32> to vector<1x1x32x16xf32>
    %44 = vector.shape_cast %43 : vector<1x1x32x16xf32> to vector<32x16xf32>
    %45 = arith.truncf %44 : vector<32x16xf32> to vector<32x16xbf16>
    %cst_27 = arith.constant dense<0.000000e+00> : vector<64x16xf32>
    %46 = tpu.matmul %32, %39, %cst_27 {dimension_numbers = #tpu.dot_dimension_numbers<[1], [0], [0], [1], [0, 0, 1, 1], [], []>} : vector<64x32xbf16>, vector<32x16xbf16>, vector<64x16xf32> -> vector<64x16xf32>
    %cst_28 = arith.constant 2.500000e-01 : f32
    %47 = vector.broadcast %cst_28 : f32 to vector<64x16xf32>
    %48 = arith.mulf %46, %47 : vector<64x16xf32>
    %49 = arith.truncf %48 : vector<64x16xf32> to vector<64x16xbf16>
    %cst_29 = arith.constant dense<0.000000e+00> : vector<64x16xf32>
    %50 = tpu.matmul %32, %42, %cst_29 {dimension_numbers = #tpu.dot_dimension_numbers<[1], [0], [0], [1], [0, 0, 1, 1], [], []>} : vector<64x32xbf16>, vector<32x16xbf16>, vector<64x16xf32> -> vector<64x16xf32>
    %51 = arith.truncf %50 : vector<64x16xf32> to vector<64x16xbf16>
    %cst_30 = arith.constant dense<0.000000e+00> : vector<64x16xf32>
    %52 = tpu.matmul %32, %45, %cst_30 {dimension_numbers = #tpu.dot_dimension_numbers<[1], [0], [0], [1], [0, 0, 1, 1], [], []>} : vector<64x32xbf16>, vector<32x16xbf16>, vector<64x16xf32> -> vector<64x16xf32>
    %53 = arith.truncf %52 : vector<64x16xf32> to vector<64x16xbf16>
    %cst_31 = arith.constant dense<0.000000e+00> : vector<64x64xf32>
    %54 = tpu.matmul %49, %51, %cst_31 {dimension_numbers = #tpu.dot_dimension_numbers<[1], [1], [0], [0], [0, 0, 1, 0], [], []>} : vector<64x16xbf16>, vector<64x16xbf16>, vector<64x64xf32> -> vector<64x64xf32>
    %55 = arith.addf %54, %3 : vector<64x64xf32>
    %cst_32 = arith.constant dense<0xFF800000> : vector<64xf32>
    %56 = vector.multi_reduction <maximumf>, %55, %cst_32 [1] : vector<64x64xf32> to vector<64xf32>
    %57 = vector.shape_cast %56 : vector<64xf32> to vector<64x1xf32>
    %58 = vector.broadcast %57 : vector<64x1xf32> to vector<64x64xf32>
    %59 = arith.subf %55, %58 : vector<64x64xf32>
    %60 = math.exp %59 : vector<64x64xf32>
    %cst_33 = arith.constant dense<0.000000e+00> : vector<64xf32>
    %61 = vector.multi_reduction <add>, %60, %cst_33 [1] : vector<64x64xf32> to vector<64xf32>
    %62 = vector.shape_cast %61 : vector<64xf32> to vector<64x1xf32>
    %63 = arith.truncf %60 : vector<64x64xf32> to vector<64x64xbf16>
    %cst_34 = arith.constant dense<0.000000e+00> : vector<64x16xf32>
    %64 = tpu.matmul %63, %53, %cst_34 {dimension_numbers = #tpu.dot_dimension_numbers<[1], [0], [0], [1], [0, 0, 1, 1], [], []>} : vector<64x64xbf16>, vector<64x16xbf16>, vector<64x16xf32> -> vector<64x16xf32>
    %cst_35 = arith.constant 1.000000e-30 : f32
    %65 = vector.broadcast %cst_35 : f32 to vector<64x1xf32>
    %66 = arith.maximumf %62, %65 : vector<64x1xf32>
    %67 = tpu.reciprocal %66 {approx = true} : vector<64x1xf32> -> vector<64x1xf32>
    %68 = vector.broadcast %67 : vector<64x1xf32> to vector<64x16xf32>
    %69 = arith.mulf %64, %68 : vector<64x16xf32>
    %70 = arith.truncf %69 : vector<64x16xf32> to vector<64x16xbf16>
    %71 = vector.extract_strided_slice %7 {offsets = [0, 0, 0], sizes = [1, 16, 32], strides = [1, 1, 1]} : vector<2x16x32xf32> to vector<1x16x32xf32>
    %72 = vector.shape_cast %71 : vector<1x16x32xf32> to vector<16x32xf32>
    %73 = arith.truncf %72 : vector<16x32xf32> to vector<16x32xbf16>
    %cst_36 = arith.constant dense<0.000000e+00> : vector<64x32xf32>
    %74 = tpu.matmul %70, %73, %cst_36 {dimension_numbers = #tpu.dot_dimension_numbers<[1], [0], [0], [1], [0, 0, 1, 1], [], []>} : vector<64x16xbf16>, vector<16x32xbf16>, vector<64x32xf32> -> vector<64x32xf32>
    %75 = arith.addf %36, %74 : vector<64x32xf32>
    %76 = vector.extract_strided_slice %5 {offsets = [0, 1, 0, 0], sizes = [1, 1, 32, 16], strides = [1, 1, 1, 1]} : vector<3x2x32x16xf32> to vector<1x1x32x16xf32>
    %77 = vector.shape_cast %76 : vector<1x1x32x16xf32> to vector<32x16xf32>
    %78 = arith.truncf %77 : vector<32x16xf32> to vector<32x16xbf16>
    %79 = vector.extract_strided_slice %5 {offsets = [1, 1, 0, 0], sizes = [1, 1, 32, 16], strides = [1, 1, 1, 1]} : vector<3x2x32x16xf32> to vector<1x1x32x16xf32>
    %80 = vector.shape_cast %79 : vector<1x1x32x16xf32> to vector<32x16xf32>
    %81 = arith.truncf %80 : vector<32x16xf32> to vector<32x16xbf16>
    %82 = vector.extract_strided_slice %5 {offsets = [2, 1, 0, 0], sizes = [1, 1, 32, 16], strides = [1, 1, 1, 1]} : vector<3x2x32x16xf32> to vector<1x1x32x16xf32>
    %83 = vector.shape_cast %82 : vector<1x1x32x16xf32> to vector<32x16xf32>
    %84 = arith.truncf %83 : vector<32x16xf32> to vector<32x16xbf16>
    %cst_37 = arith.constant dense<0.000000e+00> : vector<64x16xf32>
    %85 = tpu.matmul %32, %78, %cst_37 {dimension_numbers = #tpu.dot_dimension_numbers<[1], [0], [0], [1], [0, 0, 1, 1], [], []>} : vector<64x32xbf16>, vector<32x16xbf16>, vector<64x16xf32> -> vector<64x16xf32>
    %cst_38 = arith.constant 2.500000e-01 : f32
    %86 = vector.broadcast %cst_38 : f32 to vector<64x16xf32>
    %87 = arith.mulf %85, %86 : vector<64x16xf32>
    %88 = arith.truncf %87 : vector<64x16xf32> to vector<64x16xbf16>
    %cst_39 = arith.constant dense<0.000000e+00> : vector<64x16xf32>
    %89 = tpu.matmul %32, %81, %cst_39 {dimension_numbers = #tpu.dot_dimension_numbers<[1], [0], [0], [1], [0, 0, 1, 1], [], []>} : vector<64x32xbf16>, vector<32x16xbf16>, vector<64x16xf32> -> vector<64x16xf32>
    %90 = arith.truncf %89 : vector<64x16xf32> to vector<64x16xbf16>
    %cst_40 = arith.constant dense<0.000000e+00> : vector<64x16xf32>
    %91 = tpu.matmul %32, %84, %cst_40 {dimension_numbers = #tpu.dot_dimension_numbers<[1], [0], [0], [1], [0, 0, 1, 1], [], []>} : vector<64x32xbf16>, vector<32x16xbf16>, vector<64x16xf32> -> vector<64x16xf32>
    %92 = arith.truncf %91 : vector<64x16xf32> to vector<64x16xbf16>
    %cst_41 = arith.constant dense<0.000000e+00> : vector<64x64xf32>
    %93 = tpu.matmul %88, %90, %cst_41 {dimension_numbers = #tpu.dot_dimension_numbers<[1], [1], [0], [0], [0, 0, 1, 0], [], []>} : vector<64x16xbf16>, vector<64x16xbf16>, vector<64x64xf32> -> vector<64x64xf32>
    %94 = arith.addf %93, %3 : vector<64x64xf32>
    %cst_42 = arith.constant dense<0xFF800000> : vector<64xf32>
    %95 = vector.multi_reduction <maximumf>, %94, %cst_42 [1] : vector<64x64xf32> to vector<64xf32>
    %96 = vector.shape_cast %95 : vector<64xf32> to vector<64x1xf32>
    %97 = vector.broadcast %96 : vector<64x1xf32> to vector<64x64xf32>
    %98 = arith.subf %94, %97 : vector<64x64xf32>
    %99 = math.exp %98 : vector<64x64xf32>
    %cst_43 = arith.constant dense<0.000000e+00> : vector<64xf32>
    %100 = vector.multi_reduction <add>, %99, %cst_43 [1] : vector<64x64xf32> to vector<64xf32>
    %101 = vector.shape_cast %100 : vector<64xf32> to vector<64x1xf32>
    %102 = arith.truncf %99 : vector<64x64xf32> to vector<64x64xbf16>
    %cst_44 = arith.constant dense<0.000000e+00> : vector<64x16xf32>
    %103 = tpu.matmul %102, %92, %cst_44 {dimension_numbers = #tpu.dot_dimension_numbers<[1], [0], [0], [1], [0, 0, 1, 1], [], []>} : vector<64x64xbf16>, vector<64x16xbf16>, vector<64x16xf32> -> vector<64x16xf32>
    %cst_45 = arith.constant 1.000000e-30 : f32
    %104 = vector.broadcast %cst_45 : f32 to vector<64x1xf32>
    %105 = arith.maximumf %101, %104 : vector<64x1xf32>
    %106 = tpu.reciprocal %105 {approx = true} : vector<64x1xf32> -> vector<64x1xf32>
    %107 = vector.broadcast %106 : vector<64x1xf32> to vector<64x16xf32>
    %108 = arith.mulf %103, %107 : vector<64x16xf32>
    %109 = arith.truncf %108 : vector<64x16xf32> to vector<64x16xbf16>
    %110 = vector.extract_strided_slice %7 {offsets = [1, 0, 0], sizes = [1, 16, 32], strides = [1, 1, 1]} : vector<2x16x32xf32> to vector<1x16x32xf32>
    %111 = vector.shape_cast %110 : vector<1x16x32xf32> to vector<16x32xf32>
    %112 = arith.truncf %111 : vector<16x32xf32> to vector<16x32xbf16>
    %cst_46 = arith.constant dense<0.000000e+00> : vector<64x32xf32>
    %113 = tpu.matmul %109, %112, %cst_46 {dimension_numbers = #tpu.dot_dimension_numbers<[1], [0], [0], [1], [0, 0, 1, 1], [], []>} : vector<64x16xbf16>, vector<16x32xbf16>, vector<64x32xf32> -> vector<64x32xf32>
    %114 = arith.addf %75, %113 : vector<64x32xf32>
    %c0_47 = arith.constant 0 : index
    %c0_48 = arith.constant 0 : index
    %c0_49 = arith.constant 0 : index
    %115 = vector.load %arg9[%c0_47, %c0_48, %c0_49] : memref<1x1x32xf32, #tpu.memory_space<vmem>>, vector<1x1x32xf32>
    %116 = vector.shape_cast %115 : vector<1x1x32xf32> to vector<1x32xf32>
    %c0_50 = arith.constant 0 : index
    %c0_51 = arith.constant 0 : index
    %c0_52 = arith.constant 0 : index
    %117 = vector.load %arg10[%c0_50, %c0_51, %c0_52] : memref<1x1x32xf32, #tpu.memory_space<vmem>>, vector<1x1x32xf32>
    %118 = vector.shape_cast %117 : vector<1x1x32xf32> to vector<1x32xf32>
    %cst_53 = arith.constant dense<0.000000e+00> : vector<64xf32>
    %119 = vector.multi_reduction <add>, %114, %cst_53 [1] : vector<64x32xf32> to vector<64xf32>
    %120 = vector.shape_cast %119 : vector<64xf32> to vector<64x1xf32>
    %cst_54 = arith.constant 3.200000e+01 : f32
    %121 = vector.broadcast %cst_54 : f32 to vector<64x1xf32>
    %122 = arith.divf %120, %121 : vector<64x1xf32>
    %123 = vector.broadcast %122 : vector<64x1xf32> to vector<64x32xf32>
    %124 = arith.subf %114, %123 : vector<64x32xf32>
    %125 = arith.mulf %124, %124 : vector<64x32xf32>
    %cst_55 = arith.constant dense<0.000000e+00> : vector<64xf32>
    %126 = vector.multi_reduction <add>, %125, %cst_55 [1] : vector<64x32xf32> to vector<64xf32>
    %127 = vector.shape_cast %126 : vector<64xf32> to vector<64x1xf32>
    %cst_56 = arith.constant 3.200000e+01 : f32
    %128 = vector.broadcast %cst_56 : f32 to vector<64x1xf32>
    %129 = arith.divf %127, %128 : vector<64x1xf32>
    %cst_57 = arith.constant 9.99999974E-6 : f32
    %130 = vector.broadcast %cst_57 : f32 to vector<64x1xf32>
    %131 = arith.addf %129, %130 : vector<64x1xf32>
    %132 = math.rsqrt %131 : vector<64x1xf32>
    %133 = vector.broadcast %132 : vector<64x1xf32> to vector<64x32xf32>
    %134 = arith.mulf %124, %133 : vector<64x32xf32>
    %135 = vector.broadcast %116 : vector<1x32xf32> to vector<64x32xf32>
    %136 = arith.mulf %134, %135 : vector<64x32xf32>
    %137 = vector.broadcast %118 : vector<1x32xf32> to vector<64x32xf32>
    %138 = arith.addf %136, %137 : vector<64x32xf32>
    %139 = arith.truncf %138 : vector<64x32xf32> to vector<64x32xbf16>
    %c0_58 = arith.constant 0 : index
    %c0_59 = arith.constant 0 : index
    %c0_60 = arith.constant 0 : index
    %140 = vector.load %arg11[%c0_58, %c0_59, %c0_60] : memref<1x32x128xf32, #tpu.memory_space<vmem>>, vector<1x32x128xf32>
    %141 = vector.shape_cast %140 : vector<1x32x128xf32> to vector<32x128xf32>
    %142 = arith.truncf %141 : vector<32x128xf32> to vector<32x128xbf16>
    %cst_61 = arith.constant dense<0.000000e+00> : vector<64x128xf32>
    %143 = tpu.matmul %139, %142, %cst_61 {dimension_numbers = #tpu.dot_dimension_numbers<[1], [0], [0], [1], [0, 0, 1, 1], [], []>} : vector<64x32xbf16>, vector<32x128xbf16>, vector<64x128xf32> -> vector<64x128xf32>
    %c0_62 = arith.constant 0 : index
    %c0_63 = arith.constant 0 : index
    %c0_64 = arith.constant 0 : index
    %144 = vector.load %arg12[%c0_62, %c0_63, %c0_64] : memref<1x1x128xf32, #tpu.memory_space<vmem>>, vector<1x1x128xf32>
    %145 = vector.shape_cast %144 : vector<1x1x128xf32> to vector<1x128xf32>
    %146 = vector.broadcast %145 : vector<1x128xf32> to vector<64x128xf32>
    %147 = arith.addf %143, %146 : vector<64x128xf32>
    %cst_65 = arith.constant 5.000000e-01 : f32
    %148 = vector.broadcast %cst_65 : f32 to vector<64x128xf32>
    %149 = arith.mulf %148, %147 : vector<64x128xf32>
    %cst_66 = arith.constant 0.707106769 : f32
    %150 = vector.broadcast %cst_66 : f32 to vector<64x128xf32>
    %151 = arith.mulf %147, %150 : vector<64x128xf32>
    %cst_67 = arith.constant 0.000000e+00 : f32
    %152 = vector.broadcast %cst_67 : f32 to vector<64x128xf32>
    %153 = arith.cmpf oge, %151, %152 : vector<64x128xf32>
    %cst_68 = arith.constant 1.000000e+00 : f32
    %cst_69 = arith.constant -1.000000e+00 : f32
    %154 = vector.broadcast %cst_68 : f32 to vector<64x128xf32>
    %155 = vector.broadcast %cst_69 : f32 to vector<64x128xf32>
    %156 = arith.select %153, %154, %155 : vector<64x128xi1>, vector<64x128xf32>
    %157 = math.absf %151 : vector<64x128xf32>
    %cst_70 = arith.constant 0.327591091 : f32
    %158 = vector.broadcast %cst_70 : f32 to vector<64x128xf32>
    %159 = arith.mulf %158, %157 : vector<64x128xf32>
    %cst_71 = arith.constant 1.000000e+00 : f32
    %160 = vector.broadcast %cst_71 : f32 to vector<64x128xf32>
    %161 = arith.addf %160, %159 : vector<64x128xf32>
    %cst_72 = arith.constant 1.000000e+00 : f32
    %162 = vector.broadcast %cst_72 : f32 to vector<64x128xf32>
    %163 = arith.divf %162, %161 : vector<64x128xf32>
    %cst_73 = arith.constant 1.06140542 : f32
    %164 = vector.broadcast %cst_73 : f32 to vector<64x128xf32>
    %165 = arith.mulf %164, %163 : vector<64x128xf32>
    %cst_74 = arith.constant -1.45315206 : f32
    %166 = vector.broadcast %cst_74 : f32 to vector<64x128xf32>
    %167 = arith.addf %165, %166 : vector<64x128xf32>
    %168 = arith.mulf %167, %163 : vector<64x128xf32>
    %cst_75 = arith.constant 1.42141378 : f32
    %169 = vector.broadcast %cst_75 : f32 to vector<64x128xf32>
    %170 = arith.addf %168, %169 : vector<64x128xf32>
    %171 = arith.mulf %170, %163 : vector<64x128xf32>
    %cst_76 = arith.constant -0.284496725 : f32
    %172 = vector.broadcast %cst_76 : f32 to vector<64x128xf32>
    %173 = arith.addf %171, %172 : vector<64x128xf32>
    %174 = arith.mulf %173, %163 : vector<64x128xf32>
    %cst_77 = arith.constant 0.254829586 : f32
    %175 = vector.broadcast %cst_77 : f32 to vector<64x128xf32>
    %176 = arith.addf %174, %175 : vector<64x128xf32>
    %177 = arith.mulf %176, %163 : vector<64x128xf32>
    %cst_78 = arith.constant 0.000000e+00 : f32
    %178 = vector.broadcast %cst_78 : f32 to vector<64x128xf32>
    %179 = arith.subf %178, %157 : vector<64x128xf32>
    %180 = arith.mulf %179, %157 : vector<64x128xf32>
    %181 = math.exp %180 : vector<64x128xf32>
    %182 = arith.mulf %177, %181 : vector<64x128xf32>
    %cst_79 = arith.constant 1.000000e+00 : f32
    %183 = vector.broadcast %cst_79 : f32 to vector<64x128xf32>
    %184 = arith.subf %183, %182 : vector<64x128xf32>
    %185 = arith.mulf %156, %184 : vector<64x128xf32>
    %cst_80 = arith.constant 1.000000e+00 : f32
    %186 = vector.broadcast %cst_80 : f32 to vector<64x128xf32>
    %187 = arith.addf %186, %185 : vector<64x128xf32>
    %188 = arith.mulf %149, %187 : vector<64x128xf32>
    %189 = arith.truncf %188 : vector<64x128xf32> to vector<64x128xbf16>
    %c0_81 = arith.constant 0 : index
    %c0_82 = arith.constant 0 : index
    %c0_83 = arith.constant 0 : index
    %190 = vector.load %arg13[%c0_81, %c0_82, %c0_83] : memref<1x128x32xf32, #tpu.memory_space<vmem>>, vector<1x128x32xf32>
    %191 = vector.shape_cast %190 : vector<1x128x32xf32> to vector<128x32xf32>
    %192 = arith.truncf %191 : vector<128x32xf32> to vector<128x32xbf16>
    %cst_84 = arith.constant dense<0.000000e+00> : vector<64x32xf32>
    %193 = tpu.matmul %189, %192, %cst_84 {dimension_numbers = #tpu.dot_dimension_numbers<[1], [0], [0], [1], [0, 0, 1, 1], [], []>} : vector<64x128xbf16>, vector<128x32xbf16>, vector<64x32xf32> -> vector<64x32xf32>
    %c0_85 = arith.constant 0 : index
    %c0_86 = arith.constant 0 : index
    %c0_87 = arith.constant 0 : index
    %194 = vector.load %arg14[%c0_85, %c0_86, %c0_87] : memref<1x1x32xf32, #tpu.memory_space<vmem>>, vector<1x1x32xf32>
    %195 = vector.shape_cast %194 : vector<1x1x32xf32> to vector<1x32xf32>
    %196 = vector.broadcast %195 : vector<1x32xf32> to vector<64x32xf32>
    %197 = arith.addf %193, %196 : vector<64x32xf32>
    %198 = arith.addf %114, %197 : vector<64x32xf32>
    %c0_88 = arith.constant 0 : index
    %c0_89 = arith.constant 0 : index
    %c0_90 = arith.constant 0 : index
    %199 = vector.load %arg15[%c0_88, %c0_89, %c0_90] : memref<1x64x32xf32, #tpu.memory_space<vmem>>, vector<1x64x32xf32>
    %200 = vector.shape_cast %199 : vector<1x64x32xf32> to vector<64x32xf32>
    %201 = vector.shape_cast %198 : vector<64x32xf32> to vector<1x64x32xf32>
    tpu.vector_store %arg15[%c0_88, %c0_89, %c0_90], %201 {strides = array<i32>} : memref<1x64x32xf32, #tpu.memory_space<vmem>>, vector<1x64x32xf32>,
    return
  }
  func.func @transform_0(%arg0: i32, %arg1: i32) -> (i32, i32, i32) {
    %c2_i32 = arith.constant 2 : i32
    %0 = arith.muli %arg0, %c2_i32 : i32
    %1 = arith.addi %0, %arg1 : i32
    %c0_i32 = arith.constant 0 : i32
    %c0_i32_0 = arith.constant 0 : i32
    %c0_i32_1 = arith.constant 0 : i32
    return %1, %c0_i32, %c0_i32_0 : i32, i32, i32
  }
  func.func @transform_1(%arg0: i32, %arg1: i32) -> (i32, i32, i32) {
    %c0_i32 = arith.constant 0 : i32
    %c0_i32_0 = arith.constant 0 : i32
    %c0_i32_1 = arith.constant 0 : i32
    return %arg0, %c0_i32, %c0_i32_0 : i32, i32, i32
  }
  func.func @transform_2(%arg0: i32, %arg1: i32) -> (i32, i32, i32) {
    %c0_i32 = arith.constant 0 : i32
    %c0_i32_0 = arith.constant 0 : i32
    %c0_i32_1 = arith.constant 0 : i32
    return %arg0, %c0_i32, %c0_i32_0 : i32, i32, i32
  }
  func.func @transform_3(%arg0: i32, %arg1: i32) -> (i32, i32, i32, i32, i32) {
    %c0_i32 = arith.constant 0 : i32
    %c0_i32_0 = arith.constant 0 : i32
    %c0_i32_1 = arith.constant 0 : i32
    %c0_i32_2 = arith.constant 0 : i32
    %c0_i32_3 = arith.constant 0 : i32
    return %arg0, %c0_i32, %c0_i32_0, %c0_i32_1, %c0_i32_2 : i32, i32, i32, i32, i32
  }
  func.func @transform_4(%arg0: i32, %arg1: i32) -> (i32, i32, i32) {
    %c0_i32 = arith.constant 0 : i32
    %c0_i32_0 = arith.constant 0 : i32
    %c0_i32_1 = arith.constant 0 : i32
    return %arg0, %c0_i32, %c0_i32_0 : i32, i32, i32
  }
  func.func @transform_5(%arg0: i32, %arg1: i32) -> (i32, i32, i32, i32) {
    %c0_i32 = arith.constant 0 : i32
    %c0_i32_0 = arith.constant 0 : i32
    %c0_i32_1 = arith.constant 0 : i32
    %c0_i32_2 = arith.constant 0 : i32
    return %arg0, %c0_i32, %c0_i32_0, %c0_i32_1 : i32, i32, i32, i32
  }
  func.func @transform_6(%arg0: i32, %arg1: i32) -> (i32, i32, i32) {
    %c0_i32 = arith.constant 0 : i32
    %c0_i32_0 = arith.constant 0 : i32
    %c0_i32_1 = arith.constant 0 : i32
    return %arg0, %c0_i32, %c0_i32_0 : i32, i32, i32
  }
  func.func @transform_7(%arg0: i32, %arg1: i32) -> (i32, i32, i32) {
    %c0_i32 = arith.constant 0 : i32
    %c0_i32_0 = arith.constant 0 : i32
    %c0_i32_1 = arith.constant 0 : i32
    return %arg0, %c0_i32, %c0_i32_0 : i32, i32, i32
  }
  func.func @transform_8(%arg0: i32, %arg1: i32) -> (i32, i32, i32) {
    %c0_i32 = arith.constant 0 : i32
    %c0_i32_0 = arith.constant 0 : i32
    %c0_i32_1 = arith.constant 0 : i32
    return %arg0, %c0_i32, %c0_i32_0 : i32, i32, i32
  }
  func.func @transform_9(%arg0: i32, %arg1: i32) -> (i32, i32, i32) {
    %c0_i32 = arith.constant 0 : i32
    %c0_i32_0 = arith.constant 0 : i32
    %c0_i32_1 = arith.constant 0 : i32
    return %arg0, %c0_i32, %c0_i32_0 : i32, i32, i32
  }
  func.func @transform_10(%arg0: i32, %arg1: i32) -> (i32, i32, i32) {
    %c0_i32 = arith.constant 0 : i32
    %c0_i32_0 = arith.constant 0 : i32
    %c0_i32_1 = arith.constant 0 : i32
    return %arg0, %c0_i32, %c0_i32_0 : i32, i32, i32
  }
  func.func @transform_11(%arg0: i32, %arg1: i32) -> (i32, i32, i32) {
    %c0_i32 = arith.constant 0 : i32
    %c0_i32_0 = arith.constant 0 : i32
    %c0_i32_1 = arith.constant 0 : i32
    return %arg0, %c0_i32, %c0_i32_0 : i32, i32, i32
  }
  func.func @transform_12(%arg0: i32, %arg1: i32) -> (i32, i32, i32) {
    %c0_i32 = arith.constant 0 : i32
    %c0_i32_0 = arith.constant 0 : i32
    %c0_i32_1 = arith.constant 0 : i32
    return %arg0, %c0_i32, %c0_i32_0 : i32, i32, i32
  }
  func.func @transform_13(%arg0: i32, %arg1: i32) -> (i32, i32, i32) {
    %c2_i32 = arith.constant 2 : i32
    %0 = arith.muli %arg0, %c2_i32 : i32
    %1 = arith.addi %0, %arg1 : i32
    %c0_i32 = arith.constant 0 : i32
    %c0_i32_0 = arith.constant 0 : i32
    %c0_i32_1 = arith.constant 0 : i32
    return %1, %c0_i32, %c0_i32_0 : i32, i32, i32
  }
}

module attributes {stable_mosaic.version = 11 : i64} {
  func.func @_swin_block_kernel(%arg0: i32, %arg1: i32, %arg2: memref<1x64x32xf32, #tpu.memory_space<vmem>>, %arg3: memref<1x1x32xf32, #tpu.memory_space<vmem>>, %arg4: memref<1x1x32xf32, #tpu.memory_space<vmem>>, %arg5: memref<1x3x2x32x16xf32, #tpu.memory_space<vmem>>, %arg6: memref<1x64x64xf32, #tpu.memory_space<vmem>>, %arg7: memref<1x2x16x32xf32, #tpu.memory_space<vmem>>, %arg8: memref<1x1x32xf32, #tpu.memory_space<vmem>>, %arg9: memref<1x1x32xf32, #tpu.memory_space<vmem>>, %arg10: memref<1x1x32xf32, #tpu.memory_space<vmem>>, %arg11: memref<1x32x128xf32, #tpu.memory_space<vmem>>, %arg12: memref<1x1x128xf32, #tpu.memory_space<vmem>>, %arg13: memref<1x128x32xf32, #tpu.memory_space<vmem>>, %arg14: memref<1x1x32xf32, #tpu.memory_space<vmem>>, %arg15: memref<1x64x32xf32, #tpu.memory_space<vmem>>) attributes {dimension_semantics = [#tpu.dimension_semantics<parallel>, #tpu.dimension_semantics<parallel>], iteration_bounds = array<i64: 3, 2>, scalar_prefetch = 0 : i64, scratch_operands = 0 : i64, tpu.core_type = #tpu.core_type<tc>, window_params = [{transform_indices = @transform_0, window_bounds = array<i64: 1, 64, 32>}, {transform_indices = @transform_1, window_bounds = array<i64: 1, 1, 32>}, {transform_indices = @transform_2, window_bounds = array<i64: 1, 1, 32>}, {transform_indices = @transform_3, window_bounds = array<i64: 1, 3, 2, 32, 16>}, {transform_indices = @transform_4, window_bounds = array<i64: 1, 64, 64>}, {transform_indices = @transform_5, window_bounds = array<i64: 1, 2, 16, 32>}, {transform_indices = @transform_6, window_bounds = array<i64: 1, 1, 32>}, {transform_indices = @transform_7, window_bounds = array<i64: 1, 1, 32>}, {transform_indices = @transform_8, window_bounds = array<i64: 1, 1, 32>}, {transform_indices = @transform_9, window_bounds = array<i64: 1, 32, 128>}, {transform_indices = @transform_10, window_bounds = array<i64: 1, 1, 128>}, {transform_indices = @transform_11, window_bounds = array<i64: 1, 128, 32>}, {transform_indices = @transform_12, window_bounds = array<i64: 1, 1, 32>}, {transform_indices = @transform_13, window_bounds = array<i64: 1, 64, 32>}]} {
    %c0 = arith.constant 0 : index
    %c0_0 = arith.constant 0 : index
    %c0_1 = arith.constant 0 : index
    %0 = vector.load %arg2[%c0, %c0_0, %c0_1] : memref<1x64x32xf32, #tpu.memory_space<vmem>>, vector<1x64x32xf32>
    %1 = vector.shape_cast %0 : vector<1x64x32xf32> to vector<64x32xf32>
    %c0_2 = arith.constant 0 : index
    %c0_3 = arith.constant 0 : index
    %c0_4 = arith.constant 0 : index
    %2 = vector.load %arg6[%c0_2, %c0_3, %c0_4] : memref<1x64x64xf32, #tpu.memory_space<vmem>>, vector<1x64x64xf32>
    %3 = vector.shape_cast %2 : vector<1x64x64xf32> to vector<64x64xf32>
    %c0_5 = arith.constant 0 : index
    %c0_6 = arith.constant 0 : index
    %c0_7 = arith.constant 0 : index
    %c0_8 = arith.constant 0 : index
    %c0_9 = arith.constant 0 : index
    %4 = vector.load %arg5[%c0_5, %c0_6, %c0_7, %c0_8, %c0_9] : memref<1x3x2x32x16xf32, #tpu.memory_space<vmem>>, vector<1x3x2x32x16xf32>
    %5 = vector.shape_cast %4 : vector<1x3x2x32x16xf32> to vector<3x2x32x16xf32>
    %c0_10 = arith.constant 0 : index
    %c0_11 = arith.constant 0 : index
    %c0_12 = arith.constant 0 : index
    %c0_13 = arith.constant 0 : index
    %6 = vector.load %arg7[%c0_10, %c0_11, %c0_12, %c0_13] : memref<1x2x16x32xf32, #tpu.memory_space<vmem>>, vector<1x2x16x32xf32>
    %7 = vector.shape_cast %6 : vector<1x2x16x32xf32> to vector<2x16x32xf32>
    %c0_14 = arith.constant 0 : index
    %c0_15 = arith.constant 0 : index
    %c0_16 = arith.constant 0 : index
    %8 = vector.load %arg3[%c0_14, %c0_15, %c0_16] : memref<1x1x32xf32, #tpu.memory_space<vmem>>, vector<1x1x32xf32>
    %9 = vector.shape_cast %8 : vector<1x1x32xf32> to vector<1x32xf32>
    %c0_17 = arith.constant 0 : index
    %c0_18 = arith.constant 0 : index
    %c0_19 = arith.constant 0 : index
    %10 = vector.load %arg4[%c0_17, %c0_18, %c0_19] : memref<1x1x32xf32, #tpu.memory_space<vmem>>, vector<1x1x32xf32>
    %11 = vector.shape_cast %10 : vector<1x1x32xf32> to vector<1x32xf32>
    %cst = arith.constant dense<0.000000e+00> : vector<64xf32>
    %12 = vector.multi_reduction <add>, %1, %cst [1] : vector<64x32xf32> to vector<64xf32>
    %13 = vector.shape_cast %12 : vector<64xf32> to vector<64x1xf32>
    %cst_20 = arith.constant 3.200000e+01 : f32
    %14 = vector.broadcast %cst_20 : f32 to vector<64x1xf32>
    %15 = arith.divf %13, %14 : vector<64x1xf32>
    %16 = vector.broadcast %15 : vector<64x1xf32> to vector<64x32xf32>
    %17 = arith.subf %1, %16 : vector<64x32xf32>
    %18 = arith.mulf %17, %17 : vector<64x32xf32>
    %cst_21 = arith.constant dense<0.000000e+00> : vector<64xf32>
    %19 = vector.multi_reduction <add>, %18, %cst_21 [1] : vector<64x32xf32> to vector<64xf32>
    %20 = vector.shape_cast %19 : vector<64xf32> to vector<64x1xf32>
    %cst_22 = arith.constant 3.200000e+01 : f32
    %21 = vector.broadcast %cst_22 : f32 to vector<64x1xf32>
    %22 = arith.divf %20, %21 : vector<64x1xf32>
    %cst_23 = arith.constant 9.99999974E-6 : f32
    %23 = vector.broadcast %cst_23 : f32 to vector<64x1xf32>
    %24 = arith.addf %22, %23 : vector<64x1xf32>
    %25 = math.rsqrt %24 : vector<64x1xf32>
    %26 = vector.broadcast %25 : vector<64x1xf32> to vector<64x32xf32>
    %27 = arith.mulf %17, %26 : vector<64x32xf32>
    %28 = vector.broadcast %9 : vector<1x32xf32> to vector<64x32xf32>
    %29 = arith.mulf %27, %28 : vector<64x32xf32>
    %30 = vector.broadcast %11 : vector<1x32xf32> to vector<64x32xf32>
    %31 = arith.addf %29, %30 : vector<64x32xf32>
    %32 = arith.truncf %31 : vector<64x32xf32> to vector<64x32xbf16>
    %c0_24 = arith.constant 0 : index
    %c0_25 = arith.constant 0 : index
    %c0_26 = arith.constant 0 : index
    %33 = vector.load %arg8[%c0_24, %c0_25, %c0_26] : memref<1x1x32xf32, #tpu.memory_space<vmem>>, vector<1x1x32xf32>
    %34 = vector.shape_cast %33 : vector<1x1x32xf32> to vector<1x32xf32>
    %35 = vector.broadcast %34 : vector<1x32xf32> to vector<64x32xf32>
    %36 = arith.addf %1, %35 : vector<64x32xf32>
    %37 = vector.extract_strided_slice %5 {offsets = [0, 0, 0, 0], sizes = [1, 1, 32, 16], strides = [1, 1, 1, 1]} : vector<3x2x32x16xf32> to vector<1x1x32x16xf32>
    %38 = vector.shape_cast %37 : vector<1x1x32x16xf32> to vector<32x16xf32>
    %39 = arith.truncf %38 : vector<32x16xf32> to vector<32x16xbf16>
    %40 = vector.extract_strided_slice %5 {offsets = [1, 0, 0, 0], sizes = [1, 1, 32, 16], strides = [1, 1, 1, 1]} : vector<3x2x32x16xf32> to vector<1x1x32x16xf32>
    %41 = vector.shape_cast %40 : vector<1x1x32x16xf32> to vector<32x16xf32>
    %42 = arith.truncf %41 : vector<32x16xf32> to vector<32x16xbf16>
    %43 = vector.extract_strided_slice %5 {offsets = [2, 0, 0, 0], sizes = [1, 1, 32, 16], strides = [1, 1, 1, 1]} : vector<3x2x32x16xf32> to vector<1x1x32x16xf32>
    %44 = vector.shape_cast %43 : vector<1x1x32x16xf32> to vector<32x16xf32>
    %45 = arith.truncf %44 : vector<32x16xf32> to vector<32x16xbf16>
    %cst_27 = arith.constant dense<0.000000e+00> : vector<64x16xf32>
    %46 = tpu.matmul %32, %39, %cst_27 {dimension_numbers = #tpu.dot_dimension_numbers<[1], [0], [0], [1], [0, 0, 1, 1], [], []>} : vector<64x32xbf16>, vector<32x16xbf16>, vector<64x16xf32> -> vector<64x16xf32>
    %cst_28 = arith.constant 2.500000e-01 : f32
    %47 = vector.broadcast %cst_28 : f32 to vector<64x16xf32>
    %48 = arith.mulf %46, %47 : vector<64x16xf32>
    %49 = arith.truncf %48 : vector<64x16xf32> to vector<64x16xbf16>
    %cst_29 = arith.constant dense<0.000000e+00> : vector<64x16xf32>
    %50 = tpu.matmul %32, %42, %cst_29 {dimension_numbers = #tpu.dot_dimension_numbers<[1], [0], [0], [1], [0, 0, 1, 1], [], []>} : vector<64x32xbf16>, vector<32x16xbf16>, vector<64x16xf32> -> vector<64x16xf32>
    %51 = arith.truncf %50 : vector<64x16xf32> to vector<64x16xbf16>
    %cst_30 = arith.constant dense<0.000000e+00> : vector<64x16xf32>
    %52 = tpu.matmul %32, %45, %cst_30 {dimension_numbers = #tpu.dot_dimension_numbers<[1], [0], [0], [1], [0, 0, 1, 1], [], []>} : vector<64x32xbf16>, vector<32x16xbf16>, vector<64x16xf32> -> vector<64x16xf32>
    %53 = arith.truncf %52 : vector<64x16xf32> to vector<64x16xbf16>
    %cst_31 = arith.constant dense<0.000000e+00> : vector<64x64xf32>
    %54 = tpu.matmul %49, %51, %cst_31 {dimension_numbers = #tpu.dot_dimension_numbers<[1], [1], [0], [0], [0, 0, 1, 0], [], []>} : vector<64x16xbf16>, vector<64x16xbf16>, vector<64x64xf32> -> vector<64x64xf32>
    %55 = arith.addf %54, %3 : vector<64x64xf32>
    %cst_32 = arith.constant dense<0xFF800000> : vector<64xf32>
    %56 = vector.multi_reduction <maximumf>, %55, %cst_32 [1] : vector<64x64xf32> to vector<64xf32>
    %57 = vector.shape_cast %56 : vector<64xf32> to vector<64x1xf32>
    %58 = vector.broadcast %57 : vector<64x1xf32> to vector<64x64xf32>
    %59 = arith.subf %55, %58 : vector<64x64xf32>
    %60 = math.exp %59 : vector<64x64xf32>
    %cst_33 = arith.constant dense<0.000000e+00> : vector<64xf32>
    %61 = vector.multi_reduction <add>, %60, %cst_33 [1] : vector<64x64xf32> to vector<64xf32>
    %62 = vector.shape_cast %61 : vector<64xf32> to vector<64x1xf32>
    %63 = arith.truncf %60 : vector<64x64xf32> to vector<64x64xbf16>
    %cst_34 = arith.constant dense<0.000000e+00> : vector<64x16xf32>
    %64 = tpu.matmul %63, %53, %cst_34 {dimension_numbers = #tpu.dot_dimension_numbers<[1], [0], [0], [1], [0, 0, 1, 1], [], []>} : vector<64x64xbf16>, vector<64x16xbf16>, vector<64x16xf32> -> vector<64x16xf32>
    %cst_35 = arith.constant 1.000000e-30 : f32
    %65 = vector.broadcast %cst_35 : f32 to vector<64x1xf32>
    %66 = arith.maximumf %62, %65 : vector<64x1xf32>
    %67 = tpu.reciprocal %66 {approx = true} : vector<64x1xf32> -> vector<64x1xf32>
    %68 = vector.broadcast %67 : vector<64x1xf32> to vector<64x16xf32>
    %69 = arith.mulf %64, %68 : vector<64x16xf32>
    %70 = arith.truncf %69 : vector<64x16xf32> to vector<64x16xbf16>
    %71 = vector.extract_strided_slice %7 {offsets = [0, 0, 0], sizes = [1, 16, 32], strides = [1, 1, 1]} : vector<2x16x32xf32> to vector<1x16x32xf32>
    %72 = vector.shape_cast %71 : vector<1x16x32xf32> to vector<16x32xf32>
    %73 = arith.truncf %72 : vector<16x32xf32> to vector<16x32xbf16>
    %cst_36 = arith.constant dense<0.000000e+00> : vector<64x32xf32>
    %74 = tpu.matmul %70, %73, %cst_36 {dimension_numbers = #tpu.dot_dimension_numbers<[1], [0], [0], [1], [0, 0, 1, 1], [], []>} : vector<64x16xbf16>, vector<16x32xbf16>, vector<64x32xf32> -> vector<64x32xf32>
    %75 = arith.addf %36, %74 : vector<64x32xf32>
    %76 = vector.extract_strided_slice %5 {offsets = [0, 1, 0, 0], sizes = [1, 1, 32, 16], strides = [1, 1, 1, 1]} : vector<3x2x32x16xf32> to vector<1x1x32x16xf32>
    %77 = vector.shape_cast %76 : vector<1x1x32x16xf32> to vector<32x16xf32>
    %78 = arith.truncf %77 : vector<32x16xf32> to vector<32x16xbf16>
    %79 = vector.extract_strided_slice %5 {offsets = [1, 1, 0, 0], sizes = [1, 1, 32, 16], strides = [1, 1, 1, 1]} : vector<3x2x32x16xf32> to vector<1x1x32x16xf32>
    %80 = vector.shape_cast %79 : vector<1x1x32x16xf32> to vector<32x16xf32>
    %81 = arith.truncf %80 : vector<32x16xf32> to vector<32x16xbf16>
    %82 = vector.extract_strided_slice %5 {offsets = [2, 1, 0, 0], sizes = [1, 1, 32, 16], strides = [1, 1, 1, 1]} : vector<3x2x32x16xf32> to vector<1x1x32x16xf32>
    %83 = vector.shape_cast %82 : vector<1x1x32x16xf32> to vector<32x16xf32>
    %84 = arith.truncf %83 : vector<32x16xf32> to vector<32x16xbf16>
    %cst_37 = arith.constant dense<0.000000e+00> : vector<64x16xf32>
    %85 = tpu.matmul %32, %78, %cst_37 {dimension_numbers = #tpu.dot_dimension_numbers<[1], [0], [0], [1], [0, 0, 1, 1], [], []>} : vector<64x32xbf16>, vector<32x16xbf16>, vector<64x16xf32> -> vector<64x16xf32>
    %cst_38 = arith.constant 2.500000e-01 : f32
    %86 = vector.broadcast %cst_38 : f32 to vector<64x16xf32>
    %87 = arith.mulf %85, %86 : vector<64x16xf32>
    %88 = arith.truncf %87 : vector<64x16xf32> to vector<64x16xbf16>
    %cst_39 = arith.constant dense<0.000000e+00> : vector<64x16xf32>
    %89 = tpu.matmul %32, %81, %cst_39 {dimension_numbers = #tpu.dot_dimension_numbers<[1], [0], [0], [1], [0, 0, 1, 1], [], []>} : vector<64x32xbf16>, vector<32x16xbf16>, vector<64x16xf32> -> vector<64x16xf32>
    %90 = arith.truncf %89 : vector<64x16xf32> to vector<64x16xbf16>
    %cst_40 = arith.constant dense<0.000000e+00> : vector<64x16xf32>
    %91 = tpu.matmul %32, %84, %cst_40 {dimension_numbers = #tpu.dot_dimension_numbers<[1], [0], [0], [1], [0, 0, 1, 1], [], []>} : vector<64x32xbf16>, vector<32x16xbf16>, vector<64x16xf32> -> vector<64x16xf32>
    %92 = arith.truncf %91 : vector<64x16xf32> to vector<64x16xbf16>
    %cst_41 = arith.constant dense<0.000000e+00> : vector<64x64xf32>
    %93 = tpu.matmul %88, %90, %cst_41 {dimension_numbers = #tpu.dot_dimension_numbers<[1], [1], [0], [0], [0, 0, 1, 0], [], []>} : vector<64x16xbf16>, vector<64x16xbf16>, vector<64x64xf32> -> vector<64x64xf32>
    %94 = arith.addf %93, %3 : vector<64x64xf32>
    %cst_42 = arith.constant dense<0xFF800000> : vector<64xf32>
    %95 = vector.multi_reduction <maximumf>, %94, %cst_42 [1] : vector<64x64xf32> to vector<64xf32>
    %96 = vector.shape_cast %95 : vector<64xf32> to vector<64x1xf32>
    %97 = vector.broadcast %96 : vector<64x1xf32> to vector<64x64xf32>
    %98 = arith.subf %94, %97 : vector<64x64xf32>
    %99 = math.exp %98 : vector<64x64xf32>
    %cst_43 = arith.constant dense<0.000000e+00> : vector<64xf32>
    %100 = vector.multi_reduction <add>, %99, %cst_43 [1] : vector<64x64xf32> to vector<64xf32>
    %101 = vector.shape_cast %100 : vector<64xf32> to vector<64x1xf32>
    %102 = arith.truncf %99 : vector<64x64xf32> to vector<64x64xbf16>
    %cst_44 = arith.constant dense<0.000000e+00> : vector<64x16xf32>
    %103 = tpu.matmul %102, %92, %cst_44 {dimension_numbers = #tpu.dot_dimension_numbers<[1], [0], [0], [1], [0, 0, 1, 1], [], []>} : vector<64x64xbf16>, vector<64x16xbf16>, vector<64x16xf32> -> vector<64x16xf32>
    %cst_45 = arith.constant 1.000000e-30 : f32
    %104 = vector.broadcast %cst_45 : f32 to vector<64x1xf32>
    %105 = arith.maximumf %101, %104 : vector<64x1xf32>
    %106 = tpu.reciprocal %105 {approx = true} : vector<64x1xf32> -> vector<64x1xf32>
    %107 = vector.broadcast %106 : vector<64x1xf32> to vector<64x16xf32>
    %108 = arith.mulf %103, %107 : vector<64x16xf32>
    %109 = arith.truncf %108 : vector<64x16xf32> to vector<64x16xbf16>
    %110 = vector.extract_strided_slice %7 {offsets = [1, 0, 0], sizes = [1, 16, 32], strides = [1, 1, 1]} : vector<2x16x32xf32> to vector<1x16x32xf32>
    %111 = vector.shape_cast %110 : vector<1x16x32xf32> to vector<16x32xf32>
    %112 = arith.truncf %111 : vector<16x32xf32> to vector<16x32xbf16>
    %cst_46 = arith.constant dense<0.000000e+00> : vector<64x32xf32>
    %113 = tpu.matmul %109, %112, %cst_46 {dimension_numbers = #tpu.dot_dimension_numbers<[1], [0], [0], [1], [0, 0, 1, 1], [], []>} : vector<64x16xbf16>, vector<16x32xbf16>, vector<64x32xf32> -> vector<64x32xf32>
    %114 = arith.addf %75, %113 : vector<64x32xf32>
    %c0_47 = arith.constant 0 : index
    %c0_48 = arith.constant 0 : index
    %c0_49 = arith.constant 0 : index
    %115 = vector.load %arg9[%c0_47, %c0_48, %c0_49] : memref<1x1x32xf32, #tpu.memory_space<vmem>>, vector<1x1x32xf32>
    %116 = vector.shape_cast %115 : vector<1x1x32xf32> to vector<1x32xf32>
    %c0_50 = arith.constant 0 : index
    %c0_51 = arith.constant 0 : index
    %c0_52 = arith.constant 0 : index
    %117 = vector.load %arg10[%c0_50, %c0_51, %c0_52] : memref<1x1x32xf32, #tpu.memory_space<vmem>>, vector<1x1x32xf32>
    %118 = vector.shape_cast %117 : vector<1x1x32xf32> to vector<1x32xf32>
    %cst_53 = arith.constant dense<0.000000e+00> : vector<64xf32>
    %119 = vector.multi_reduction <add>, %114, %cst_53 [1] : vector<64x32xf32> to vector<64xf32>
    %120 = vector.shape_cast %119 : vector<64xf32> to vector<64x1xf32>
    %cst_54 = arith.constant 3.200000e+01 : f32
    %121 = vector.broadcast %cst_54 : f32 to vector<64x1xf32>
    %122 = arith.divf %120, %121 : vector<64x1xf32>
    %123 = vector.broadcast %122 : vector<64x1xf32> to vector<64x32xf32>
    %124 = arith.subf %114, %123 : vector<64x32xf32>
    %125 = arith.mulf %124, %124 : vector<64x32xf32>
    %cst_55 = arith.constant dense<0.000000e+00> : vector<64xf32>
    %126 = vector.multi_reduction <add>, %125, %cst_55 [1] : vector<64x32xf32> to vector<64xf32>
    %127 = vector.shape_cast %126 : vector<64xf32> to vector<64x1xf32>
    %cst_56 = arith.constant 3.200000e+01 : f32
    %128 = vector.broadcast %cst_56 : f32 to vector<64x1xf32>
    %129 = arith.divf %127, %128 : vector<64x1xf32>
    %cst_57 = arith.constant 9.99999974E-6 : f32
    %130 = vector.broadcast %cst_57 : f32 to vector<64x1xf32>
    %131 = arith.addf %129, %130 : vector<64x1xf32>
    %132 = math.rsqrt %131 : vector<64x1xf32>
    %133 = vector.broadcast %132 : vector<64x1xf32> to vector<64x32xf32>
    %134 = arith.mulf %124, %133 : vector<64x32xf32>
    %135 = vector.broadcast %116 : vector<1x32xf32> to vector<64x32xf32>
    %136 = arith.mulf %134, %135 : vector<64x32xf32>
    %137 = vector.broadcast %118 : vector<1x32xf32> to vector<64x32xf32>
    %138 = arith.addf %136, %137 : vector<64x32xf32>
    %139 = arith.truncf %138 : vector<64x32xf32> to vector<64x32xbf16>
    %c0_58 = arith.constant 0 : index
    %c0_59 = arith.constant 0 : index
    %c0_60 = arith.constant 0 : index
    %140 = vector.load %arg11[%c0_58, %c0_59, %c0_60] : memref<1x32x128xf32, #tpu.memory_space<vmem>>, vector<1x32x128xf32>
    %141 = vector.shape_cast %140 : vector<1x32x128xf32> to vector<32x128xf32>
    %142 = arith.truncf %141 : vector<32x128xf32> to vector<32x128xbf16>
    %cst_61 = arith.constant dense<0.000000e+00> : vector<64x128xf32>
    %143 = tpu.matmul %139, %142, %cst_61 {dimension_numbers = #tpu.dot_dimension_numbers<[1], [0], [0], [1], [0, 0, 1, 1], [], []>} : vector<64x32xbf16>, vector<32x128xbf16>, vector<64x128xf32> -> vector<64x128xf32>
    %c0_62 = arith.constant 0 : index
    %c0_63 = arith.constant 0 : index
    %c0_64 = arith.constant 0 : index
    %144 = vector.load %arg12[%c0_62, %c0_63, %c0_64] : memref<1x1x128xf32, #tpu.memory_space<vmem>>, vector<1x1x128xf32>
    %145 = vector.shape_cast %144 : vector<1x1x128xf32> to vector<1x128xf32>
    %146 = vector.broadcast %145 : vector<1x128xf32> to vector<64x128xf32>
    %147 = arith.addf %143, %146 : vector<64x128xf32>
    %cst_65 = arith.constant 5.000000e-01 : f32
    %148 = vector.broadcast %cst_65 : f32 to vector<64x128xf32>
    %149 = arith.mulf %148, %147 : vector<64x128xf32>
    %cst_66 = arith.constant 0.707106769 : f32
    %150 = vector.broadcast %cst_66 : f32 to vector<64x128xf32>
    %151 = arith.mulf %147, %150 : vector<64x128xf32>
    %cst_67 = arith.constant 0.000000e+00 : f32
    %152 = vector.broadcast %cst_67 : f32 to vector<64x128xf32>
    %153 = arith.cmpf oge, %151, %152 : vector<64x128xf32>
    %cst_68 = arith.constant 1.000000e+00 : f32
    %cst_69 = arith.constant -1.000000e+00 : f32
    %154 = vector.broadcast %cst_68 : f32 to vector<64x128xf32>
    %155 = vector.broadcast %cst_69 : f32 to vector<64x128xf32>
    %156 = arith.select %153, %154, %155 : vector<64x128xi1>, vector<64x128xf32>
    %157 = math.absf %151 : vector<64x128xf32>
    %cst_70 = arith.constant 0.327591091 : f32
    %158 = vector.broadcast %cst_70 : f32 to vector<64x128xf32>
    %159 = arith.mulf %158, %157 : vector<64x128xf32>
    %cst_71 = arith.constant 1.000000e+00 : f32
    %160 = vector.broadcast %cst_71 : f32 to vector<64x128xf32>
    %161 = arith.addf %160, %159 : vector<64x128xf32>
    %cst_72 = arith.constant 1.000000e+00 : f32
    %162 = vector.broadcast %cst_72 : f32 to vector<64x128xf32>
    %163 = arith.divf %162, %161 : vector<64x128xf32>
    %cst_73 = arith.constant 1.06140542 : f32
    %164 = vector.broadcast %cst_73 : f32 to vector<64x128xf32>
    %165 = arith.mulf %164, %163 : vector<64x128xf32>
    %cst_74 = arith.constant -1.45315206 : f32
    %166 = vector.broadcast %cst_74 : f32 to vector<64x128xf32>
    %167 = arith.addf %165, %166 : vector<64x128xf32>
    %168 = arith.mulf %167, %163 : vector<64x128xf32>
    %cst_75 = arith.constant 1.42141378 : f32
    %169 = vector.broadcast %cst_75 : f32 to vector<64x128xf32>
    %170 = arith.addf %168, %169 : vector<64x128xf32>
    %171 = arith.mulf %170, %163 : vector<64x128xf32>
    %cst_76 = arith.constant -0.284496725 : f32
    %172 = vector.broadcast %cst_76 : f32 to vector<64x128xf32>
    %173 = arith.addf %171, %172 : vector<64x128xf32>
    %174 = arith.mulf %173, %163 : vector<64x128xf32>
    %cst_77 = arith.constant 0.254829586 : f32
    %175 = vector.broadcast %cst_77 : f32 to vector<64x128xf32>
    %176 = arith.addf %174, %175 : vector<64x128xf32>
    %177 = arith.mulf %176, %163 : vector<64x128xf32>
    %cst_78 = arith.constant 0.000000e+00 : f32
    %178 = vector.broadcast %cst_78 : f32 to vector<64x128xf32>
    %179 = arith.subf %178, %157 : vector<64x128xf32>
    %180 = arith.mulf %179, %157 : vector<64x128xf32>
    %181 = math.exp %180 : vector<64x128xf32>
    %182 = arith.mulf %177, %181 : vector<64x128xf32>
    %cst_79 = arith.constant 1.000000e+00 : f32
    %183 = vector.broadcast %cst_79 : f32 to vector<64x128xf32>
    %184 = arith.subf %183, %182 : vector<64x128xf32>
    %185 = arith.mulf %156, %184 : vector<64x128xf32>
    %cst_80 = arith.constant 1.000000e+00 : f32
    %186 = vector.broadcast %cst_80 : f32 to vector<64x128xf32>
    %187 = arith.addf %186, %185 : vector<64x128xf32>
    %188 = arith.mulf %149, %187 : vector<64x128xf32>
    %189 = arith.truncf %188 : vector<64x128xf32> to vector<64x128xbf16>
    %c0_81 = arith.constant 0 : index
    %c0_82 = arith.constant 0 : index
    %c0_83 = arith.constant 0 : index
    %190 = vector.load %arg13[%c0_81, %c0_82, %c0_83] : memref<1x128x32xf32, #tpu.memory_space<vmem>>, vector<1x128x32xf32>
    %191 = vector.shape_cast %190 : vector<1x128x32xf32> to vector<128x32xf32>
    %192 = arith.truncf %191 : vector<128x32xf32> to vector<128x32xbf16>
    %cst_84 = arith.constant dense<0.000000e+00> : vector<64x32xf32>
    %193 = tpu.matmul %189, %192, %cst_84 {dimension_numbers = #tpu.dot_dimension_numbers<[1], [0], [0], [1], [0, 0, 1, 1], [], []>} : vector<64x128xbf16>, vector<128x32xbf16>, vector<64x32xf32> -> vector<64x32xf32>
    %c0_85 = arith.constant 0 : index
    %c0_86 = arith.constant 0 : index
    %c0_87 = arith.constant 0 : index
    %194 = vector.load %arg14[%c0_85, %c0_86, %c0_87] : memref<1x1x32xf32, #tpu.memory_space<vmem>>, vector<1x1x32xf32>
    %195 = vector.shape_cast %194 : vector<1x1x32xf32> to vector<1x32xf32>
    %196 = vector.broadcast %195 : vector<1x32xf32> to vector<64x32xf32>
    %197 = arith.addf %193, %196 : vector<64x32xf32>
    %198 = arith.addf %114, %197 : vector<64x32xf32>
    %c0_88 = arith.constant 0 : index
    %c0_89 = arith.constant 0 : index
    %c0_90 = arith.constant 0 : index
    %199 = vector.load %arg15[%c0_88, %c0_89, %c0_90] : memref<1x64x32xf32, #tpu.memory_space<vmem>>, vector<1x64x32xf32>
    %200 = vector.shape_cast %199 : vector<1x64x32xf32> to vector<64x32xf32>
    %201 = vector.shape_cast %198 : vector<64x32xf32> to vector<1x64x32xf32>
    tpu.vector_store %arg15[%c0_88, %c0_89, %c0_90], %201 {strides = array<i32>} : memref<1x64x32xf32, #tpu.memory_space<vmem>>, vector<1x64x32xf32>,
    return
  }
  func.func @transform_0(%arg0: i32, %arg1: i32) -> (i32, i32, i32) {
    %c2_i32 = arith.constant 2 : i32
    %0 = arith.muli %arg0, %c2_i32 : i32
    %1 = arith.addi %0, %arg1 : i32
    %c0_i32 = arith.constant 0 : i32
    %c0_i32_0 = arith.constant 0 : i32
    %c0_i32_1 = arith.constant 0 : i32
    return %1, %c0_i32, %c0_i32_0 : i32, i32, i32
  }
  func.func @transform_1(%arg0: i32, %arg1: i32) -> (i32, i32, i32) {
    %c0_i32 = arith.constant 0 : i32
    %c0_i32_0 = arith.constant 0 : i32
    %c0_i32_1 = arith.constant 0 : i32
    return %arg0, %c0_i32, %c0_i32_0 : i32, i32, i32
  }
  func.func @transform_2(%arg0: i32, %arg1: i32) -> (i32, i32, i32) {
    %c0_i32 = arith.constant 0 : i32
    %c0_i32_0 = arith.constant 0 : i32
    %c0_i32_1 = arith.constant 0 : i32
    return %arg0, %c0_i32, %c0_i32_0 : i32, i32, i32
  }
  func.func @transform_3(%arg0: i32, %arg1: i32) -> (i32, i32, i32, i32, i32) {
    %c0_i32 = arith.constant 0 : i32
    %c0_i32_0 = arith.constant 0 : i32
    %c0_i32_1 = arith.constant 0 : i32
    %c0_i32_2 = arith.constant 0 : i32
    %c0_i32_3 = arith.constant 0 : i32
    return %arg0, %c0_i32, %c0_i32_0, %c0_i32_1, %c0_i32_2 : i32, i32, i32, i32, i32
  }
  func.func @transform_4(%arg0: i32, %arg1: i32) -> (i32, i32, i32) {
    %c0_i32 = arith.constant 0 : i32
    %c0_i32_0 = arith.constant 0 : i32
    %c0_i32_1 = arith.constant 0 : i32
    return %arg0, %c0_i32, %c0_i32_0 : i32, i32, i32
  }
  func.func @transform_5(%arg0: i32, %arg1: i32) -> (i32, i32, i32, i32) {
    %c0_i32 = arith.constant 0 : i32
    %c0_i32_0 = arith.constant 0 : i32
    %c0_i32_1 = arith.constant 0 : i32
    %c0_i32_2 = arith.constant 0 : i32
    return %arg0, %c0_i32, %c0_i32_0, %c0_i32_1 : i32, i32, i32, i32
  }
  func.func @transform_6(%arg0: i32, %arg1: i32) -> (i32, i32, i32) {
    %c0_i32 = arith.constant 0 : i32
    %c0_i32_0 = arith.constant 0 : i32
    %c0_i32_1 = arith.constant 0 : i32
    return %arg0, %c0_i32, %c0_i32_0 : i32, i32, i32
  }
  func.func @transform_7(%arg0: i32, %arg1: i32) -> (i32, i32, i32) {
    %c0_i32 = arith.constant 0 : i32
    %c0_i32_0 = arith.constant 0 : i32
    %c0_i32_1 = arith.constant 0 : i32
    return %arg0, %c0_i32, %c0_i32_0 : i32, i32, i32
  }
  func.func @transform_8(%arg0: i32, %arg1: i32) -> (i32, i32, i32) {
    %c0_i32 = arith.constant 0 : i32
    %c0_i32_0 = arith.constant 0 : i32
    %c0_i32_1 = arith.constant 0 : i32
    return %arg0, %c0_i32, %c0_i32_0 : i32, i32, i32
  }
  func.func @transform_9(%arg0: i32, %arg1: i32) -> (i32, i32, i32) {
    %c0_i32 = arith.constant 0 : i32
    %c0_i32_0 = arith.constant 0 : i32
    %c0_i32_1 = arith.constant 0 : i32
    return %arg0, %c0_i32, %c0_i32_0 : i32, i32, i32
  }
  func.func @transform_10(%arg0: i32, %arg1: i32) -> (i32, i32, i32) {
    %c0_i32 = arith.constant 0 : i32
    %c0_i32_0 = arith.constant 0 : i32
    %c0_i32_1 = arith.constant 0 : i32
    return %arg0, %c0_i32, %c0_i32_0 : i32, i32, i32
  }
  func.func @transform_11(%arg0: i32, %arg1: i32) -> (i32, i32, i32) {
    %c0_i32 = arith.constant 0 : i32
    %c0_i32_0 = arith.constant 0 : i32
    %c0_i32_1 = arith.constant 0 : i32
    return %arg0, %c0_i32, %c0_i32_0 : i32, i32, i32
  }
  func.func @transform_12(%arg0: i32, %arg1: i32) -> (i32, i32, i32) {
    %c0_i32 = arith.constant 0 : i32
    %c0_i32_0 = arith.constant 0 : i32
    %c0_i32_1 = arith.constant 0 : i32
    return %arg0, %c0_i32, %c0_i32_0 : i32, i32, i32
  }
  func.func @transform_13(%arg0: i32, %arg1: i32) -> (i32, i32, i32) {
    %c2_i32 = arith.constant 2 : i32
    %0 = arith.muli %arg0, %c2_i32 : i32
    %1 = arith.addi %0, %arg1 : i32
    %c0_i32 = arith.constant 0 : i32
    %c0_i32_0 = arith.constant 0 : i32
    %c0_i32_1 = arith.constant 0 : i32
    return %1, %c0_i32, %c0_i32_0 : i32, i32, i32
  }
}

</mosaic_0001>

<bundles_post_ra>
// kernel: encoder_forward.6
= control target key start
LH: loop header
LB: loop body
LE: loop exit
PB: predicated region body
PF: predicated region fallthrough
CT: control target
= control target key end

     0   :  { %s555_s12 = smov 0   ;;  %s557_s13 = smov 0   ;;  %s641_s0 = inlined_call_operand.vmem [shape: f32[3,128,32], index: 0, kind: input, shape index: {}]   ;;  %s642_s1 = inlined_call_operand.vmem [shape: f32[3,32,32], index: 1, kind: input, shape index: {}]   ;;  %s643_s2 = inlined_call_operand.vmem [shape: f32[3,1,32], index: 2, kind: input, shape index: {}]   ;;  %s644_s3 = inlined_call_operand.vmem [shape: f32[3,128,32], index: 3, kind: output, shape index: {}]  }
   0x1   :  { %s559_s14 = smov 0   ;;  %s561_s15 = smov 0  }
   0x2   :  { %s563_s16 = smov 0  }
   0x3 LB: > { %s22_s17 = sadd.s32 1, %s525_s14  ;;  %s25_s18 = sadd.s32 1, %s529_s15  ;;  %s533_s16 = sphi %s563_s16, %s13_s16   ;;  %s529_s15 = sphi %s561_s15, %s648_s15   ;;  %s525_s14 = sphi %s559_s14, %s647_s14   ;;  %s521_s13 = sphi %s557_s13, %s646_s13   ;;  %s517_s12 = sphi %s555_s12, %s645_s12  }
   0x4   : > { %p23_p0 = scmp.ge.s32.totalorder %s22_s17, 2  ;;  %p432_p1 = scmp.ge.s32.totalorder %s533_s16, 1 }
   0x5   : > { %p176_p2 = scmp.lt.s32.totalorder %s533_s16, 7 }
   0x6   : > { %s650_s17 = smov (%p23_p0, %s22_s17), 0  ;;  %s652_s18 = smov (!%p23_p0, %s25_s18), %s529_s15 }
   0x7   : > { %p177_p3 = pnand %p432_p1, %p176_p2  ;;  %p27_p4 = scmp.ge.s32.totalorder %s652_s18, 3 }
   0x8   : > { %p217_p5 = scmp.lt.s32.totalorder (!%p177_p3), %s521_s13, 2  ;;  %s433_s19 = sshll.u32 (!%p177_p3), %s517_s12, 3 }
   0x9   : > { %s654_s18 = smov (%p27_p4, %s652_s18), 0  ;;  %180 = sbr.rel (%p177_p3) target bundleno = 172 (0xac), region = 32 }
   0xa   : > { %p219_p6 = scmp.lt.s32.totalorder (!%p177_p3), %s433_s19, 15 }
   0xe   : > { %s656_s13 = smov (!%p217_p5, %s521_s13), 2  ;;  %s658_s19 = smov (!%p219_p6, %s433_s19), 15  ;;  %vm267_vm0 = vcmask 261120  }
   0xf   : > { %s434_s20 = sshll.u32 %s656_s13, 4  ;;  %s447_s21 = sshll.u32 %s656_s13, 5 }
  0x10   : > { %s230_s24 = scalar_lea.vmem %s642_s1, %s447_s21  ;;  %s233_s27 = scalar_lea.vmem %s643_s2, %s656_s13 }
  0x11   : > { %v259_v0 = vld [vmem:[%s230_s24 + $0x10] sm:$0xff]  ;;  %v260_v1 = vld [vmem:[%s230_s24 + $0x18] sm:$0xff]  ;;  %s596_s28 = sadd.s32 %s434_s20, %s658_s19  ;;  %v257_v3 = vld [vmem:[%s230_s24] sm:$0xff] }
  0x12   : > { %v262_v2 = vpack.c.bf16 %v260_v1, %v259_v0  ;;  %v258_v4 = vld [vmem:[%s230_s24 + $0x8] sm:$0xff]  ;;  %s435_s29 = sshll.u32 %s596_s28, 3  ;;  %v494_v18 = vld [vmem:[%s233_s27] ss:$0 sm:$0xff] }
  0x13   : > { %s224_s5 = scalar_lea.vmem %s641_s0, %s435_s29  ;;  %v261_v5 = vpack.c.bf16 %v258_v4, %v257_v3  ;;  %s242_s10 = scalar_lea.vmem %s644_s3, %s435_s29 }
  0x14   : > { %286 = vmatpush.bf16.msra.mxu0 %v262_v2  ;;  %448 = vmatpush.bf16.msra.mxu1 %v262_v2  ;;  %v245_v6 = vld [vmem:[%s224_s5] sm:$0xff]  ;;  %v246_v7 = vld [vmem:[%s224_s5 + $0x8] sm:$0xff]  ;;  %v247_v8 = vld [vmem:[%s224_s5 + $0x10] sm:$0xff] }
  0x15   : > { %449 = vmatpush.bf16.msra.mxu2 %v262_v2  ;;  %450 = vmatpush.bf16.msra.mxu3 %v262_v2  ;;  %v248_v9 = vld [vmem:[%s224_s5 + $0x18] sm:$0xff]  ;;  %v249_v10 = vld [vmem:[%s224_s5 + $0x20] sm:$0xff]  ;;  %v250_v11 = vld [vmem:[%s224_s5 + $0x28] sm:$0xff]  ;;  %v253_v14 = vpack.c.bf16 %v246_v7, %v245_v6 }
  0x16   : > { %v251_v12 = vld [vmem:[%s224_s5 + $0x30] sm:$0xff]  ;;  %v252_v13 = vld [vmem:[%s224_s5 + $0x38] sm:$0xff]  ;;  %v254_v15 = vpack.c.bf16 %v248_v9, %v247_v8  ;;  %v255_v16 = vpack.c.bf16 %v250_v11, %v249_v10 }
  0x17   : > { %v256_v17 = vpack.c.bf16 %v252_v13, %v251_v12 }
  0x18   : > { %287 = vmatpush.bf16.msra.mxu0 %v261_v5  ;;  %451 = vmatpush.bf16.msra.mxu1 %v261_v5 }
  0x19   : > { %452 = vmatpush.bf16.msra.mxu2 %v261_v5  ;;  %453 = vmatpush.bf16.msra.mxu3 %v261_v5 }
  0x1b   : > { %441 = vmatmul.msk.bf16.vlgmr.msra.gmra.mxu0 %vm267_vm0, %v253_v14  ;;  %442 = vmatmul.msk.bf16.vlgmr.msra.gmra.mxu1 %vm267_vm0, %v254_v15 }
  0x1c   : > { %443 = vmatmul.msk.bf16.vlgmr.msra.gmra.mxu2 %vm267_vm0, %v255_v16  ;;  %444 = vmatmul.msk.bf16.vlgmr.msra.gmra.mxu3 %vm267_vm0, %v256_v17 }
  0x98   : > { %v289_v19 = vpop.f32.mrf.mxu0  ;;  %v294_v20 = vpop.f32.mrf.mxu1 }
  0x99   : > { %v290_v21 = vadd.f32 %v494_v18, %v289_v19  ;;  %v295_v22 = vadd.f32 %v494_v18, %v294_v20 }
  0x9b   : > { %309 = vst.msk [vmem:[%s242_s10] sm:$0xff] %vm267_vm0, %v290_v21 }
  0x9c   : > { %311 = vst.msk [vmem:[%s242_s10 + $0x10] sm:$0xff] %vm267_vm0, %v295_v22 }
  0x9f   : > { %v299_v23 = vpop.f32.mrf.mxu2  ;;  %v304_v24 = vpop.f32.mrf.mxu3 }
  0xa0   : > { %v300_v25 = vadd.f32 %v494_v18, %v299_v23  ;;  %v305_v26 = vadd.f32 %v494_v18, %v304_v24  ;;  %v291_v27 = vpop.f32.mrf.mxu0  ;;  %v296_v28 = vpop.f32.mrf.mxu1 }
  0xa1   : > { %v292_v29 = vadd.f32 %v494_v18, %v291_v27  ;;  %v297_v30 = vadd.f32 %v494_v18, %v296_v28 }
  0xa2   : > { %313 = vst.msk [vmem:[%s242_s10 + $0x20] sm:$0xff] %vm267_vm0, %v300_v25 }
  0xa3   : > { %315 = vst.msk [vmem:[%s242_s10 + $0x30] sm:$0xff] %vm267_vm0, %v305_v26 }
  0xa4   : > { %310 = vst.msk [vmem:[%s242_s10 + $0x8] sm:$0xff] %vm267_vm0, %v292_v29 }
  0xa5   : > { %312 = vst.msk [vmem:[%s242_s10 + $0x18] sm:$0xff] %vm267_vm0, %v297_v30 }
  0xa7   : > { %v301_v31 = vpop.f32.mrf.mxu2  ;;  %v306_v32 = vpop.f32.mrf.mxu3 }
  0xa8   : > { %v302_v33 = vadd.f32 %v494_v18, %v301_v31  ;;  %v307_v34 = vadd.f32 %v494_v18, %v306_v32 }
  0xaa   : > { %314 = vst.msk [vmem:[%s242_s10 + $0x28] sm:$0xff] %vm267_vm0, %v302_v33 }
  0xab   : > { %316 = vst.msk [vmem:[%s242_s10 + $0x38] sm:$0xff] %vm267_vm0, %v307_v34 }
  0xac PF: > { %s13_s16 = sadd.s32 1, %s533_s16   ;;  %s645_s12 = smov %s525_s14 }
  0xad   : > { %p10_p7 = scmp.ge.s32.totalorder %s13_s16, 8   ;;  %s646_s13 = smov %s529_s15 }
  0xae   : > { %s647_s14 = smov %s650_s17  ;;  %s648_s15 = smov %s654_s18 }
  0xaf   :  { %12 = sbr.rel (!%p10_p7) target bundleno = 3 (0x3), region = 68 }

// kernel: encoder_forward.7
= control target key start
LH: loop header
LB: loop body
LE: loop exit
PB: predicated region body
PF: predicated region fallthrough
CT: control target
= control target key end

     0   :  { %s2920_s25 = smov 0   ;;  %s2922_s26 = smov 0   ;;  %s3905_s0 = inlined_call_operand.vmem [shape: f32[6,64,32], index: 0, kind: input, shape index: {}]   ;;  %s3906_s1 = inlined_call_operand.vmem [shape: f32[3,1,32], index: 1, kind: input, shape index: {}]   ;;  %s3907_s2 = inlined_call_operand.vmem [shape: f32[3,1,32], index: 2, kind: input, shape index: {}]   ;;  %s3908_s3 = inlined_call_operand.vmem [shape: f32[3,3,2,32,16], index: 3, kind: input, shape index: {}]   ;;  %s3909_s4 = inlined_call_operand.vmem [shape: f32[3,64,64], index: 4, kind: input, shape index: {}]   ;;  %s3910_s5 = inlined_call_operand.vmem [shape: f32[3,2,16,32], index: 5, kind: input, shape index: {}]   ;;  %s3911_s6 = inlined_call_operand.vmem [shape: f32[3,1,32], index: 6, kind: input, shape index: {}]   ;;  %s3912_s7 = inlined_call_operand.vmem [shape: f32[3,1,32], index: 7, kind: input, shape index: {}]   ;;  %s3913_s8 = inlined_call_operand.vmem [shape: f32[3,1,32], index: 8, kind: input, shape index: {}]   ;;  %s3914_s9 = inlined_call_operand.vmem [shape: f32[3,32,128], index: 9, kind: input, shape index: {}]   ;;  %s3915_s10 = inlined_call_operand.vmem [shape: f32[3,1,128], index: 10, kind: input, shape index: {}]   ;;  %s3916_s11 = inlined_call_operand.vmem [shape: f32[3,128,32], index: 11, kind: input, shape index: {}]   ;;  %s3917_s12 = inlined_call_operand.vmem [shape: f32[3,1,32], index: 12, kind: input, shape index: {}]   ;;  %s3918_s13 = inlined_call_operand.vmem [shape: f32[6,64,32], index: 13, kind: output, shape index: {}]  }
   0x1   :  { %s2924_s27 = smov 0   ;;  %s2926_s28 = smov 0  }
   0x2   :  { %s2928_s29 = smov 0  }
   0x3 LB: > { %s32_s30 = sadd.s32 1, %s2838_s27  ;;  %s35_s14 = sadd.s32 1, %s2842_s28  ;;  %s2846_s29 = sphi %s2928_s29, %s23_s29   ;;  %s2842_s28 = sphi %s2926_s28, %s3932_s28   ;;  %s2838_s27 = sphi %s2924_s27, %s3931_s27   ;;  %s2834_s26 = sphi %s2922_s26, %s3930_s26   ;;  %s2830_s25 = sphi %s2920_s25, %s3929_s25  }
   0x4   : > { %p33_p0 = scmp.ge.s32.totalorder %s32_s30, 2  ;;  %p2536_p1 = scmp.ge.s32.totalorder %s2846_s29, 1 }
   0x5   : > { %p517_p2 = scmp.lt.s32.totalorder %s2846_s29, 7 }
   0x6   : > { %s3934_s30 = smov (%p33_p0, %s32_s30), 0  ;;  %s3936_s14 = smov (!%p33_p0, %s35_s14), %s2842_s28 }
   0x7   : > { %p518_p3 = pnand %p2536_p1, %p517_p2  ;;  %p37_p4 = scmp.ge.s32.totalorder %s3936_s14, 3 }
   0x8   : > { %s2537_s15 = sshll.u32 (!%p518_p3), %s2834_s26, 1  ;;  %p620_p6 = scmp.lt.s32.totalorder (!%p518_p3), %s2834_s26, 2 }
   0x9   : > { %s3938_s14 = smov (%p37_p4, %s3936_s14), 0  ;;  %521 = sbr.rel (%p518_p3) target bundleno = 2237 (0x8bd), region = 72 }
   0xa   : > { %s612_s16 = sadd.s32 (!%p518_p3), %s2830_s25, %s2537_s15 }
   0xb   : > { %p613_p5 = scmp.lt.s32.totalorder (!%p518_p3), %s612_s16, 5 }
   0xe   : > { %s3940_s16 = smov (!%p613_p5, %s612_s16), 5  ;;  %vm722_vm0 = vcmask 261120   ;;  %s3942_s26 = smov (!%p620_p6, %s2834_s26), 2  ;;  %v2848_v16 = vmov 32.0  }
   0xf   : > { %s2606_s17 = sshll.u32 %s3940_s16, 6  ;;  %s622_s23 = scalar_lea.vmem %s3906_s1, %s3942_s26  ;;  %2670 = vrcp.f32 %v2848_v16 }
  0x10   : > { %s2961_s20 = scalar_lea.vmem %s3905_s0, %s2606_s17  ;;  %s625_s15 = scalar_lea.vmem %s3907_s2, %s3942_s26 }
  0x11   : > { %v682_v0 = vld [vmem:[%s2961_s20 + $0x30] sm:$0xff]  ;;  %v680_v1 = vld [vmem:[%s2961_s20 + $0x20] sm:$0xff]  ;;  %v683_v6 = vld [vmem:[%s2961_s20 + $0x38] sm:$0xff]  ;;  %s2620_s18 = smul.u32 192, %s3942_s26  ;;  %s2608_s25 = sshll.u32 %s3942_s26, 5 }
  0x12   : > { %v678_v2 = vld [vmem:[%s2961_s20 + $0x10] sm:$0xff]  ;;  %v741_v3 = vsel %vm722_vm0, %v682_v0, 0.0  ;;  %v735_v4 = vsel %vm722_vm0, %v680_v1, 0.0  ;;  %v681_v7 = vld [vmem:[%s2961_s20 + $0x28] sm:$0xff]  ;;  %v679_v8 = vld [vmem:[%s2961_s20 + $0x18] sm:$0xff]  ;;  %v744_v9 = vsel %vm722_vm0, %v683_v6, 0.0  ;;  %s643_s21 = scalar_lea.vmem %s3911_s6, %s3942_s26  ;;  %s672_s19 = scalar_lea.vmem %s3918_s13, %s2606_s17 }
  0x13   : > { %v729_v5 = vsel %vm722_vm0, %v678_v2, 0.0  ;;  %742 = vadd.xlane.f32.xlu1 %v741_v3  ;;  %736 = vadd.xlane.f32.xlu0 %v735_v4  ;;  %v738_v10 = vsel %vm722_vm0, %v681_v7, 0.0  ;;  %v732_v11 = vsel %vm722_vm0, %v679_v8, 0.0  ;;  %v676_v12 = vld [vmem:[%s2961_s20] sm:$0xff]  ;;  %v677_v13 = vld [vmem:[%s2961_s20 + $0x8] sm:$0xff]  ;;  %s3045_s22 = scalar_lea.vmem %s3908_s3, %s2620_s18  ;;  %s654_s18 = scalar_lea.vmem %s3914_s9, %s2608_s25 }
  0x14   : > { %730 = vadd.xlane.f32.xlu2 %v729_v5  ;;  %v723_v14 = vsel %vm722_vm0, %v676_v12, 0.0  ;;  %v726_v15 = vsel %vm722_vm0, %v677_v13, 0.0  ;;  %v702_v3 = vld [vmem:[%s3045_s22 + $0x50] sm:$0xff] }
  0x15   : > { %v2671_v17 = vpop.eup %2670 }
  0x16   : > { %v748_v18 = vmul.f32 32.0, %v2671_v17  ;;  %vm752_vm1 = vweird.f32 %v2671_v17 }
  0x18   : > { %v749_v19 = vsub.f32 1.0, %v748_v18 }
  0x1a   : > { %v750_v20 = vmul.f32 %v2671_v17, %v749_v19 }
  0x1b   : > { %745 = vadd.xlane.f32.xlu1 %v744_v9  ;;  %739 = vadd.xlane.f32.xlu0 %v738_v10  ;;  %v692_v10 = vld [vmem:[%s3045_s22] sm:$0xff] }
  0x1c   : > { %733 = vadd.xlane.f32.xlu2 %v732_v11  ;;  %v751_v21 = vadd.f32 %v2671_v17, %v750_v20  ;;  %v693_v11 = vld [vmem:[%s3045_s22 + $0x8] sm:$0xff] }
  0x1e   : > { %v2991_v22 = vsel %vm752_vm1, %v2671_v17, %v751_v21 }
  0x23   : > { %724 = vadd.xlane.f32.xlu0 %v723_v14  ;;  %727 = vadd.xlane.f32.xlu1 %v726_v15  ;;  %v701_v14 = vld [vmem:[%s3045_s22 + $0x48] sm:$0xff] }
  0x86   : > { %v743_v23 = vpop.xlane.xlu1 %742  ;;  %v737_v24 = vpop.xlane.xlu0 %736 }
  0x87   : > { %v760_v25 = vmul.f32 %v2991_v22, %v743_v23  ;;  %v758_v26 = vmul.f32 %v2991_v22, %v737_v24  ;;  %v731_v27 = vpop.xlane.xlu2 %730 }
  0x88   : > { %v756_v36 = vmul.f32 %v2991_v22, %v731_v27 }
  0x89   : > { %v2995_v28 = vsub.f32 %v682_v0, %v760_v25  ;;  %v2997_v29 = vsub.f32 %v680_v1, %v758_v26  ;;  %v694_v1 = vld [vmem:[%s3045_s22 + $0x10] sm:$0xff] }
  0x8a   : > { %v3015_v44 = vsub.f32 %v678_v2, %v756_v36  ;;  %v695_v2 = vld [vmem:[%s3045_s22 + $0x18] sm:$0xff] }
  0x8b   : > { %v774_v30 = vmul.f32 %v2997_v29, %v2997_v29  ;;  %v776_v31 = vmul.f32 %v2995_v28, %v2995_v28  ;;  %v945_v5 = vpack.c.bf16 %v695_v2, %v694_v1 }
  0x8c   : > { %v772_v55 = vmul.f32 %v3015_v44, %v3015_v44 }
  0x8d   : > { %v790_v32 = vsel %vm722_vm0, %v774_v30, 0.0  ;;  %v796_v33 = vsel %vm722_vm0, %v776_v31, 0.0  ;;  %2613 = vmatpush.bf16.msra.mxu2 %v945_v5  ;;  %2612 = vmatpush.bf16.msra.mxu1 %v945_v5 }
  0x8e   : > { %v746_v34 = vpop.xlane.xlu1 %745  ;;  %v740_v35 = vpop.xlane.xlu0 %739  ;;  %791 = vadd.xlane.f32.xlu2 %v790_v32  ;;  %797 = vadd.xlane.f32.xlu1 %v796_v33  ;;  %v784_v58 = vsel %vm722_vm0, %v772_v55, 0.0 }
  0x8f   : > { %v761_v37 = vmul.f32 %v2991_v22, %v746_v34  ;;  %v759_v38 = vmul.f32 %v2991_v22, %v740_v35  ;;  %v734_v39 = vpop.xlane.xlu2 %733  ;;  %968 = vmatpush.bf16.msra.mxu0 %v945_v5 }
  0x90   : > { %v757_v40 = vmul.f32 %v2991_v22, %v734_v39 }
  0x91   : > { %v3009_v41 = vsub.f32 %v683_v6, %v761_v37  ;;  %v3011_v42 = vsub.f32 %v681_v7, %v759_v38  ;;  %v703_v6 = vld [vmem:[%s3045_s22 + $0x58] sm:$0xff] }
  0x92   : > { %v3013_v43 = vsub.f32 %v679_v8, %v757_v40  ;;  %v947_v7 = vpack.c.bf16 %v703_v6, %v702_v3  ;;  %v3110_v6 = vld [vmem:[%s622_s23] ss:$0 sm:$0xff]  ;;  %s657_s23 = scalar_lea.vmem %s3915_s10, %s3942_s26 }
  0x93   : > { %v777_v45 = vmul.f32 %v3009_v41, %v3009_v41  ;;  %v775_v46 = vmul.f32 %v3011_v42, %v3011_v42 }
  0x94   : > { %v773_v47 = vmul.f32 %v3013_v43, %v3013_v43  ;;  %2617 = vmatpush.bf16.msra.mxu3 %v947_v7 }
  0x95   : > { %v799_v48 = vsel %vm722_vm0, %v777_v45, 0.0  ;;  %v793_v49 = vsel %vm722_vm0, %v775_v46, 0.0 }
  0x96   : > { %800 = vadd.xlane.f32.xlu2 %v799_v48  ;;  %v787_v50 = vsel %vm722_vm0, %v773_v47, 0.0  ;;  %794 = vadd.xlane.f32.xlu0 %v793_v49  ;;  %v725_v51 = vpop.xlane.xlu0 %724  ;;  %v728_v52 = vpop.xlane.xlu1 %727 }
  0x97   : > { %788 = vadd.xlane.f32.xlu1 %v787_v50  ;;  %v754_v53 = vmul.f32 %v2991_v22, %v725_v51  ;;  %v755_v54 = vmul.f32 %v2991_v22, %v728_v52 }
  0x99   : > { %v3030_v56 = vsub.f32 %v676_v12, %v754_v53  ;;  %v3032_v57 = vsub.f32 %v677_v13, %v755_v54  ;;  %v700_v12 = vld [vmem:[%s3045_s22 + $0x40] sm:$0xff]  ;;  %v944_v13 = vpack.c.bf16 %v693_v11, %v692_v10 }
  0x9a   : > { %v946_v15 = vpack.c.bf16 %v701_v14, %v700_v12  ;;  %v696_v14 = vld [vmem:[%s3045_s22 + $0x20] sm:$0xff] }
  0x9b   : > { %v770_v59 = vmul.f32 %v3030_v56, %v3030_v56  ;;  %v771_v61 = vmul.f32 %v3032_v57, %v3032_v57  ;;  %2615 = vmatpush.bf16.msra.mxu2 %v944_v13  ;;  %2614 = vmatpush.bf16.msra.mxu1 %v944_v13 }
  0x9c   : > { %2619 = vmatpush.bf16.msra.mxu3 %v946_v15  ;;  %969 = vmatpush.bf16.msra.mxu0 %v944_v13 }
  0x9d   : > { %v778_v60 = vsel %vm722_vm0, %v770_v59, 0.0  ;;  %v781_v62 = vsel %vm722_vm0, %v771_v61, 0.0 }
  0x9e   : > { %785 = vadd.xlane.f32.xlu0 %v784_v58  ;;  %779 = vadd.xlane.f32.xlu2 %v778_v60 }
  0x9f   : > { %2616 = vmatpush.bf16.msrb.mxu1 %v947_v7 }
  0xa0   : > { %1009 = vmatpush.bf16.msrb.mxu0 %v947_v7 }
  0xa3   : > { %2618 = vmatpush.bf16.msrb.mxu1 %v946_v15 }
  0xa4   : > { %1010 = vmatpush.bf16.msrb.mxu0 %v946_v15 }
  0xa6   : > { %782 = vadd.xlane.f32.xlu0 %v781_v62 }
 0x101   : > { %v792_v63 = vpop.xlane.xlu2 %791  ;;  %v798_v0 = vpop.xlane.xlu1 %797 }
 0x102   : > { %v806_v4 = vmul.f32 %v792_v63, %v2991_v22  ;;  %v808_v9 = vmul.f32 %v798_v0, %v2991_v22 }
 0x104   : > { %v3052_v8 = vadd.f32 1e-05, %v806_v4  ;;  %v3060_v16 = vadd.f32 1e-05, %v808_v9 }
 0x106   : > { %2672 = vrsqrt.f32 %v3052_v8  ;;  %vm864_vm3 = vweird.f32 %v3052_v8  ;;  %vm884_vm5 = vweird.f32 %v3060_v16 }
 0x107   : > { %2674 = vrsqrt.f32 %v3060_v16 }
 0x109   : > { %v801_v17 = vpop.xlane.xlu2 %800  ;;  %v795_v18 = vpop.xlane.xlu0 %794 }
 0x10a   : > { %v809_v19 = vmul.f32 %v801_v17, %v2991_v22  ;;  %v789_v20 = vpop.xlane.xlu1 %788  ;;  %v807_v21 = vmul.f32 %v795_v18, %v2991_v22  ;;  %v710_v18 = vld [vmem:[%s3045_s22 + $0x90] sm:$0xff] }
 0x10b   : > { %v805_v23 = vmul.f32 %v789_v20, %v2991_v22  ;;  %v3139_v20 = vld [vmem:[%s625_s15] ss:$0 sm:$0xff]  ;;  %s2607_s15 = sshll.u32 %s3942_s26, 6 }
 0x10c   : > { %v2673_v24 = vpop.eup %2672  ;;  %v3065_v25 = vadd.f32 1e-05, %v809_v19  ;;  %v815_v26 = vadd.f32 1e-05, %v807_v21  ;;  %v711_v19 = vld [vmem:[%s3045_s22 + $0x98] sm:$0xff]  ;;  %s3286_s24 = scalar_lea.vmem %s3909_s4, %s2607_s15  ;;  %s3352_s15 = scalar_lea.vmem %s3910_s5, %s2608_s25 }
 0x10d   : > { %v859_v27 = vmul.f32 %v2673_v24, %v3052_v8  ;;  %v3069_v30 = vadd.f32 1e-05, %v805_v23  ;;  %v3075_v37 = vpop.eup %2674  ;;  %vm865_vm2 = vweird.f32 %v2673_v24 }
 0x10e   : > { %2676 = vrsqrt.f32 %v3065_v25  ;;  %v879_v51 = vmul.f32 %v3075_v37, %v3060_v16  ;;  %vm866_vm4 = vmor %vm864_vm3, %vm865_vm2  ;;  %vm874_vm9 = vweird.f32 %v815_v26  ;;  %vm885_vm10 = vweird.f32 %v3075_v37 }
 0x10f   : > { %v860_v31 = vmul.f32 %v2673_v24, %v859_v27  ;;  %2678 = vrsqrt.f32 %v3069_v30  ;;  %vm854_vm7 = vweird.f32 %v3069_v30  ;;  %vm894_vm11 = vweird.f32 %v3065_v25 }
 0x110   : > { %2680 = vrsqrt.f32 %v815_v26  ;;  %v880_v62 = vmul.f32 %v3075_v37, %v879_v51 }
 0x111   : > { %v861_v32 = vmul.f32 0.5, %v860_v31  ;;  %v780_v33 = vpop.xlane.xlu2 %779  ;;  %v786_v34 = vpop.xlane.xlu0 %785  ;;  %v708_v31 = vld [vmem:[%s3045_s22 + $0x80] sm:$0xff] }
 0x112   : > { %v802_v35 = vmul.f32 %v780_v33, %v2991_v22  ;;  %v804_v36 = vmul.f32 %v786_v34, %v2991_v22  ;;  %v881_v9 = vmul.f32 0.5, %v880_v62 }
 0x113   : > { %v862_v38 = vsub.f32 1.5, %v861_v32  ;;  %v709_v32 = vld [vmem:[%s3045_s22 + $0x88] sm:$0xff] }
 0x114   : > { %v3077_v39 = vpop.eup %2676  ;;  %v3079_v40 = vadd.f32 1e-05, %v802_v35  ;;  %v3085_v47 = vadd.f32 1e-05, %v804_v36  ;;  %v882_v27 = vsub.f32 1.5, %v881_v9 }
 0x115   : > { %v3081_v45 = vpop.eup %2678  ;;  %v889_v46 = vmul.f32 %v3077_v39, %v3065_v25  ;;  %v863_v50 = vmul.f32 %v2673_v24, %v862_v38  ;;  %vm895_vm13 = vweird.f32 %v3077_v39 }
 0x116   : > { %v2681_v48 = vpop.eup %2680  ;;  %v849_v49 = vmul.f32 %v3081_v45, %v3069_v30  ;;  %2682 = vrsqrt.f32 %v3079_v40  ;;  %vm855_vm8 = vweird.f32 %v3081_v45  ;;  %vm824_vm15 = vweird.f32 %v3079_v40  ;;  %vm3157_vm2 = vmor %vm894_vm11, %vm895_vm13 }
 0x117   : > { %v869_v52 = vmul.f32 %v2681_v48, %v815_v26  ;;  %v890_v54 = vmul.f32 %v3077_v39, %v889_v46  ;;  %2684 = vrsqrt.f32 %v3085_v47  ;;  %v867_v61 = vsel %vm866_vm4, %v2673_v24, %v863_v50  ;;  %vm3128_vm14 = vmor %vm854_vm7, %vm855_vm8 }
 0x118   : > { %v850_v53 = vmul.f32 %v3081_v45, %v849_v49  ;;  %vm875_vm6 = vweird.f32 %v2681_v48  ;;  %v902_v7 = vmul.f32 %v867_v61, %v2997_v29  ;;  %v949_v26 = vpack.c.bf16 %v711_v19, %v710_v18  ;;  %vm3181_vm7 = vmor %vm884_vm5, %vm885_vm10 }
 0x119   : > { %v870_v55 = vmul.f32 %v2681_v48, %v869_v52  ;;  %v783_v58 = vpop.xlane.xlu0 %782  ;;  %v891_v3 = vmul.f32 0.5, %v890_v54  ;;  %vm876_vm12 = vmor %vm874_vm9, %vm875_vm6  ;;  %vm844_vm3 = vweird.f32 %v3085_v47  ;;  %v883_v52 = vmul.f32 %v3075_v37, %v882_v27 }
 0x11a   : > { %v851_v59 = vmul.f32 0.5, %v850_v53  ;;  %v803_v60 = vmul.f32 %v783_v58, %v2991_v22  ;;  %v913_v21 = vmul.f32 %v3110_v6, %v902_v7  ;;  %1042 = vmatpush.bf16.msrb.mxu2 %v949_v26  ;;  %vm1069_vm11 = vcmask 130048  }
 0x11b   : > { %v871_v63 = vmul.f32 0.5, %v870_v55  ;;  %v892_v13 = vsub.f32 1.5, %v891_v3 }
 0x11c   : > { %v3098_v0 = vpop.eup %2682  ;;  %v852_v1 = vsub.f32 1.5, %v851_v59  ;;  %v3100_v2 = vadd.f32 1e-05, %v803_v60  ;;  %v924_v49 = vadd.f32 %v3139_v20, %v913_v21 }
 0x11d   : > { %v872_v4 = vsub.f32 1.5, %v871_v63  ;;  %v819_v5 = vmul.f32 %v3098_v0, %v3079_v40  ;;  %v3116_v8 = vpop.eup %2684  ;;  %vm825_vm1 = vweird.f32 %v3098_v0  ;;  %v893_v38 = vmul.f32 %v3077_v39, %v892_v13  ;;  %v699_v13 = vld [vmem:[%s3045_s22 + $0x38] sm:$0xff] }
 0x11e   : > { %2686 = vrsqrt.f32 %v3100_v2  ;;  %v853_v29 = vmul.f32 %v3081_v45, %v852_v1  ;;  %v839_v12 = vmul.f32 %v3116_v8, %v3085_v47  ;;  %vm3170_vm4 = vmor %vm824_vm15, %vm825_vm1  ;;  %vm845_vm6 = vweird.f32 %v3116_v8 }
 0x11f   : > { %v873_v10 = vmul.f32 %v2681_v48, %v872_v4  ;;  %v820_v11 = vmul.f32 %v3098_v0, %v819_v5  ;;  %vm834_vm8 = vweird.f32 %v3100_v2  ;;  %vm846_vm5 = vmor %vm844_vm3, %vm845_vm6 }
 0x120   : > { %v840_v24 = vmul.f32 %v3116_v8, %v839_v12  ;;  %v857_v34 = vsel %vm3128_vm14, %v3081_v45, %v853_v29 }
 0x121   : > { %v877_v15 = vsel %vm876_vm12, %v2681_v48, %v873_v10  ;;  %v821_v17 = vmul.f32 0.5, %v820_v11  ;;  %v901_v53 = vmul.f32 %v857_v34, %v3013_v43  ;;  %v897_v43 = vsel %vm3157_vm2, %v3077_v39, %v893_v38 }
 0x122   : > { %v903_v23 = vmul.f32 %v877_v15, %v3011_v42  ;;  %v841_v36 = vmul.f32 0.5, %v840_v24  ;;  %v948_v42 = vpack.c.bf16 %v709_v32, %v708_v31  ;;  %v887_v39 = vsel %vm3181_vm7, %v3075_v37, %v883_v52 }
 0x123   : > { %v822_v30 = vsub.f32 1.5, %v821_v17  ;;  %v912_v61 = vmul.f32 %v3110_v6, %v901_v53  ;;  %v905_v63 = vmul.f32 %v897_v43, %v3009_v41  ;;  %v904_v4 = vmul.f32 %v887_v39, %v2995_v28  ;;  %v697_v17 = vld [vmem:[%s3045_s22 + $0x28] sm:$0xff] }
 0x124   : > { %v2687_v33 = vpop.eup %2686  ;;  %v914_v35 = vmul.f32 %v3110_v6, %v903_v23  ;;  %v842_v51 = vsub.f32 1.5, %v841_v36  ;;  %1043 = vmatpush.bf16.msrb.mxu2 %v948_v42  ;;  %v1319_v18 = vpack.c.bf16 %v697_v17, %v696_v14  ;;  %vm1123_vm12 = vcmask 523264  }
 0x125   : > { %v823_v48 = vmul.f32 %v3098_v0, %v822_v30  ;;  %v829_v45 = vmul.f32 %v2687_v33, %v3100_v2  ;;  %vm835_vm9 = vweird.f32 %v2687_v33  ;;  %v923_v5 = vadd.f32 %v3139_v20, %v912_v61 }
 0x126   : > { %v925_v50 = vadd.f32 %v3139_v20, %v914_v35  ;;  %v843_v58 = vmul.f32 %v3116_v8, %v842_v51  ;;  %vm836_vm10 = vmor %vm834_vm8, %vm835_vm9  ;;  %v915_v2 = vmul.f32 %v3110_v6, %v904_v4 }
 0x127   : > { %v830_v54 = vmul.f32 %v2687_v33, %v829_v45  ;;  %v827_v59 = vsel %vm3170_vm4, %v3098_v0, %v823_v48 }
 0x128   : > { %v3185_v40 = vpack.c.bf16 %v925_v50, %v924_v49  ;;  %v847_v60 = vsel %vm846_vm5, %v3116_v8, %v843_v58  ;;  %v898_v0 = vmul.f32 %v827_v59, %v3030_v56 }
 0x129   : > { %v831_v16 = vmul.f32 0.5, %v830_v54  ;;  %v900_v62 = vmul.f32 %v847_v60, %v3015_v44  ;;  %v916_v44 = vmul.f32 %v3110_v6, %v905_v63 }
 0x12a   : > { %2554 = vmatmul.msk.bf16.vlgmr.msra.gmra.mxu2 %vm722_vm0, %v3185_v40  ;;  %2558 = vmatmul.msk.bf16.vlgmr.msra.gmra.mxu3 %vm722_vm0, %v3185_v40  ;;  %v909_v8 = vmul.f32 %v3110_v6, %v898_v0  ;;  %v706_v0 = vld [vmem:[%s3045_s22 + $0x70] sm:$0xff] }
 0x12b   : > { %v832_v47 = vsub.f32 1.5, %v831_v16  ;;  %v911_v1 = vmul.f32 %v3110_v6, %v900_v62  ;;  %v927_v28 = vadd.f32 %v3139_v20, %v916_v44 }
 0x12c   : > { %v920_v10 = vadd.f32 %v3139_v20, %v909_v8 }
 0x12d   : > { %v833_v3 = vmul.f32 %v2687_v33, %v832_v47  ;;  %v922_v37 = vadd.f32 %v3139_v20, %v911_v1  ;;  %v707_v1 = vld [vmem:[%s3045_s22 + $0x78] sm:$0xff] }
 0x12f   : > { %v837_v7 = vsel %vm836_vm10, %v2687_v33, %v833_v3  ;;  %v3218_v56 = vpack.c.bf16 %v923_v5, %v922_v37  ;;  %v1322_v3 = vpack.c.bf16 %v707_v1, %v706_v0  ;;  %v704_v5 = vld [vmem:[%s3045_s22 + $0x60] sm:$0xff]  ;;  %v705_v37 = vld [vmem:[%s3045_s22 + $0x68] sm:$0xff] }
 0x130   : > { %v899_v41 = vmul.f32 %v837_v7, %v3032_v57  ;;  %v926_v57 = vadd.f32 %v3139_v20, %v915_v2  ;;  %v1321_v44 = vpack.c.bf16 %v705_v37, %v704_v5 }
 0x131   : > { %2553 = vmatmul.msk.bf16.vlgmr.msra.gmra.mxu1 %vm722_vm0, %v3218_v56 }
 0x132   : > { %v910_v9 = vmul.f32 %v3110_v6, %v899_v41  ;;  %v3230_v12 = vpack.c.bf16 %v927_v28, %v926_v57  ;;  %v698_v6 = vld [vmem:[%s3045_s22 + $0x30] sm:$0xff] }
 0x133   : > { %v1320_v15 = vpack.c.bf16 %v699_v13, %v698_v6  ;;  %v3289_v13 = vld [vmem:[%s3286_s24] sm:$0xff] }
 0x134   : > { %v921_v11 = vadd.f32 %v3139_v20, %v910_v9 }
 0x135   : > { %1331 = vmatpush.bf16.msra.mxu2 %v1320_v15 }
 0x136   : > { %v3228_v29 = vpack.c.bf16 %v921_v11, %v920_v10 }
 0x138   : > { %2552 = vmatmul.msk.bf16.vlgmr.msra.gmra.mxu0 %vm722_vm0, %v3228_v29 }
 0x139   : > { %1332 = vmatpush.bf16.msra.mxu2 %v1319_v18  ;;  %v3294_v18 = vld [vmem:[%s3286_s24 + $0x8] sm:$0xff] }
 0x13a   : > { %2555 = vmatmul.msk.bf16.gmra.mxu2 %vm722_vm0, %v3230_v12  ;;  %2559 = vmatmul.msk.bf16.gmra.mxu3 %vm722_vm0, %v3230_v12 }
 0x141   : > { %2557 = vmatmul.msk.bf16.vlgmr.msrb.gmra.mxu1 %vm722_vm0, %v3218_v56 }
 0x148   : > { %2556 = vmatmul.msk.bf16.vlgmr.msrb.gmra.mxu0 %vm722_vm0, %v3228_v29 }
 0x14a   : > { %2560 = vmatmul.msk.bf16.vlgmr.msrb.gmra.mxu2 %vm722_vm0, %v3228_v29 }
 0x15a   : > { %2561 = vmatmul.msk.bf16.gmra.mxu2 %vm722_vm0, %v3218_v56 }
 0x16a   : > { %2562 = vmatmul.msk.bf16.gmra.mxu2 %vm722_vm0, %v3185_v40 }
 0x17a   : > { %2563 = vmatmul.msk.bf16.gmra.mxu2 %vm722_vm0, %v3230_v12 }
 0x18a   : > { %2576 = vmatmul.msk.bf16.vlgmr.msra.gmra.mxu2 %vm722_vm0, %v3228_v29 }
 0x19a   : > { %2577 = vmatmul.msk.bf16.gmra.mxu2 %vm722_vm0, %v3218_v56 }
 0x1aa   : > { %2578 = vmatmul.msk.bf16.gmra.mxu2 %vm722_vm0, %v3185_v40 }
 0x1ad   : > { %v981_v19 = vpop.f32.mrf.mxu2  ;;  %v1022_v20 = vpop.f32.mrf.mxu3 }
 0x1ae   : > { %v976_v21 = vpop.f32.mrf.mxu1  ;;  %v995_v7 = vmul.f32 0.25, %v981_v19 }
 0x1af   : > { %v993_v61 = vmul.f32 0.25, %v976_v21 }
 0x1b5   : > { %v983_v23 = vpop.f32.mrf.mxu2  ;;  %v1024_v24 = vpop.f32.mrf.mxu3 }
 0x1b6   : > { %v971_v26 = vpop.f32.mrf.mxu0  ;;  %v978_v27 = vpop.f32.mrf.mxu1  ;;  %v1034_v38 = vpack.c.bf16 %v1024_v24, %v1022_v20  ;;  %v996_v4 = vmul.f32 0.25, %v983_v23  ;;  %v3299_v23 = vld [vmem:[%s3286_s24 + $0x10] sm:$0xff] }
 0x1b7   : > { %v991_v43 = vmul.f32 0.25, %v971_v26  ;;  %v994_v39 = vmul.f32 0.25, %v978_v27 }
 0x1b8   : > { %v1089_v45 = vsel %vm1069_vm11, %v1034_v38, 0  ;;  %v1001_v41 = vpack.c.bf16 %v996_v4, %v995_v7  ;;  %v3323_v38 = vld [vmem:[%s3286_s24 + $0x28] sm:$0xff] }
 0x1b9   : > { %v1000_v47 = vpack.c.bf16 %v994_v39, %v993_v61  ;;  %v716_v39 = vld [vmem:[%s3352_s15] sm:$0xff]  ;;  %v717_v61 = vld [vmem:[%s3352_s15 + $0x8] sm:$0xff] }
 0x1ba   : > { %2579 = vmatmul.msk.bf16.gmra.mxu2 %vm722_vm0, %v3230_v12 }
 0x1bd   : > { %v986_v30 = vpop.f32.mrf.mxu2  ;;  %v1027_v31 = vpop.f32.mrf.mxu3 }
 0x1be   : > { %v973_v32 = vpop.f32.mrf.mxu0  ;;  %v1017_v36 = vpop.f32.mrf.mxu1  ;;  %v997_v57 = vmul.f32 0.25, %v986_v30  ;;  %v3307_v30 = vld [vmem:[%s3286_s24 + $0x18] sm:$0xff] }
 0x1bf   : > { %v992_v58 = vmul.f32 0.25, %v973_v32 }
 0x1c1   : > { %v999_v16 = vpack.c.bf16 %v992_v58, %v991_v43 }
 0x1c5   : > { %v988_v33 = vpop.f32.mrf.mxu2  ;;  %v1029_v34 = vpop.f32.mrf.mxu3 }
 0x1c6   : > { %v1035_v35 = vpack.c.bf16 %v1029_v34, %v1027_v31  ;;  %v1012_v48 = vpop.f32.mrf.mxu0  ;;  %v1019_v49 = vpop.f32.mrf.mxu1  ;;  %v998_v10 = vmul.f32 0.25, %v988_v33  ;;  %v3315_v34 = vld [vmem:[%s3286_s24 + $0x20] sm:$0xff] }
 0x1c7   : > { %v1033_v50 = vpack.c.bf16 %v1019_v49, %v1017_v36  ;;  %v3331_v49 = vld [vmem:[%s3286_s24 + $0x30] sm:$0xff] }
 0x1c8   : > { %v1092_v42 = vsel %vm1069_vm11, %v1035_v35, 0  ;;  %v1002_v6 = vpack.c.bf16 %v998_v10, %v997_v57 }
 0x1c9   : > { %1098 = vmatpush.bf16.xpose.msrb.mxu3 %v1092_v42  ;;  %v1086_v51 = vsel %vm1069_vm11, %v1033_v50, 0 }
 0x1cd   : > { %v1045_v46 = vpop.f32.mrf.mxu2 }
 0x1ce   : > { %v1014_v52 = vpop.f32.mrf.mxu0 }
 0x1cf   : > { %v1032_v53 = vpack.c.bf16 %v1014_v52, %v1012_v48  ;;  %v3339_v52 = vld [vmem:[%s3286_s24 + $0x38] sm:$0xff]  ;;  %s649_s24 = scalar_lea.vmem %s3913_s8, %s3942_s26 }
 0x1d1   : > { %1099 = vmatpush.bf16.xpose.msrb.mxu3 %v1089_v45  ;;  %v1083_v55 = vsel %vm1069_vm11, %v1032_v53, 0 }
 0x1d5   : > { %v1047_v25 = vpop.f32.mrf.mxu2 }
 0x1d6   : > { %v1065_v11 = vpack.c.bf16 %v1047_v25, %v1045_v46 }
 0x1d9   : > { %1100 = vmatpush.bf16.xpose.msrb.mxu3 %v1086_v51 }
 0x1dd   : > { %v1050_v54 = vpop.f32.mrf.mxu2 }
 0x1e1   : > { %1101 = vmatpush.bf16.xpose.msrb.mxu3 %v1083_v55 }
 0x1e5   : > { %v1052_v59 = vpop.f32.mrf.mxu2 }
 0x1e6   : > { %v1066_v28 = vpack.c.bf16 %v1052_v59, %v1050_v54 }
 0x1e8   : > { %2564 = vmatmul.msk.bf16.vlgmr.msrb.gmra.mxu3 %vm1069_vm11, %v999_v16 }
 0x1e9   : > { %1372 = vmatpush.bf16.msra.mxu3 %v1322_v3 }
 0x1ed   : > { %v1055_v60 = vpop.f32.mrf.mxu2  ;;  %1373 = vmatpush.bf16.msra.mxu3 %v1321_v44 }
 0x1f5   : > { %v1057_v62 = vpop.f32.mrf.mxu2 }
 0x1f6   : > { %v1067_v9 = vpack.c.bf16 %v1057_v62, %v1055_v60  ;;  %v1269_v62 = vpack.c.bf16 %v717_v61, %v716_v39 }
 0x1f8   : > { %2565 = vmatmul.msk.bf16.gmra.mxu3 %vm1069_vm11, %v1000_v47  ;;  %1289 = vmatpush.bf16.msra.mxu1 %v1269_v62 }
 0x1fd   : > { %v1060_v63 = vpop.f32.mrf.mxu2 }
 0x205   : > { %v1062_v8 = vpop.f32.mrf.mxu2 }
 0x206   : > { %v1068_v2 = vpack.c.bf16 %v1062_v8, %v1060_v63 }
 0x208   : > { %2566 = vmatmul.msk.bf16.gmra.mxu3 %vm1069_vm11, %v1001_v41  ;;  %1216 = vmatpush.bf16.msra.mxu0 %v1068_v2 }
 0x20c   : > { %1217 = vmatpush.bf16.msra.mxu0 %v1067_v9 }
 0x210   : > { %1218 = vmatpush.bf16.msra.mxu0 %v1066_v28 }
 0x214   : > { %1219 = vmatpush.bf16.msra.mxu0 %v1065_v11 }
 0x218   : > { %2567 = vmatmul.msk.bf16.gmra.mxu3 %vm1069_vm11, %v1002_v6 }
 0x228   : > { %2580 = vmatmul.msk.bf16.vlgmr.msra.gmra.mxu3 %vm722_vm0, %v3228_v29 }
 0x238   : > { %2581 = vmatmul.msk.bf16.gmra.mxu3 %vm722_vm0, %v3218_v56 }
 0x248   : > { %2582 = vmatmul.msk.bf16.gmra.mxu3 %vm722_vm0, %v3185_v40 }
 0x258   : > { %2583 = vmatmul.msk.bf16.gmra.mxu3 %vm722_vm0, %v3230_v12 }
 0x26b   : > { %v1103_v14 = vpop.f32.mrf.mxu3 }
 0x26c   : > { %v1104_v15 = vadd.f32 %v1103_v14, %v3289_v13 }
 0x26e   : > { %v1124_v17 = vsel %vm1123_vm12, %v1104_v15, -inf }
 0x26f   : > { %1125 = vmax.xlane.f32.xlu1 %v1124_v17 }
 0x273   : > { %v1105_v19 = vpop.f32.mrf.mxu3 }
 0x274   : > { %v1106_v20 = vadd.f32 %v1105_v19, %v3294_v18 }
 0x276   : > { %v1127_v21 = vsel %vm1123_vm12, %v1106_v20, -inf }
 0x277   : > { %1128 = vmax.xlane.f32.xlu2 %v1127_v21 }
 0x27b   : > { %v1108_v24 = vpop.f32.mrf.mxu3 }
 0x27c   : > { %v3302_v26 = vadd.f32 %v1108_v24, %v3299_v23 }
 0x27e   : > { %v1130_v27 = vsel %vm1123_vm12, %v3302_v26, -inf }
 0x27f   : > { %1131 = vmax.xlane.f32.xlu0 %v1130_v27 }
 0x283   : > { %v1110_v31 = vpop.f32.mrf.mxu3 }
 0x284   : > { %v3310_v32 = vadd.f32 %v1110_v31, %v3307_v30 }
 0x286   : > { %v1133_v33 = vsel %vm1123_vm12, %v3310_v32, -inf }
 0x287   : > { %1134 = vmax.xlane.f32.xlu1 %v1133_v33 }
 0x28b   : > { %v1113_v35 = vpop.f32.mrf.mxu3 }
 0x28c   : > { %v3318_v36 = vadd.f32 %v1113_v35, %v3315_v34 }
 0x28e   : > { %v1136_v42 = vsel %vm1123_vm12, %v3318_v36, -inf }
 0x28f   : > { %1137 = vmax.xlane.f32.xlu2 %v1136_v42 }
 0x293   : > { %v1115_v46 = vpop.f32.mrf.mxu3 }
 0x294   : > { %v3326_v48 = vadd.f32 %v1115_v46, %v3323_v38 }
 0x296   : > { %v1139_v45 = vsel %vm1123_vm12, %v3326_v48, -inf }
 0x297   : > { %1140 = vmax.xlane.f32.xlu0 %v1139_v45 }
 0x29b   : > { %v1118_v50 = vpop.f32.mrf.mxu3 }
 0x29c   : > { %v3334_v25 = vadd.f32 %v1118_v50, %v3331_v49 }
 0x29e   : > { %v1142_v51 = vsel %vm1123_vm12, %v3334_v25, -inf }
 0x29f   : > { %1143 = vmax.xlane.f32.xlu1 %v1142_v51  ;;  %v714_v51 = vld [vmem:[%s3045_s22 + $0xb0] sm:$0xff] }
 0x2a3   : > { %v1120_v53 = vpop.f32.mrf.mxu3 }
 0x2a4   : > { %v3342_v54 = vadd.f32 %v1120_v53, %v3339_v52  ;;  %v715_v53 = vld [vmem:[%s3045_s22 + $0xb8] sm:$0xff] }
 0x2a6   : > { %v1145_v55 = vsel %vm1123_vm12, %v3342_v54, -inf }
 0x2a7   : > { %1146 = vmax.xlane.f32.xlu2 %v1145_v55  ;;  %v712_v55 = vld [vmem:[%s3045_s22 + $0xa0] sm:$0xff] }
 0x2ab   : > { %v1375_v58 = vpop.f32.mrf.mxu3 }
 0x2b3   : > { %v1377_v43 = vpop.f32.mrf.mxu3 }
 0x2b4   : > { %v1395_v59 = vpack.c.bf16 %v1377_v43, %v1375_v58  ;;  %v1324_v58 = vpack.c.bf16 %v715_v53, %v714_v51  ;;  %v713_v43 = vld [vmem:[%s3045_s22 + $0xa8] sm:$0xff]  ;;  %s646_s22 = scalar_lea.vmem %s3912_s7, %s3942_s26 }
 0x2b6   : > { %1405 = vmatpush.bf16.msrb.mxu0 %v1324_v58 }
 0x2bb   : > { %v1380_v16 = vpop.f32.mrf.mxu3 }
 0x2c3   : > { %v1382_v60 = vpop.f32.mrf.mxu3 }
 0x2c4   : > { %v1396_v11 = vpack.c.bf16 %v1382_v60, %v1380_v16  ;;  %v1323_v60 = vpack.c.bf16 %v713_v43, %v712_v55 }
 0x2c6   : > { %v1448_v19 = vsel %vm1069_vm11, %v1396_v11, 0  ;;  %1406 = vmatpush.bf16.msrb.mxu0 %v1323_v60 }
 0x2cb   : > { %v1385_v47 = vpop.f32.mrf.mxu3 }
 0x2d3   : > { %v1387_v63 = vpop.f32.mrf.mxu3 }
 0x2d4   : > { %v1397_v44 = vpack.c.bf16 %v1387_v63, %v1385_v47 }
 0x2d6   : > { %v1451_v28 = vsel %vm1069_vm11, %v1397_v44, 0 }
 0x2db   : > { %v1390_v0 = vpop.f32.mrf.mxu3 }
 0x2e2   : > { %v1126_v1 = vpop.xlane.xlu1 %1125 }
 0x2e3   : > { %v1148_v3 = vsub.f32 %v1104_v15, %v1126_v1  ;;  %v1392_v4 = vpop.f32.mrf.mxu3 }
 0x2e4   : > { %v1398_v5 = vpack.c.bf16 %v1392_v4, %v1390_v0 }
 0x2e5   : > { %v1156_v37 = vmul.f32 1.442695, %v1148_v3 }
 0x2e6   : > { %v1454_v7 = vsel %vm1069_vm11, %v1398_v5, 0 }
 0x2e7   : > { %2688 = vpow2.f32 %v1156_v37  ;;  %1460 = vmatpush.bf16.xpose.msrb.mxu1 %v1454_v7 }
 0x2ea   : > { %v1129_v8 = vpop.xlane.xlu2 %1128 }
 0x2eb   : > { %v1149_v41 = vsub.f32 %v1106_v20, %v1129_v8 }
 0x2ed   : > { %v2689_v2 = vpop.eup %2688  ;;  %v1158_v9 = vmul.f32 1.442695, %v1149_v41 }
 0x2ee   : > { %v1172_v10 = vsel %vm1123_vm12, %v2689_v2, 0.0 }
 0x2ef   : > { %2690 = vpow2.f32 %v1158_v9  ;;  %1461 = vmatpush.bf16.xpose.msrb.mxu1 %v1451_v28  ;;  %1173 = vadd.xlane.f32.xlu0 %v1172_v10 }
 0x2f2   : > { %v1132_v57 = vpop.xlane.xlu0 %1131 }
 0x2f3   : > { %v1150_v6 = vsub.f32 %v3302_v26, %v1132_v57  ;;  %v1445_v26 = vsel %vm1069_vm11, %v1395_v59, 0 }
 0x2f5   : > { %v2691_v14 = vpop.eup %2690  ;;  %v1160_v15 = vmul.f32 1.442695, %v1150_v6 }
 0x2f6   : > { %v1196_v17 = vpack.c.bf16 %v2691_v14, %v2689_v2  ;;  %v1175_v20 = vsel %vm1123_vm12, %v2691_v14, 0.0 }
 0x2f7   : > { %2692 = vpow2.f32 %v1160_v15  ;;  %1462 = vmatpush.bf16.xpose.msrb.mxu1 %v1448_v19  ;;  %1176 = vadd.xlane.f32.xlu1 %v1175_v20 }
 0x2f8   : > { %2568 = vmatmul.msk.bf16.vlgmr.msra.gmra.mxu0 %vm1123_vm12, %v1196_v17 }
 0x2fa   : > { %v1135_v21 = vpop.xlane.xlu1 %1134 }
 0x2fb   : > { %v1151_v24 = vsub.f32 %v3310_v32, %v1135_v21 }
 0x2fd   : > { %v2693_v27 = vpop.eup %2692  ;;  %v1162_v31 = vmul.f32 1.442695, %v1151_v24 }
 0x2fe   : > { %v1178_v33 = vsel %vm1123_vm12, %v2693_v27, 0.0 }
 0x2ff   : > { %2694 = vpow2.f32 %v1162_v31  ;;  %1463 = vmatpush.bf16.xpose.msrb.mxu1 %v1445_v26  ;;  %1179 = vadd.xlane.f32.xlu2 %v1178_v33 }
 0x302   : > { %v1138_v35 = vpop.xlane.xlu2 %1137 }
 0x303   : > { %v1152_v42 = vsub.f32 %v3318_v36, %v1138_v35 }
 0x305   : > { %v2695_v46 = vpop.eup %2694  ;;  %v1164_v45 = vmul.f32 1.442695, %v1152_v42 }
 0x306   : > { %v1181_v32 = vsel %vm1123_vm12, %v2695_v46, 0.0  ;;  %v1197_v50 = vpack.c.bf16 %v2695_v46, %v2693_v27 }
 0x307   : > { %2696 = vpow2.f32 %v1164_v45  ;;  %1182 = vadd.xlane.f32.xlu0 %v1181_v32 }
 0x308   : > { %2569 = vmatmul.msk.bf16.gmra.mxu0 %vm1123_vm12, %v1197_v50 }
 0x30a   : > { %v1141_v59 = vpop.xlane.xlu0 %1140 }
 0x30b   : > { %v1153_v16 = vsub.f32 %v3326_v48, %v1141_v59 }
 0x30d   : > { %v2697_v36 = vpop.eup %2696  ;;  %v1166_v39 = vmul.f32 1.442695, %v1153_v16  ;;  %v1334_v16 = vpop.f32.mrf.mxu2 }
 0x30e   : > { %v1184_v61 = vsel %vm1123_vm12, %v2697_v36, 0.0 }
 0x30f   : > { %2698 = vpow2.f32 %v1166_v39  ;;  %1185 = vadd.xlane.f32.xlu1 %v1184_v61 }
 0x312   : > { %v1144_v62 = vpop.xlane.xlu1 %1143 }
 0x313   : > { %v1154_v47 = vsub.f32 %v3334_v25, %v1144_v62 }
 0x315   : > { %v2699_v63 = vpop.eup %2698  ;;  %v1168_v0 = vmul.f32 1.442695, %v1154_v47  ;;  %v1336_v62 = vpop.f32.mrf.mxu2 }
 0x316   : > { %v1187_v1 = vsel %vm1123_vm12, %v2699_v63, 0.0  ;;  %v1198_v3 = vpack.c.bf16 %v2699_v63, %v2697_v36 }
 0x317   : > { %2700 = vpow2.f32 %v1168_v0  ;;  %1188 = vadd.xlane.f32.xlu2 %v1187_v1 }
 0x318   : > { %2570 = vmatmul.msk.bf16.gmra.mxu0 %vm1123_vm12, %v1198_v3 }
 0x31a   : > { %v1147_v48 = vpop.xlane.xlu2 %1146 }
 0x31b   : > { %v1155_v4 = vsub.f32 %v3342_v54, %v1147_v48 }
 0x31d   : > { %v2701_v5 = vpop.eup %2700  ;;  %v1170_v37 = vmul.f32 1.442695, %v1155_v4  ;;  %v1339_v48 = vpop.f32.mrf.mxu2  ;;  %v1355_v4 = vmul.f32 0.25, %v1336_v62 }
 0x31e   : > { %v1190_v7 = vsel %vm1123_vm12, %v2701_v5, 0.0 }
 0x31f   : > { %2702 = vpow2.f32 %v1170_v37  ;;  %1191 = vadd.xlane.f32.xlu0 %v1190_v7  ;;  %v1354_v37 = vmul.f32 0.25, %v1334_v16 }
 0x321   : > { %v1362_v7 = vpack.c.bf16 %v1355_v4, %v1354_v37 }
 0x325   : > { %v2703_v44 = vpop.eup %2702 }
 0x326   : > { %v1193_v25 = vsel %vm1123_vm12, %v2703_v44, 0.0  ;;  %v1199_v8 = vpack.c.bf16 %v2703_v44, %v2701_v5  ;;  %v1341_v44 = vpop.f32.mrf.mxu2 }
 0x327   : > { %1194 = vadd.xlane.f32.xlu1 %v1193_v25 }
 0x328   : > { %2571 = vmatmul.msk.bf16.gmra.mxu0 %vm1123_vm12, %v1199_v8 }
 0x32e   : > { %v1344_v8 = vpop.f32.mrf.mxu2 }
 0x338   : > { %2584 = vmatmul.msk.bf16.vlgmr.msrb.gmra.mxu0 %vm722_vm0, %v3228_v29 }
 0x348   : > { %2585 = vmatmul.msk.bf16.gmra.mxu0 %vm722_vm0, %v3218_v56 }
 0x358   : > { %2586 = vmatmul.msk.bf16.gmra.mxu0 %vm722_vm0, %v3185_v40 }
 0x362   : > { %v1174_v54 = vpop.xlane.xlu0 %1173 }
 0x363   : > { %v1241_v2 = vmax.f32 %v1174_v54, 1e-30  ;;  %v1357_v54 = vmul.f32 0.25, %v1341_v44 }
 0x365   : > { %2704 = vrcp.f32 %v1241_v2  ;;  %v1356_v2 = vmul.f32 0.25, %v1339_v48 }
 0x368   : > { %2587 = vmatmul.msk.bf16.gmra.mxu0 %vm722_vm0, %v3230_v12 }
 0x36a   : > { %v1177_v41 = vpop.xlane.xlu1 %1176 }
 0x36b   : > { %v1242_v9 = vmax.f32 %v1177_v41, 1e-30  ;;  %v2705_v10 = vpop.eup %2704 }
 0x36d   : > { %2706 = vrcp.f32 %v1242_v9  ;;  %v1363_v9 = vpack.c.bf16 %v1357_v54, %v1356_v2 }
 0x372   : > { %v1180_v40 = vpop.xlane.xlu2 %1179 }
 0x373   : > { %v2707_v29 = vpop.eup %2706  ;;  %v1243_v12 = vmax.f32 %v1180_v40, 1e-30 }
 0x375   : > { %v1221_v28 = vpop.f32.mrf.mxu0  ;;  %2708 = vrcp.f32 %v1243_v12 }
 0x376   : > { %v1257_v11 = vmul.f32 %v2705_v10, %v1221_v28  ;;  %v1346_v28 = vpop.f32.mrf.mxu2 }
 0x37a   : > { %v1183_v6 = vpop.xlane.xlu0 %1182 }
 0x37b   : > { %v1244_v15 = vmax.f32 %v1183_v6, 1e-30  ;;  %v2709_v19 = vpop.eup %2708 }
 0x37d   : > { %v1223_v56 = vpop.f32.mrf.mxu0  ;;  %2710 = vrcp.f32 %v1244_v15 }
 0x37e   : > { %v1258_v57 = vmul.f32 %v2707_v29, %v1223_v56  ;;  %v1359_v29 = vmul.f32 0.25, %v1346_v28 }
 0x380   : > { %v1265_v14 = vpack.c.bf16 %v1258_v57, %v1257_v11  ;;  %v1358_v11 = vmul.f32 0.25, %v1344_v8  ;;  %v1349_v57 = vpop.f32.mrf.mxu2 }
 0x382   : > { %2572 = vmatmul.msk.bf16.vlgmr.msra.gmra.mxu1 %vm1069_vm11, %v1265_v14  ;;  %v1186_v31 = vpop.xlane.xlu1 %1185  ;;  %v1364_v40 = vpack.c.bf16 %v1359_v29, %v1358_v11 }
 0x383   : > { %v2711_v20 = vpop.eup %2710  ;;  %v1245_v35 = vmax.f32 %v1186_v31, 1e-30 }
 0x385   : > { %v1226_v17 = vpop.f32.mrf.mxu0  ;;  %2712 = vrcp.f32 %v1245_v35 }
 0x386   : > { %v1259_v24 = vmul.f32 %v2709_v19, %v1226_v17  ;;  %v1360_v17 = vmul.f32 0.25, %v1349_v57 }
 0x388   : > { %v1351_v14 = vpop.f32.mrf.mxu2 }
 0x389   : > { %v1361_v12 = vmul.f32 0.25, %v1351_v14 }
 0x38a   : > { %v1189_v26 = vpop.xlane.xlu2 %1188 }
 0x38b   : > { %v1246_v42 = vmax.f32 %v1189_v26, 1e-30  ;;  %v2713_v45 = vpop.eup %2712 }
 0x38d   : > { %v1228_v21 = vpop.f32.mrf.mxu0  ;;  %2714 = vrcp.f32 %v1246_v42 }
 0x38e   : > { %v1260_v27 = vmul.f32 %v2711_v20, %v1228_v21  ;;  %v1365_v20 = vpack.c.bf16 %v1361_v12, %v1360_v17 }
 0x390   : > { %v1266_v33 = vpack.c.bf16 %v1260_v27, %v1259_v24 }
 0x392   : > { %2573 = vmatmul.msk.bf16.gmra.mxu1 %vm1069_vm11, %v1266_v33  ;;  %v1192_v55 = vpop.xlane.xlu0 %1191 }
 0x393   : > { %v2715_v32 = vpop.eup %2714  ;;  %v1247_v59 = vmax.f32 %v1192_v55, 1e-30 }
 0x395   : > { %v1231_v46 = vpop.f32.mrf.mxu0  ;;  %2716 = vrcp.f32 %v1247_v59 }
 0x396   : > { %v1261_v51 = vmul.f32 %v2713_v45, %v1231_v46 }
 0x39a   : > { %v1195_v58 = vpop.xlane.xlu1 %1194 }
 0x39b   : > { %v1248_v60 = vmax.f32 %v1195_v58, 1e-30  ;;  %v2717_v39 = vpop.eup %2716 }
 0x39d   : > { %v1233_v50 = vpop.f32.mrf.mxu0  ;;  %2718 = vrcp.f32 %v1248_v60 }
 0x39e   : > { %v1262_v53 = vmul.f32 %v2715_v32, %v1233_v50  ;;  %v3421_v32 = vld [vmem:[%s643_s21] ss:$0 sm:$0xff]  ;;  %v2800_v50 = vld [vmem:[%s2961_s20 + $0x38] sm:$0xff] }
 0x3a0   : > { %v1267_v43 = vpack.c.bf16 %v1262_v53, %v1261_v51  ;;  %v943_v51 = vadd.f32 %v2800_v50, %v3421_v32 }
 0x3a2   : > { %2574 = vmatmul.msk.bf16.gmra.mxu1 %vm1069_vm11, %v1267_v43 }
 0x3a3   : > { %v2719_v61 = vpop.eup %2718 }
 0x3a5   : > { %v1236_v36 = vpop.f32.mrf.mxu0 }
 0x3a6   : > { %v1263_v63 = vmul.f32 %v2717_v39, %v1236_v36 }
 0x3ad   : > { %v1238_v47 = vpop.f32.mrf.mxu0 }
 0x3ae   : > { %v1264_v0 = vmul.f32 %v2719_v61, %v1238_v47 }
 0x3b0   : > { %v1268_v1 = vpack.c.bf16 %v1264_v0, %v1263_v63 }
 0x3b2   : > { %2575 = vmatmul.msk.bf16.gmra.mxu1 %vm1069_vm11, %v1268_v1 }
 0x3b5   : > { %v1408_v3 = vpop.f32.mrf.mxu0 }
 0x3bd   : > { %v1410_v5 = vpop.f32.mrf.mxu0 }
 0x3be   : > { %v1428_v27 = vpack.c.bf16 %v1410_v5, %v1408_v3 }
 0x3c2   : > { %2588 = vmatmul.msk.bf16.vlgmr.msrb.gmra.mxu1 %vm1069_vm11, %v1362_v7 }
 0x3c5   : > { %v1413_v25 = vpop.f32.mrf.mxu0 }
 0x3cd   : > { %v1415_v41 = vpop.f32.mrf.mxu0 }
 0x3ce   : > { %v1429_v24 = vpack.c.bf16 %v1415_v41, %v1413_v25 }
 0x3d2   : > { %2589 = vmatmul.msk.bf16.gmra.mxu1 %vm1069_vm11, %v1363_v9 }
 0x3d5   : > { %v1418_v10 = vpop.f32.mrf.mxu0 }
 0x3dd   : > { %v1420_v56 = vpop.f32.mrf.mxu0 }
 0x3de   : > { %v1430_v21 = vpack.c.bf16 %v1420_v56, %v1418_v10 }
 0x3e2   : > { %2590 = vmatmul.msk.bf16.gmra.mxu1 %vm1069_vm11, %v1364_v40 }
 0x3e5   : > { %v1423_v6 = vpop.f32.mrf.mxu0 }
 0x3ed   : > { %v1425_v15 = vpop.f32.mrf.mxu0 }
 0x3ee   : > { %v1431_v19 = vpack.c.bf16 %v1425_v15, %v1423_v6 }
 0x3f0   : > { %1577 = vmatpush.bf16.msrb.mxu2 %v1431_v19 }
 0x3f2   : > { %2591 = vmatmul.msk.bf16.gmra.mxu1 %vm1069_vm11, %v1365_v20 }
 0x3f4   : > { %1578 = vmatpush.bf16.msrb.mxu2 %v1430_v21 }
 0x3f8   : > { %1579 = vmatpush.bf16.msrb.mxu2 %v1429_v24  ;;  %v718_v24 = vld [vmem:[%s3352_s15 + $0x10] sm:$0xff] }
 0x3fc   : > { %1580 = vmatpush.bf16.msrb.mxu2 %v1428_v27  ;;  %v719_v27 = vld [vmem:[%s3352_s15 + $0x18] sm:$0xff] }
 0x3fd   : > { %v1630_v50 = vpack.c.bf16 %v719_v27, %v718_v24 }
 0x3ff   : > { %v3402_v31 = vpop.f32.mrf.mxu1  ;;  %1650 = vmatpush.bf16.msrb.mxu3 %v1630_v50 }
 0x407   : > { %v3404_v26 = vpop.f32.mrf.mxu1 }
 0x40f   : > { %v3406_v33 = vpop.f32.mrf.mxu1 }
 0x417   : > { %v3408_v35 = vpop.f32.mrf.mxu1 }
 0x41f   : > { %v3410_v42 = vpop.f32.mrf.mxu1 }
 0x427   : > { %v3412_v46 = vpop.f32.mrf.mxu1 }
 0x42f   : > { %v3414_v45 = vpop.f32.mrf.mxu1 }
 0x437   : > { %v1308_v53 = vpop.f32.mrf.mxu1 }
 0x438   : > { %v3425_v55 = vadd.f32 %v1308_v53, %v943_v51 }
 0x43f   : > { %v1465_v58 = vpop.f32.mrf.mxu1 }
 0x440   : > { %v1466_v43 = vadd.f32 %v1465_v58, %v3289_v13 }
 0x442   : > { %v1485_v59 = vsel %vm1123_vm12, %v1466_v43, -inf }
 0x443   : > { %1486 = vmax.xlane.f32.xlu2 %v1485_v59 }
 0x447   : > { %v1467_v16 = vpop.f32.mrf.mxu1 }
 0x448   : > { %v1468_v60 = vadd.f32 %v1467_v16, %v3294_v18 }
 0x44a   : > { %v1488_v36 = vsel %vm1123_vm12, %v1468_v60, -inf }
 0x44b   : > { %1489 = vmax.xlane.f32.xlu0 %v1488_v36 }
 0x44f   : > { %v1470_v39 = vpop.f32.mrf.mxu1 }
 0x450   : > { %v1471_v61 = vadd.f32 %v1470_v39, %v3299_v23 }
 0x452   : > { %v1491_v62 = vsel %vm1123_vm12, %v1471_v61, -inf }
 0x453   : > { %1492 = vmax.xlane.f32.xlu1 %v1491_v62 }
 0x457   : > { %v1472_v47 = vpop.f32.mrf.mxu1 }
 0x458   : > { %v1473_v63 = vadd.f32 %v1472_v47, %v3307_v30 }
 0x45a   : > { %v1494_v13 = vsel %vm1123_vm12, %v1473_v63, -inf }
 0x45b   : > { %1495 = vmax.xlane.f32.xlu2 %v1494_v13 }
 0x45f   : > { %v1475_v0 = vpop.f32.mrf.mxu1 }
 0x460   : > { %v1476_v1 = vadd.f32 %v1475_v0, %v3315_v34 }
 0x462   : > { %v1497_v18 = vsel %vm1123_vm12, %v1476_v1, -inf }
 0x463   : > { %1498 = vmax.xlane.f32.xlu0 %v1497_v18 }
 0x467   : > { %v1477_v3 = vpop.f32.mrf.mxu1 }
 0x468   : > { %v1478_v48 = vadd.f32 %v1477_v3, %v3323_v38 }
 0x46a   : > { %v1500_v23 = vsel %vm1123_vm12, %v1478_v48, -inf }
 0x46b   : > { %1501 = vmax.xlane.f32.xlu1 %v1500_v23 }
 0x46f   : > { %v1480_v4 = vpop.f32.mrf.mxu1 }
 0x470   : > { %v1481_v5 = vadd.f32 %v1480_v4, %v3331_v49 }
 0x472   : > { %v1503_v30 = vsel %vm1123_vm12, %v1481_v5, -inf }
 0x473   : > { %1504 = vmax.xlane.f32.xlu2 %v1503_v30 }
 0x477   : > { %v1482_v37 = vpop.f32.mrf.mxu1 }
 0x478   : > { %v1483_v7 = vadd.f32 %v1482_v37, %v3339_v52 }
 0x47a   : > { %v1506_v34 = vsel %vm1123_vm12, %v1483_v7, -inf }
 0x47b   : > { %1507 = vmax.xlane.f32.xlu0 %v1506_v34 }
 0x4b6   : > { %v1487_v44 = vpop.xlane.xlu2 %1486 }
 0x4b7   : > { %v1509_v25 = vsub.f32 %v1466_v43, %v1487_v44 }
 0x4b9   : > { %v1517_v8 = vmul.f32 1.442695, %v1509_v25 }
 0x4bb   : > { %2720 = vpow2.f32 %v1517_v8 }
 0x4be   : > { %v1490_v38 = vpop.xlane.xlu0 %1489 }
 0x4bf   : > { %v1510_v54 = vsub.f32 %v1468_v60, %v1490_v38 }
 0x4c1   : > { %v2721_v41 = vpop.eup %2720  ;;  %v1519_v2 = vmul.f32 1.442695, %v1510_v54 }
 0x4c2   : > { %v1533_v9 = vsel %vm1123_vm12, %v2721_v41, 0.0 }
 0x4c3   : > { %2722 = vpow2.f32 %v1519_v2  ;;  %1534 = vadd.xlane.f32.xlu1 %v1533_v9 }
 0x4c6   : > { %v1493_v49 = vpop.xlane.xlu1 %1492 }
 0x4c7   : > { %v1511_v28 = vsub.f32 %v1471_v61, %v1493_v49 }
 0x4c9   : > { %v2723_v10 = vpop.eup %2722  ;;  %v1521_v29 = vmul.f32 1.442695, %v1511_v28 }
 0x4ca   : > { %v1557_v52 = vpack.c.bf16 %v2723_v10, %v2721_v41  ;;  %v1536_v56 = vsel %vm1123_vm12, %v2723_v10, 0.0 }
 0x4cb   : > { %2724 = vpow2.f32 %v1521_v29  ;;  %1537 = vadd.xlane.f32.xlu2 %v1536_v56 }
 0x4cc   : > { %2592 = vmatmul.msk.bf16.vlgmr.msrb.gmra.mxu2 %vm1123_vm12, %v1557_v52 }
 0x4ce   : > { %v1496_v11 = vpop.xlane.xlu2 %1495 }
 0x4cf   : > { %v1512_v57 = vsub.f32 %v1473_v63, %v1496_v11 }
 0x4d1   : > { %v2725_v40 = vpop.eup %2724  ;;  %v1523_v6 = vmul.f32 1.442695, %v1512_v57 }
 0x4d2   : > { %v1539_v14 = vsel %vm1123_vm12, %v2725_v40, 0.0 }
 0x4d3   : > { %2726 = vpow2.f32 %v1523_v6  ;;  %1540 = vadd.xlane.f32.xlu0 %v1539_v14 }
 0x4d6   : > { %v1499_v12 = vpop.xlane.xlu0 %1498 }
 0x4d7   : > { %v1513_v15 = vsub.f32 %v1476_v1, %v1499_v12 }
 0x4d9   : > { %v2727_v17 = vpop.eup %2726  ;;  %v1525_v19 = vmul.f32 1.442695, %v1513_v15 }
 0x4da   : > { %v1542_v20 = vsel %vm1123_vm12, %v2727_v17, 0.0  ;;  %v1558_v21 = vpack.c.bf16 %v2727_v17, %v2725_v40 }
 0x4db   : > { %2728 = vpow2.f32 %v1525_v19  ;;  %1543 = vadd.xlane.f32.xlu1 %v1542_v20 }
 0x4dc   : > { %2593 = vmatmul.msk.bf16.gmra.mxu2 %vm1123_vm12, %v1558_v21 }
 0x4de   : > { %v1502_v51 = vpop.xlane.xlu1 %1501 }
 0x4df   : > { %v1514_v53 = vsub.f32 %v1478_v48, %v1502_v51 }
 0x4e1   : > { %v2729_v58 = vpop.eup %2728  ;;  %v1527_v43 = vmul.f32 1.442695, %v1514_v53 }
 0x4e2   : > { %v1545_v59 = vsel %vm1123_vm12, %v2729_v58, 0.0 }
 0x4e3   : > { %2730 = vpow2.f32 %v1527_v43  ;;  %1546 = vadd.xlane.f32.xlu2 %v1545_v59 }
 0x4e6   : > { %v1505_v16 = vpop.xlane.xlu2 %1504 }
 0x4e7   : > { %v1515_v60 = vsub.f32 %v1481_v5, %v1505_v16 }
 0x4e9   : > { %v2731_v36 = vpop.eup %2730  ;;  %v1529_v39 = vmul.f32 1.442695, %v1515_v60 }
 0x4ea   : > { %v1548_v61 = vsel %vm1123_vm12, %v2731_v36, 0.0  ;;  %v1559_v62 = vpack.c.bf16 %v2731_v36, %v2729_v58 }
 0x4eb   : > { %2732 = vpow2.f32 %v1529_v39  ;;  %1549 = vadd.xlane.f32.xlu0 %v1548_v61  ;;  %v2801_v61 = vld [vmem:[%s2961_s20] sm:$0xff] }
 0x4ec   : > { %2594 = vmatmul.msk.bf16.gmra.mxu2 %vm1123_vm12, %v1559_v62  ;;  %v936_v62 = vadd.f32 %v2801_v61, %v3421_v32 }
 0x4ee   : > { %v1508_v47 = vpop.xlane.xlu0 %1507 }
 0x4ef   : > { %v1516_v63 = vsub.f32 %v1483_v7, %v1508_v47  ;;  %v1311_v47 = vadd.f32 %v3402_v31, %v936_v62 }
 0x4f1   : > { %v2733_v13 = vpop.eup %2732  ;;  %v1531_v0 = vmul.f32 1.442695, %v1516_v63 }
 0x4f2   : > { %v1551_v1 = vsel %vm1123_vm12, %v2733_v13, 0.0 }
 0x4f3   : > { %2734 = vpow2.f32 %v1531_v0  ;;  %1552 = vadd.xlane.f32.xlu1 %v1551_v1  ;;  %v2802_v0 = vld [vmem:[%s2961_s20 + $0x8] sm:$0xff] }
 0x4f4   : > { %v937_v1 = vadd.f32 %v2802_v0, %v3421_v32 }
 0x4f9   : > { %v2735_v18 = vpop.eup %2734 }
 0x4fa   : > { %v1554_v3 = vsel %vm1123_vm12, %v2735_v18, 0.0  ;;  %v1560_v48 = vpack.c.bf16 %v2735_v18, %v2733_v13 }
 0x4fb   : > { %1555 = vadd.xlane.f32.xlu2 %v1554_v3  ;;  %v1312_v3 = vadd.f32 %v3404_v26, %v937_v1 }
 0x4fc   : > { %2595 = vmatmul.msk.bf16.gmra.mxu2 %vm1123_vm12, %v1560_v48 }
 0x536   : > { %v1535_v23 = vpop.xlane.xlu1 %1534 }
 0x537   : > { %v1602_v5 = vmax.f32 %v1535_v23, 1e-30 }
 0x539   : > { %2736 = vrcp.f32 %v1602_v5 }
 0x53e   : > { %v1538_v4 = vpop.xlane.xlu2 %1537 }
 0x53f   : > { %v1603_v30 = vmax.f32 %v1538_v4, 1e-30  ;;  %v2737_v7 = vpop.eup %2736  ;;  %v2803_v4 = vld [vmem:[%s2961_s20 + $0x10] sm:$0xff] }
 0x540   : > { %v938_v31 = vadd.f32 %v2803_v4, %v3421_v32 }
 0x541   : > { %2738 = vrcp.f32 %v1603_v30 }
 0x542   : > { %v1313_v30 = vadd.f32 %v3406_v33, %v938_v31 }
 0x546   : > { %v1541_v38 = vpop.xlane.xlu0 %1540 }
 0x547   : > { %v2739_v34 = vpop.eup %2738  ;;  %v1604_v2 = vmax.f32 %v1541_v38, 1e-30 }
 0x549   : > { %2740 = vrcp.f32 %v1604_v2 }
 0x54e   : > { %v1544_v54 = vpop.xlane.xlu1 %1543 }
 0x54f   : > { %v1582_v37 = vpop.f32.mrf.mxu2  ;;  %v1605_v9 = vmax.f32 %v1544_v54, 1e-30  ;;  %v2741_v28 = vpop.eup %2740  ;;  %v2805_v54 = vld [vmem:[%s2961_s20 + $0x20] sm:$0xff] }
 0x550   : > { %v1618_v25 = vmul.f32 %v2737_v7, %v1582_v37  ;;  %v940_v33 = vadd.f32 %v2805_v54, %v3421_v32 }
 0x551   : > { %2742 = vrcp.f32 %v1605_v9 }
 0x552   : > { %v1315_v2 = vadd.f32 %v3410_v42, %v940_v33 }
 0x556   : > { %v1547_v11 = vpop.xlane.xlu2 %1546 }
 0x557   : > { %v1584_v44 = vpop.f32.mrf.mxu2  ;;  %v2743_v10 = vpop.eup %2742  ;;  %v1606_v6 = vmax.f32 %v1547_v11, 1e-30  ;;  %v2807_v11 = vld [vmem:[%s2961_s20 + $0x30] sm:$0xff] }
 0x558   : > { %v1619_v8 = vmul.f32 %v2739_v34, %v1584_v44  ;;  %v2804_v34 = vld [vmem:[%s2961_s20 + $0x18] sm:$0xff] }
 0x559   : > { %2744 = vrcp.f32 %v1606_v6  ;;  %v939_v26 = vadd.f32 %v2804_v34, %v3421_v32 }
 0x55a   : > { %v1626_v41 = vpack.c.bf16 %v1619_v8, %v1618_v25 }
 0x55b   : > { %v1314_v25 = vadd.f32 %v3408_v35, %v939_v26 }
 0x55c   : > { %2596 = vmatmul.msk.bf16.vlgmr.msrb.gmra.mxu3 %vm1069_vm11, %v1626_v41 }
 0x55e   : > { %v1550_v57 = vpop.xlane.xlu0 %1549 }
 0x55f   : > { %v1587_v49 = vpop.f32.mrf.mxu2  ;;  %v1607_v14 = vmax.f32 %v1550_v57, 1e-30  ;;  %v2745_v15 = vpop.eup %2744  ;;  %v942_v57 = vadd.f32 %v2807_v11, %v3421_v32 }
 0x560   : > { %v1620_v52 = vmul.f32 %v2741_v28, %v1587_v49  ;;  %v2806_v28 = vld [vmem:[%s2961_s20 + $0x28] sm:$0xff] }
 0x561   : > { %2746 = vrcp.f32 %v1607_v14  ;;  %v941_v35 = vadd.f32 %v2806_v28, %v3421_v32 }
 0x566   : > { %v1553_v24 = vpop.xlane.xlu1 %1552 }
 0x567   : > { %v1589_v29 = vpop.f32.mrf.mxu2  ;;  %v2747_v17 = vpop.eup %2746  ;;  %v1608_v51 = vmax.f32 %v1553_v24, 1e-30 }
 0x568   : > { %v1621_v56 = vmul.f32 %v2743_v10, %v1589_v29  ;;  %v1316_v29 = vadd.f32 %v3412_v46, %v941_v35 }
 0x569   : > { %2748 = vrcp.f32 %v1608_v51 }
 0x56a   : > { %v1627_v40 = vpack.c.bf16 %v1621_v56, %v1620_v52 }
 0x56c   : > { %2597 = vmatmul.msk.bf16.gmra.mxu3 %vm1069_vm11, %v1627_v40  ;;  %v1317_v40 = vadd.f32 %v3414_v45, %v942_v57 }
 0x56e   : > { %v1556_v27 = vpop.xlane.xlu2 %1555 }
 0x56f   : > { %v1592_v12 = vpop.f32.mrf.mxu2  ;;  %v1609_v53 = vmax.f32 %v1556_v27, 1e-30  ;;  %v2749_v43 = vpop.eup %2748 }
 0x570   : > { %v1622_v20 = vmul.f32 %v2745_v15, %v1592_v12 }
 0x571   : > { %2750 = vrcp.f32 %v1609_v53 }
 0x577   : > { %v1594_v19 = vpop.f32.mrf.mxu2  ;;  %v2751_v59 = vpop.eup %2750 }
 0x578   : > { %v1623_v21 = vmul.f32 %v2747_v17, %v1594_v19 }
 0x57a   : > { %v1628_v50 = vpack.c.bf16 %v1623_v21, %v1622_v20 }
 0x57c   : > { %2598 = vmatmul.msk.bf16.gmra.mxu3 %vm1069_vm11, %v1628_v50 }
 0x57f   : > { %v1597_v58 = vpop.f32.mrf.mxu2 }
 0x580   : > { %v1624_v60 = vmul.f32 %v2749_v43, %v1597_v58 }
 0x587   : > { %v1599_v16 = vpop.f32.mrf.mxu2 }
 0x588   : > { %v1625_v36 = vmul.f32 %v2751_v59, %v1599_v16 }
 0x58a   : > { %v1629_v39 = vpack.c.bf16 %v1625_v36, %v1624_v60 }
 0x58c   : > { %2599 = vmatmul.msk.bf16.gmra.mxu3 %vm1069_vm11, %v1629_v39 }
 0x5df   : > { %v1652_v63 = vpop.f32.mrf.mxu3 }
 0x5e0   : > { %v3464_v13 = vadd.f32 %v1652_v63, %v1311_v47 }
 0x5e2   : > { %v1682_v18 = vsel %vm722_vm0, %v3464_v13, 0.0 }
 0x5e3   : > { %1683 = vadd.xlane.f32.xlu0 %v1682_v18 }
 0x5e7   : > { %v1654_v48 = vpop.f32.mrf.mxu3 }
 0x5e8   : > { %v3471_v23 = vadd.f32 %v1654_v48, %v1312_v3 }
 0x5ea   : > { %v1685_v5 = vsel %vm722_vm0, %v3471_v23, 0.0 }
 0x5eb   : > { %1686 = vadd.xlane.f32.xlu1 %v1685_v5 }
 0x5ef   : > { %v1657_v37 = vpop.f32.mrf.mxu3 }
 0x5f0   : > { %v3478_v7 = vadd.f32 %v1657_v37, %v1313_v30 }
 0x5f2   : > { %v1688_v44 = vsel %vm722_vm0, %v3478_v7, 0.0 }
 0x5f3   : > { %1689 = vadd.xlane.f32.xlu2 %v1688_v44 }
 0x5f7   : > { %v1659_v8 = vpop.f32.mrf.mxu3 }
 0x5f8   : > { %v3485_v38 = vadd.f32 %v1659_v8, %v1314_v25  ;;  %v1886_v25 = vld [vmem:[%s654_s18 + $0x10] sm:$0xff]  ;;  %v1887_v8 = vld [vmem:[%s654_s18 + $0x18] sm:$0xff] }
 0x5f9   : > { %v1889_v54 = vpack.c.bf16 %v1887_v8, %v1886_v25 }
 0x5fa   : > { %v1691_v41 = vsel %vm722_vm0, %v3485_v38, 0.0 }
 0x5fb   : > { %1692 = vadd.xlane.f32.xlu0 %v1691_v41  ;;  %1912 = vmatpush.bf16.msra.mxu0 %v1889_v54 }
 0x5ff   : > { %v1662_v9 = vpop.f32.mrf.mxu3 }
 0x600   : > { %v3492_v49 = vadd.f32 %v1662_v9, %v1315_v2  ;;  %v1884_v2 = vld [vmem:[%s654_s18] sm:$0xff]  ;;  %v1885_v9 = vld [vmem:[%s654_s18 + $0x8] sm:$0xff] }
 0x601   : > { %v1888_v35 = vpack.c.bf16 %v1885_v9, %v1884_v2 }
 0x602   : > { %v1694_v10 = vsel %vm722_vm0, %v3492_v49, 0.0 }
 0x603   : > { %1695 = vadd.xlane.f32.xlu1 %v1694_v10  ;;  %1913 = vmatpush.bf16.msra.mxu0 %v1888_v35 }
 0x607   : > { %v1664_v52 = vpop.f32.mrf.mxu3 }
 0x608   : > { %v3499_v56 = vadd.f32 %v1664_v52, %v1316_v29 }
 0x60a   : > { %v1697_v42 = vsel %vm722_vm0, %v3499_v56, 0.0 }
 0x60b   : > { %1698 = vadd.xlane.f32.xlu2 %v1697_v42 }
 0x60f   : > { %v1667_v46 = vpop.f32.mrf.mxu3 }
 0x610   : > { %v3514_v6 = vadd.f32 %v1667_v46, %v1317_v40 }
 0x612   : > { %v1700_v32 = vsel %vm722_vm0, %v3514_v6, 0.0 }
 0x613   : > { %1701 = vadd.xlane.f32.xlu2 %v1700_v32 }
 0x617   : > { %v1669_v19 = vpop.f32.mrf.mxu3 }
 0x618   : > { %v3527_v24 = vadd.f32 %v1669_v19, %v3425_v55 }
 0x61a   : > { %v1703_v53 = vsel %vm722_vm0, %v3527_v24, 0.0 }
 0x656   : > { %v1684_v14 = vpop.xlane.xlu0 %1683 }
 0x657   : > { %v1706_v12 = vmul.f32 %v1684_v14, %v2991_v22 }
 0x659   : > { %v3520_v45 = vsub.f32 %v3464_v13, %v1706_v12 }
 0x65b   : > { %v1722_v15 = vmul.f32 %v3520_v45, %v3520_v45 }
 0x65d   : > { %v1730_v17 = vsel %vm722_vm0, %v1722_v15, 0.0 }
 0x65e   : > { %v1687_v20 = vpop.xlane.xlu1 %1686  ;;  %1731 = vadd.xlane.f32.xlu0 %v1730_v17 }
 0x65f   : > { %v1707_v21 = vmul.f32 %v1687_v20, %v2991_v22 }
 0x661   : > { %v3530_v27 = vsub.f32 %v3471_v23, %v1707_v21 }
 0x663   : > { %v1723_v50 = vmul.f32 %v3530_v27, %v3530_v27 }
 0x665   : > { %v1733_v51 = vsel %vm722_vm0, %v1723_v50, 0.0 }
 0x666   : > { %1734 = vadd.xlane.f32.xlu1 %v1733_v51  ;;  %v1690_v58 = vpop.xlane.xlu2 %1689  ;;  %1704 = vadd.xlane.f32.xlu0 %v1703_v53 }
 0x667   : > { %v1708_v43 = vmul.f32 %v1690_v58, %v2991_v22 }
 0x669   : > { %v3539_v59 = vsub.f32 %v3478_v7, %v1708_v43 }
 0x66b   : > { %v1724_v55 = vmul.f32 %v3539_v59, %v3539_v59 }
 0x66d   : > { %v1736_v16 = vsel %vm722_vm0, %v1724_v55, 0.0 }
 0x66e   : > { %v1693_v60 = vpop.xlane.xlu0 %1692  ;;  %1737 = vadd.xlane.f32.xlu1 %v1736_v16 }
 0x66f   : > { %v1709_v36 = vmul.f32 %v1693_v60, %v2991_v22 }
 0x671   : > { %v3546_v39 = vsub.f32 %v3485_v38, %v1709_v36 }
 0x673   : > { %v1725_v61 = vmul.f32 %v3546_v39, %v3546_v39 }
 0x675   : > { %v1739_v62 = vsel %vm722_vm0, %v1725_v61, 0.0 }
 0x676   : > { %v1696_v47 = vpop.xlane.xlu1 %1695  ;;  %1740 = vadd.xlane.f32.xlu2 %v1739_v62  ;;  %v3593_v62 = vld [vmem:[%s646_s22] ss:$0 sm:$0xff] }
 0x677   : > { %v1710_v63 = vmul.f32 %v1696_v47, %v2991_v22 }
 0x679   : > { %v3553_v0 = vsub.f32 %v3492_v49, %v1710_v63 }
 0x67b   : > { %v1726_v1 = vmul.f32 %v3553_v0, %v3553_v0 }
 0x67d   : > { %v1742_v18 = vsel %vm722_vm0, %v1726_v1, 0.0 }
 0x67e   : > { %v1699_v3 = vpop.xlane.xlu2 %1698  ;;  %1743 = vadd.xlane.f32.xlu0 %v1742_v18 }
 0x67f   : > { %v1711_v48 = vmul.f32 %v1699_v3, %v2991_v22 }
 0x681   : > { %v3560_v4 = vsub.f32 %v3499_v56, %v1711_v48 }
 0x683   : > { %v1727_v31 = vmul.f32 %v3560_v4, %v3560_v4 }
 0x685   : > { %v1745_v5 = vsel %vm722_vm0, %v1727_v31, 0.0  ;;  %v3601_v31 = vld [vmem:[%s649_s24] ss:$0 sm:$0xff]  ;;  %s2610_s24 = sshll.u32 %s3942_s26, 7 }
 0x686   : > { %1746 = vadd.xlane.f32.xlu1 %v1745_v5  ;;  %v1702_v30 = vpop.xlane.xlu2 %1701  ;;  %s3649_s21 = scalar_lea.vmem %s3916_s11, %s2610_s24 }
 0x687   : > { %v1712_v37 = vmul.f32 %v1702_v30, %v2991_v22 }
 0x689   : > { %v3567_v34 = vsub.f32 %v3514_v6, %v1712_v37 }
 0x68b   : > { %v1728_v26 = vmul.f32 %v3567_v34, %v3567_v34 }
 0x68d   : > { %v1748_v44 = vsel %vm722_vm0, %v1728_v26, 0.0 }
 0x68e   : > { %1749 = vadd.xlane.f32.xlu2 %v1748_v44 }
 0x6d1   : > { %v1732_v33 = vpop.xlane.xlu0 %1731 }
 0x6d2   : > { %v1754_v41 = vmul.f32 %v1732_v33, %v2991_v22 }
 0x6d4   : > { %v1762_v28 = vadd.f32 1e-05, %v1754_v41 }
 0x6d6   : > { %2752 = vrsqrt.f32 %v1762_v28  ;;  %vm1776_vm14 = vweird.f32 %v1762_v28 }
 0x6d9   : > { %v1735_v10 = vpop.xlane.xlu1 %1734  ;;  %v1705_v29 = vpop.xlane.xlu0 %1704 }
 0x6da   : > { %v1755_v52 = vmul.f32 %v1735_v10, %v2991_v22  ;;  %v1713_v11 = vmul.f32 %v1705_v29, %v2991_v22 }
 0x6dc   : > { %v2753_v57 = vpop.eup %2752  ;;  %v1763_v42 = vadd.f32 1e-05, %v1755_v52  ;;  %v3581_v40 = vsub.f32 %v3527_v24, %v1713_v11 }
 0x6dd   : > { %v1771_v46 = vmul.f32 %v2753_v57, %v1762_v28  ;;  %vm1777_vm13 = vweird.f32 %v2753_v57 }
 0x6de   : > { %2754 = vrsqrt.f32 %v1763_v42  ;;  %v1729_v32 = vmul.f32 %v3581_v40, %v3581_v40  ;;  %vm1778_vm15 = vmor %vm1776_vm14, %vm1777_vm13  ;;  %vm1786_vm2 = vweird.f32 %v1763_v42 }
 0x6df   : > { %v1772_v14 = vmul.f32 %v2753_v57, %v1771_v46 }
 0x6e0   : > { %v1751_v12 = vsel %vm722_vm0, %v1729_v32, 0.0 }
 0x6e1   : > { %v1773_v15 = vmul.f32 0.5, %v1772_v14  ;;  %v1738_v17 = vpop.xlane.xlu1 %1737  ;;  %1752 = vadd.xlane.f32.xlu0 %v1751_v12 }
 0x6e2   : > { %v1756_v19 = vmul.f32 %v1738_v17, %v2991_v22 }
 0x6e3   : > { %v1774_v20 = vsub.f32 1.5, %v1773_v15 }
 0x6e4   : > { %v2755_v21 = vpop.eup %2754  ;;  %v1764_v50 = vadd.f32 1e-05, %v1756_v19 }
 0x6e5   : > { %v1775_v51 = vmul.f32 %v2753_v57, %v1774_v20  ;;  %v1781_v53 = vmul.f32 %v2755_v21, %v1763_v42  ;;  %vm1787_vm1 = vweird.f32 %v2755_v21 }
 0x6e6   : > { %2756 = vrsqrt.f32 %v1764_v50  ;;  %vm1788_vm3 = vmor %vm1786_vm2, %vm1787_vm1  ;;  %vm1796_vm6 = vweird.f32 %v1764_v50 }
 0x6e7   : > { %v1782_v58 = vmul.f32 %v2755_v21, %v1781_v53  ;;  %v1779_v43 = vsel %vm1778_vm15, %v2753_v57, %v1775_v51 }
 0x6e8   : > { %v1850_v47 = vmul.f32 %v1779_v43, %v3520_v45 }
 0x6e9   : > { %v1783_v55 = vmul.f32 0.5, %v1782_v58  ;;  %v1741_v16 = vpop.xlane.xlu2 %1740 }
 0x6ea   : > { %v1757_v60 = vmul.f32 %v1741_v16, %v2991_v22  ;;  %v1861_v5 = vmul.f32 %v3593_v62, %v1850_v47 }
 0x6eb   : > { %v1784_v36 = vsub.f32 1.5, %v1783_v55 }
 0x6ec   : > { %v2757_v61 = vpop.eup %2756  ;;  %v1765_v63 = vadd.f32 1e-05, %v1757_v60  ;;  %v1872_v54 = vadd.f32 %v3601_v31, %v1861_v5 }
 0x6ed   : > { %v1785_v1 = vmul.f32 %v2755_v21, %v1784_v36  ;;  %v1791_v18 = vmul.f32 %v2757_v61, %v1764_v50  ;;  %vm1797_vm4 = vweird.f32 %v2757_v61 }
 0x6ee   : > { %2758 = vrsqrt.f32 %v1765_v63  ;;  %vm1798_vm7 = vmor %vm1796_vm6, %vm1797_vm4  ;;  %vm1806_vm5 = vweird.f32 %v1765_v63 }
 0x6ef   : > { %v1789_v3 = vsel %vm1788_vm3, %v2755_v21, %v1785_v1  ;;  %v1792_v48 = vmul.f32 %v2757_v61, %v1791_v18 }
 0x6f0   : > { %v1851_v30 = vmul.f32 %v1789_v3, %v3530_v27 }
 0x6f1   : > { %v1793_v45 = vmul.f32 0.5, %v1792_v48  ;;  %v1744_v37 = vpop.xlane.xlu0 %1743 }
 0x6f2   : > { %v1862_v26 = vmul.f32 %v3593_v62, %v1851_v30  ;;  %v1758_v44 = vmul.f32 %v1744_v37, %v2991_v22 }
 0x6f3   : > { %v1794_v25 = vsub.f32 1.5, %v1793_v45 }
 0x6f4   : > { %v2759_v8 = vpop.eup %2758  ;;  %v1873_v33 = vadd.f32 %v3601_v31, %v1862_v26  ;;  %v1766_v41 = vadd.f32 1e-05, %v1758_v44 }
 0x6f5   : > { %v1795_v2 = vmul.f32 %v2757_v61, %v1794_v25  ;;  %v1801_v27 = vmul.f32 %v2759_v8, %v1765_v63  ;;  %vm1807_vm8 = vweird.f32 %v2759_v8 }
 0x6f6   : > { %2760 = vrsqrt.f32 %v1766_v41  ;;  %v1880_v9 = vpack.c.bf16 %v1873_v33, %v1872_v54  ;;  %vm1808_vm9 = vmor %vm1806_vm5, %vm1807_vm8  ;;  %vm1816_vm11 = vweird.f32 %v1766_v41 }
 0x6f7   : > { %v1802_v28 = vmul.f32 %v2759_v8, %v1801_v27  ;;  %v1799_v35 = vsel %vm1798_vm7, %v2757_v61, %v1795_v2 }
 0x6f8   : > { %2600 = vmatmul.msk.bf16.vlgmr.msra.gmra.mxu0 %vm722_vm0, %v1880_v9  ;;  %v1852_v42 = vmul.f32 %v1799_v35, %v3539_v59 }
 0x6f9   : > { %v1803_v10 = vmul.f32 0.5, %v1802_v28  ;;  %v1747_v29 = vpop.xlane.xlu1 %1746 }
 0x6fa   : > { %v1759_v52 = vmul.f32 %v1747_v29, %v2991_v22  ;;  %v1863_v19 = vmul.f32 %v3593_v62, %v1852_v42 }
 0x6fb   : > { %v1804_v11 = vsub.f32 1.5, %v1803_v10 }
 0x6fc   : > { %v2761_v57 = vpop.eup %2760  ;;  %v1767_v46 = vadd.f32 1e-05, %v1759_v52  ;;  %v1874_v53 = vadd.f32 %v3601_v31, %v1863_v19 }
 0x6fd   : > { %v1805_v32 = vmul.f32 %v2759_v8, %v1804_v11  ;;  %v1811_v14 = vmul.f32 %v2761_v57, %v1766_v41  ;;  %vm1817_vm10 = vweird.f32 %v2761_v57 }
 0x6fe   : > { %2762 = vrsqrt.f32 %v1767_v46  ;;  %vm1818_vm12 = vmor %vm1816_vm11, %vm1817_vm10  ;;  %vm1826_vm14 = vweird.f32 %v1767_v46 }
 0x6ff   : > { %v1809_v12 = vsel %vm1808_vm9, %v2759_v8, %v1805_v32  ;;  %v1812_v15 = vmul.f32 %v2761_v57, %v1811_v14 }
 0x700   : > { %v1853_v17 = vmul.f32 %v1809_v12, %v3546_v39 }
 0x701   : > { %v1813_v20 = vmul.f32 0.5, %v1812_v15  ;;  %v1750_v45 = vpop.xlane.xlu2 %1749  ;;  %v2274_v15 = vld [vmem:[%s3649_s21 + $0x78] sm:$0xff] }
 0x702   : > { %v1864_v21 = vmul.f32 %v3593_v62, %v1853_v17 }
 0x703   : > { %v1814_v50 = vsub.f32 1.5, %v1813_v20 }
 0x704   : > { %v2763_v51 = vpop.eup %2762  ;;  %v1875_v59 = vadd.f32 %v3601_v31, %v1864_v21  ;;  %v2271_v21 = vld [vmem:[%s3649_s21 + $0x60] sm:$0xff] }
 0x705   : > { %v1815_v58 = vmul.f32 %v2761_v57, %v1814_v50  ;;  %v1821_v43 = vmul.f32 %v2763_v51, %v1767_v46  ;;  %vm1827_vm13 = vweird.f32 %v2763_v51  ;;  %v2272_v50 = vld [vmem:[%s3649_s21 + $0x68] sm:$0xff] }
 0x706   : > { %v1881_v55 = vpack.c.bf16 %v1875_v59, %v1874_v53  ;;  %vm1828_vm15 = vmor %vm1826_vm14, %vm1827_vm13  ;;  %v2281_v53 = vpack.c.bf16 %v2272_v50, %v2271_v21 }
 0x707   : > { %v1822_v16 = vmul.f32 %v2763_v51, %v1821_v43  ;;  %v1819_v39 = vsel %vm1818_vm12, %v2761_v57, %v1815_v58 }
 0x708   : > { %2601 = vmatmul.msk.bf16.gmra.mxu0 %vm722_vm0, %v1881_v55  ;;  %v1854_v61 = vmul.f32 %v1819_v39, %v3553_v0  ;;  %v1760_v0 = vmul.f32 %v1750_v45, %v2991_v22  ;;  %v2269_v55 = vld [vmem:[%s3649_s21 + $0x50] sm:$0xff] }
 0x709   : > { %v1823_v60 = vmul.f32 0.5, %v1822_v16  ;;  %v2270_v16 = vld [vmem:[%s3649_s21 + $0x58] sm:$0xff]  ;;  %v2265_v45 = vld [vmem:[%s3649_s21 + $0x30] sm:$0xff] }
 0x70a   : > { %v1865_v18 = vmul.f32 %v3593_v62, %v1854_v61  ;;  %v1768_v37 = vadd.f32 1e-05, %v1760_v0  ;;  %v2267_v61 = vld [vmem:[%s3649_s21 + $0x40] sm:$0xff]  ;;  %v2266_v0 = vld [vmem:[%s3649_s21 + $0x38] sm:$0xff] }
 0x70b   : > { %v1824_v36 = vsub.f32 1.5, %v1823_v60  ;;  %v2280_v60 = vpack.c.bf16 %v2270_v16, %v2269_v55 }
 0x70c   : > { %v1876_v48 = vadd.f32 %v3601_v31, %v1865_v18  ;;  %2764 = vrsqrt.f32 %v1768_v37  ;;  %vm1836_vm2 = vweird.f32 %v1768_v37 }
 0x70d   : > { %v1825_v47 = vmul.f32 %v2763_v51, %v1824_v36 }
 0x70f   : > { %v1829_v63 = vsel %vm1828_vm15, %v2763_v51, %v1825_v47  ;;  %v2268_v47 = vld [vmem:[%s3649_s21 + $0x48] sm:$0xff] }
 0x710   : > { %v1855_v1 = vmul.f32 %v1829_v63, %v3560_v4  ;;  %v2279_v63 = vpack.c.bf16 %v2268_v47, %v2267_v61 }
 0x712   : > { %v1866_v3 = vmul.f32 %v3593_v62, %v1855_v1  ;;  %v2765_v26 = vpop.eup %2764 }
 0x713   : > { %v1831_v44 = vmul.f32 %v2765_v26, %v1768_v37  ;;  %vm1837_vm1 = vweird.f32 %v2765_v26 }
 0x714   : > { %v1877_v5 = vadd.f32 %v3601_v31, %v1866_v3  ;;  %vm1838_vm3 = vmor %vm1836_vm2, %vm1837_vm1 }
 0x715   : > { %v1832_v25 = vmul.f32 %v2765_v26, %v1831_v44 }
 0x716   : > { %v1882_v30 = vpack.c.bf16 %v1877_v5, %v1876_v48 }
 0x717   : > { %v1833_v33 = vmul.f32 0.5, %v1832_v25 }
 0x718   : > { %2602 = vmatmul.msk.bf16.gmra.mxu0 %vm722_vm0, %v1882_v30 }
 0x719   : > { %v1834_v41 = vsub.f32 1.5, %v1833_v33  ;;  %v2263_v33 = vld [vmem:[%s3649_s21 + $0x20] sm:$0xff] }
 0x71b   : > { %v1835_v27 = vmul.f32 %v2765_v26, %v1834_v41  ;;  %v2264_v41 = vld [vmem:[%s3649_s21 + $0x28] sm:$0xff] }
 0x71d   : > { %v1839_v35 = vsel %vm1838_vm3, %v2765_v26, %v1835_v27  ;;  %v2278_v26 = vpack.c.bf16 %v2266_v0, %v2265_v45 }
 0x71e   : > { %v1856_v52 = vmul.f32 %v1839_v35, %v3567_v34  ;;  %v3643_v34 = vld [vmem:[%s657_s23] ss:$0 sm:$0xff]  ;;  %s665_s23 = scalar_lea.vmem %s3917_s12, %s3942_s26 }
 0x720   : > { %v1867_v42 = vmul.f32 %v3593_v62, %v1856_v52 }
 0x722   : > { %v1878_v32 = vadd.f32 %v3601_v31, %v1867_v42  ;;  %v2262_v42 = vld [vmem:[%s3649_s21 + $0x18] sm:$0xff] }
 0x754   : > { %v1753_v4 = vpop.xlane.xlu0 %1752 }
 0x755   : > { %v1761_v8 = vmul.f32 %v1753_v4, %v2991_v22 }
 0x757   : > { %v1769_v54 = vadd.f32 1e-05, %v1761_v8 }
 0x759   : > { %2766 = vrsqrt.f32 %v1769_v54  ;;  %vm1846_vm6 = vweird.f32 %v1769_v54 }
 0x75f   : > { %v2767_v2 = vpop.eup %2766 }
 0x760   : > { %v1841_v9 = vmul.f32 %v2767_v2, %v1769_v54  ;;  %vm1847_vm4 = vweird.f32 %v2767_v2 }
 0x761   : > { %vm1848_vm7 = vmor %vm1846_vm6, %vm1847_vm4 }
 0x762   : > { %v1842_v28 = vmul.f32 %v2767_v2, %v1841_v9 }
 0x764   : > { %v1843_v10 = vmul.f32 0.5, %v1842_v28  ;;  %v2277_v28 = vpack.c.bf16 %v2264_v41, %v2263_v33 }
 0x766   : > { %v1844_v29 = vsub.f32 1.5, %v1843_v10 }
 0x768   : > { %v1845_v22 = vmul.f32 %v2767_v2, %v1844_v29 }
 0x76a   : > { %v1849_v11 = vsel %vm1848_vm7, %v2767_v2, %v1845_v22 }
 0x76b   : > { %v1857_v57 = vmul.f32 %v1849_v11, %v3581_v40 }
 0x76d   : > { %v1868_v46 = vmul.f32 %v3593_v62, %v1857_v57  ;;  %v2261_v57 = vld [vmem:[%s3649_s21 + $0x10] sm:$0xff] }
 0x76f   : > { %v1879_v14 = vadd.f32 %v3601_v31, %v1868_v46  ;;  %v2273_v31 = vld [vmem:[%s3649_s21 + $0x70] sm:$0xff] }
 0x770   : > { %v2282_v19 = vpack.c.bf16 %v2274_v15, %v2273_v31  ;;  %v2276_v15 = vpack.c.bf16 %v2262_v42, %v2261_v57 }
 0x771   : > { %v1883_v12 = vpack.c.bf16 %v1879_v14, %v1878_v32 }
 0x772   : > { %2287 = vmatpush.bf16.msra.mxu1 %v2282_v19 }
 0x773   : > { %2603 = vmatmul.msk.bf16.gmra.mxu0 %vm722_vm0, %v1883_v12 }
 0x775   : > { %v1915_v40 = vpop.f32.mrf.mxu0 }
 0x776   : > { %v3652_v62 = vadd.f32 %v3643_v34, %v1915_v40  ;;  %2288 = vmatpush.bf16.msra.mxu1 %v2281_v53  ;;  %v2260_v53 = vld [vmem:[%s3649_s21 + $0x8] sm:$0xff] }
 0x778   : > { %v3657_v17 = vmul.f32 0.70710677, %v3652_v62 }
 0x77a   : > { %v3660_v20 = vand.u32 2147483647, %v3657_v17  ;;  %2289 = vmatpush.bf16.msra.mxu1 %v2280_v60  ;;  %vm1951_vm2 = vcmp.ge.f32.partialorder %v3657_v17, 0.0 }
 0x77c   : > { %v1975_v51 = vmul.f32 0.3275911, %v3660_v20  ;;  %v2183_v11 = vsub.f32 0.0, %v3660_v20 }
 0x77d   : > { %v1917_v59 = vpop.f32.mrf.mxu0 }
 0x77e   : > { %v1983_v58 = vadd.f32 1.0, %v1975_v51  ;;  %v3666_v43 = vadd.f32 %v3643_v34, %v1917_v59  ;;  %2290 = vmatpush.bf16.msra.mxu1 %v2279_v63  ;;  %v2191_v21 = vmul.f32 %v2183_v11, %v3660_v20  ;;  %v2259_v51 = vld [vmem:[%s3649_s21] sm:$0xff] }
 0x77f   : > { %v2275_v55 = vpack.c.bf16 %v2260_v53, %v2259_v51 }
 0x780   : > { %2768 = vrcp.f32 %v1983_v58  ;;  %v3671_v39 = vmul.f32 0.70710677, %v3666_v43  ;;  %v2002_v25 = vand.u32 2147483648, %v1983_v58  ;;  %v2000_v54 = vand.u32 2147483647, %v1983_v58 }
 0x781   : > { %vm1996_vm5 = vweird.f32 %v1983_v58  ;;  %v2199_v45 = vmul.f32 1.442695, %v2191_v21 }
 0x782   : > { %v3674_v36 = vand.u32 2147483647, %v3671_v39  ;;  %2291 = vmatpush.bf16.msra.mxu1 %v2278_v26  ;;  %v2003_v35 = vor.u32 1.1754944e-38, %v2002_v25  ;;  %vm2001_vm10 = vcmp.eq.f32.partialorder %v2000_v54, 8.507059e+37  ;;  %vm1952_vm7 = vcmp.ge.f32.partialorder %v3671_v39, 0.0 }
 0x784   : > { %v1976_v1 = vmul.f32 0.3275911, %v3674_v36  ;;  %v2184_v60 = vsub.f32 0.0, %v3674_v36 }
 0x785   : > { %v1920_v18 = vpop.f32.mrf.mxu0 }
 0x786   : > { %v2769_v3 = vpop.eup %2768  ;;  %v3680_v48 = vadd.f32 %v3643_v34, %v1920_v18  ;;  %v3682_v30 = vadd.f32 1.0, %v1976_v1  ;;  %2292 = vmatpush.bf16.msra.mxu1 %v2277_v28  ;;  %v2192_v33 = vmul.f32 %v2184_v60, %v3674_v36 }
 0x787   : > { %v1992_v5 = vmul.f32 %v2769_v3, %v1983_v58  ;;  %vm1997_vm8 = vweird.f32 %v2769_v3 }
 0x788   : > { %v3687_v37 = vmul.f32 0.70710677, %v3680_v48  ;;  %2770 = vrcp.f32 %v3682_v30  ;;  %vm1998_vm9 = vmor %vm1996_vm5, %vm1997_vm8  ;;  %v2015_v40 = vand.u32 2147483647, %v3682_v30  ;;  %v2017_v50 = vand.u32 2147483648, %v3682_v30 }
 0x789   : > { %v1993_v44 = vsub.f32 1.0, %v1992_v5  ;;  %vm2011_vm12 = vweird.f32 %v3682_v30  ;;  %v2201_v57 = vmul.f32 1.442695, %v2192_v33 }
 0x78a   : > { %v3691_v4 = vand.u32 2147483647, %v3687_v37  ;;  %2293 = vmatpush.bf16.msra.mxu1 %v2276_v15  ;;  %vm2016_vm14 = vcmp.eq.f32.partialorder %v2015_v40, 8.507059e+37 }
 0x78b   : > { %v1994_v8 = vmul.f32 %v2769_v3, %v1993_v44 }
 0x78c   : > { %v1977_v2 = vmul.f32 0.3275911, %v3691_v4 }
 0x78d   : > { %v1995_v27 = vadd.f32 %v2769_v3, %v1994_v8  ;;  %v1922_v9 = vpop.f32.mrf.mxu0 }
 0x78e   : > { %v3696_v10 = vadd.f32 1.0, %v1977_v2  ;;  %v3699_v29 = vadd.f32 %v3643_v34, %v1922_v9  ;;  %v2771_v52 = vpop.eup %2770  ;;  %2294 = vmatpush.bf16.msra.mxu1 %v2275_v55 }
 0x78f   : > { %v1999_v22 = vsel %vm1998_vm9, %v2769_v3, %v1995_v27  ;;  %v2007_v32 = vmul.f32 %v2771_v52, %v3682_v30  ;;  %vm2012_vm11 = vweird.f32 %v2771_v52  ;;  %v2018_v3 = vor.u32 1.1754944e-38, %v2017_v50 }
 0x790   : > { %v3704_v46 = vsel %vm2001_vm10, %v2003_v35, %v1999_v22  ;;  %2772 = vrcp.f32 %v3696_v10  ;;  %v3711_v31 = vmul.f32 0.70710677, %v3699_v29  ;;  %vm2013_vm13 = vmor %vm2011_vm12, %vm2012_vm11  ;;  %v2032_v42 = vand.u32 2147483648, %v3696_v10 }
 0x791   : > { %v2111_v14 = vmul.f32 1.0614054, %v3704_v46  ;;  %v2008_v12 = vsub.f32 1.0, %v2007_v32  ;;  %vm2026_vm1 = vweird.f32 %v3696_v10 }
 0x792   : > { %v3718_v58 = vand.u32 2147483647, %v3711_v31 }
 0x793   : > { %v2119_v19 = vadd.f32 -1.4531521, %v2111_v14  ;;  %v2009_v59 = vmul.f32 %v2771_v52, %v2008_v12  ;;  %v2030_v12 = vand.u32 2147483647, %v3696_v10 }
 0x794   : > { %v1978_v20 = vmul.f32 0.3275911, %v3718_v58 }
 0x795   : > { %v2127_v16 = vmul.f32 %v2119_v19, %v3704_v46  ;;  %v1925_v61 = vpop.f32.mrf.mxu0  ;;  %v2010_v63 = vadd.f32 %v2771_v52, %v2009_v59  ;;  %v2185_v19 = vsub.f32 0.0, %v3691_v4  ;;  %vm2031_vm4 = vcmp.eq.f32.partialorder %v2030_v12, 8.507059e+37 }
 0x796   : > { %v2773_v47 = vpop.eup %2772  ;;  %v3725_v1 = vadd.f32 %v3643_v34, %v1925_v61  ;;  %v3728_v26 = vadd.f32 1.0, %v1978_v20  ;;  %v3772_v20 = vmul.f32 0.5, %v3652_v62 }
 0x797   : > { %v2135_v18 = vadd.f32 1.4214138, %v2127_v16  ;;  %v2022_v5 = vmul.f32 %v2773_v47, %v3696_v10  ;;  %v2014_v0 = vsel %vm2013_vm13, %v2771_v52, %v2010_v63  ;;  %vm2027_vm15 = vweird.f32 %v2773_v47 }
 0x798   : > { %v3731_v25 = vsel %vm2016_vm14, %v2018_v3, %v2014_v0  ;;  %v3734_v8 = vmul.f32 0.70710677, %v3725_v1  ;;  %2774 = vrcp.f32 %v3728_v26  ;;  %vm3758_vm3 = vmor %vm2026_vm1, %vm2027_vm15  ;;  %v2033_v16 = vor.u32 1.1754944e-38, %v2032_v42 }
 0x799   : > { %v2143_v44 = vmul.f32 %v2135_v18, %v3704_v46  ;;  %v2023_v30 = vsub.f32 1.0, %v2022_v5  ;;  %v2112_v54 = vmul.f32 1.0614054, %v3731_v25  ;;  %2776 = vpow2.f32 %v2199_v45 }
 0x79a   : > { %v3740_v27 = vand.u32 2147483647, %v3734_v8  ;;  %v2193_v5 = vmul.f32 %v2185_v19, %v3691_v4  ;;  %v2045_v62 = vand.u32 2147483647, %v3728_v26  ;;  %vm2041_vm8 = vweird.f32 %v3728_v26 }
 0x79b   : > { %v2151_v41 = vadd.f32 -0.28449672, %v2143_v44  ;;  %v2024_v2 = vmul.f32 %v2773_v47, %v2023_v30  ;;  %v2120_v9 = vadd.f32 -1.4531521, %v2112_v54  ;;  %v2047_v54 = vand.u32 2147483648, %v3728_v26 }
 0x79c   : > { %v1979_v35 = vmul.f32 0.3275911, %v3740_v27  ;;  %vm2046_vm9 = vcmp.eq.f32.partialorder %v2045_v62, 8.507059e+37 }
 0x79d   : > { %v2159_v28 = vmul.f32 %v2151_v41, %v3704_v46  ;;  %v1927_v52 = vpop.f32.mrf.mxu0  ;;  %v2025_v22 = vadd.f32 %v2773_v47, %v2024_v2  ;;  %v2128_v11 = vmul.f32 %v2120_v9, %v3731_v25  ;;  %v1936_v9 = vmul.f32 0.5, %v3666_v43 }
 0x79e   : > { %v3746_v36 = vadd.f32 %v3643_v34, %v1927_v52  ;;  %v3750_v14 = vadd.f32 1.0, %v1979_v35  ;;  %v2775_v40 = vpop.eup %2774  ;;  %v2203_v35 = vmul.f32 1.442695, %v2193_v5  ;;  %v2186_v52 = vsub.f32 0.0, %v3718_v58 }
 0x79f   : > { %v2167_v32 = vadd.f32 0.2548296, %v2159_v28  ;;  %v2136_v15 = vadd.f32 1.4214138, %v2128_v11  ;;  %v2037_v53 = vmul.f32 %v2775_v40, %v3728_v26  ;;  %v2029_v10 = vsel %vm3758_vm3, %v2773_v47, %v2025_v22  ;;  %v2777_v59 = vpop.eup %2776 }
 0x7a0   : > { %v3756_v21 = vmul.f32 0.70710677, %v3746_v36  ;;  %2778 = vrcp.f32 %v3750_v14  ;;  %v3777_v47 = vsel %vm2031_vm4, %v2033_v16, %v2029_v10  ;;  %vm2042_vm6 = vweird.f32 %v2775_v40 }
 0x7a1   : > { %v2175_v51 = vmul.f32 %v2167_v32, %v3704_v46  ;;  %v2144_v55 = vmul.f32 %v2136_v15, %v3731_v25  ;;  %v2038_v61 = vsub.f32 1.0, %v2037_v53  ;;  %v2849_v46 = vmov -1.0   ;;  %vm2043_vm5 = vmor %vm2041_vm8, %vm2042_vm6 }
 0x7a2   : > { %v3769_v63 = vand.u32 2147483647, %v3756_v21  ;;  %v1959_v18 = vsel %vm1951_vm2, 1.0, %v2849_v46  ;;  %2780 = vpow2.f32 %v2201_v57  ;;  %v2113_v2 = vmul.f32 1.0614054, %v3777_v47 }
 0x7a3   : > { %v2215_v60 = vmul.f32 %v2777_v59, %v2175_v51  ;;  %v2152_v3 = vadd.f32 -0.28449672, %v2144_v55  ;;  %v2039_v45 = vmul.f32 %v2775_v40, %v2038_v61  ;;  %v2062_v57 = vand.u32 2147483648, %v3750_v14 }
 0x7a4   : > { %v1980_v0 = vmul.f32 0.3275911, %v3769_v63  ;;  %v2048_v12 = vor.u32 1.1754944e-38, %v2047_v54  ;;  %v2121_v15 = vadd.f32 -1.4531521, %v2113_v2  ;;  %v1960_v51 = vsel %vm1952_vm7, 1.0, %v2849_v46 }
 0x7a5   : > { %v2223_v44 = vsub.f32 1.0, %v2215_v60  ;;  %v2160_v30 = vmul.f32 %v2152_v3, %v3731_v25  ;;  %v2040_v17 = vadd.f32 %v2775_v40, %v2039_v45  ;;  %v2060_v26 = vand.u32 2147483647, %v3750_v14 }
 0x7a6   : > { %v2779_v33 = vpop.eup %2778  ;;  %v3784_v41 = vadd.f32 1.0, %v1980_v0  ;;  %v2129_v53 = vmul.f32 %v2121_v15, %v3777_v47  ;;  %vm2056_vm11 = vweird.f32 %v3750_v14  ;;  %v2194_v60 = vmul.f32 %v2186_v52, %v3718_v58 }
 0x7a7   : > { %v2168_v4 = vadd.f32 0.2548296, %v2160_v30  ;;  %v2052_v28 = vmul.f32 %v2779_v33, %v3750_v14  ;;  %v2231_v42 = vmul.f32 %v2223_v44, %v1959_v18  ;;  %v2044_v32 = vsel %vm2043_vm5, %v2775_v40, %v2040_v17 }
 0x7a8   : > { %2782 = vrcp.f32 %v3784_v41  ;;  %v2781_v43 = vpop.eup %2780  ;;  %vm2057_vm10 = vweird.f32 %v2779_v33  ;;  %v2063_v61 = vor.u32 1.1754944e-38, %v2062_v57  ;;  %v2137_v18 = vadd.f32 1.4214138, %v2129_v53 }
 0x7a9   : > { %v2176_v22 = vmul.f32 %v2168_v4, %v3731_v25  ;;  %v2053_v11 = vsub.f32 1.0, %v2052_v28  ;;  %2784 = vpow2.f32 %v2203_v35  ;;  %v3799_v25 = vsel %vm2046_vm9, %v2048_v12, %v2044_v32  ;;  %vm2058_vm12 = vmor %vm2056_vm11, %vm2057_vm10 }
 0x7aa   : > { %v2114_v40 = vmul.f32 1.0614054, %v3799_v25  ;;  %v2239_v16 = vadd.f32 1.0, %v2231_v42  ;;  %vm2061_vm13 = vcmp.eq.f32.partialorder %v2060_v26, 8.507059e+37  ;;  %v2187_v0 = vsub.f32 0.0, %v3740_v27 }
 0x7ab   : > { %v2216_v19 = vmul.f32 %v2781_v43, %v2176_v22  ;;  %v2054_v50 = vmul.f32 %v2779_v33, %v2053_v11  ;;  %v2145_v44 = vmul.f32 %v2137_v18, %v3777_v47  ;;  %v2075_v54 = vand.u32 2147483647, %v3784_v41 }
 0x7ac   : > { %v2122_v14 = vadd.f32 -1.4531521, %v2114_v40  ;;  %v2077_v2 = vand.u32 2147483648, %v3784_v41  ;;  %v2205_v11 = vmul.f32 1.442695, %v2194_v60  ;;  %vm2071_vm15 = vweird.f32 %v3784_v41 }
 0x7ad   : > { %v2224_v10 = vsub.f32 1.0, %v2216_v19  ;;  %v2055_v59 = vadd.f32 %v2779_v33, %v2054_v50  ;;  %v2153_v28 = vadd.f32 -0.28449672, %v2145_v44  ;;  %vm2076_vm2 = vcmp.eq.f32.partialorder %v2075_v54, 8.507059e+37 }
 0x7ae   : > { %v2783_v55 = vpop.eup %2782  ;;  %v2130_v4 = vmul.f32 %v2122_v14, %v3799_v25  ;;  %v2078_v12 = vor.u32 1.1754944e-38, %v2077_v2  ;;  %v2188_v53 = vsub.f32 0.0, %v3769_v63  ;;  %2786 = vpow2.f32 %v2205_v11 }
 0x7af   : > { %v2232_v39 = vmul.f32 %v2224_v10, %v1960_v51  ;;  %v2059_v3 = vsel %vm2058_vm12, %v2779_v33, %v2055_v59  ;;  %v2067_v5 = vmul.f32 %v2783_v55, %v3784_v41  ;;  %v2785_v17 = vpop.eup %2784  ;;  %v2247_v33 = vmul.f32 %v2239_v16, %v3772_v20 }
 0x7b0   : > { %v3806_v45 = vsel %vm2061_vm13, %v2063_v61, %v2059_v3  ;;  %vm2072_vm14 = vweird.f32 %v2783_v55  ;;  %v2138_v57 = vadd.f32 1.4214138, %v2130_v4  ;;  %v2161_v43 = vmul.f32 %v2153_v28, %v3777_v47 }
 0x7b1   : > { %v2240_v30 = vadd.f32 1.0, %v2232_v39  ;;  %v2115_v62 = vmul.f32 1.0614054, %v3806_v45  ;;  %v2068_v58 = vsub.f32 1.0, %v2067_v5  ;;  %vm2073_vm1 = vmor %vm2071_vm15, %vm2072_vm14  ;;  %vm1953_vm3 = vcmp.ge.f32.partialorder %v3687_v37, 0.0 }
 0x7b2   : > { %v2146_v15 = vmul.f32 %v2138_v57, %v3799_v25  ;;  %v2169_v19 = vadd.f32 0.2548296, %v2161_v43  ;;  %v1961_v44 = vsel %vm1953_vm3, 1.0, %v2849_v46  ;;  %vm1954_vm4 = vcmp.ge.f32.partialorder %v3711_v31, 0.0 }
 0x7b3   : > { %v2248_v35 = vmul.f32 %v2240_v30, %v1936_v9  ;;  %v2123_v52 = vadd.f32 -1.4531521, %v2115_v62  ;;  %v2069_v22 = vmul.f32 %v2783_v55, %v2068_v58  ;;  %v2195_v9 = vmul.f32 %v2187_v0, %v3740_v27 }
 0x7b4   : > { %v2154_v10 = vadd.f32 -0.28449672, %v2146_v15  ;;  %v2177_v59 = vmul.f32 %v2169_v19, %v3777_v47  ;;  %v2196_v27 = vmul.f32 %v2188_v53, %v3769_v63  ;;  %v2787_v14 = vpop.eup %2786  ;;  %v1962_v2 = vsel %vm1954_vm4, 1.0, %v2849_v46 }
 0x7b5   : > { %v2255_v42 = vpack.c.bf16 %v2248_v35, %v2247_v33  ;;  %v2131_v20 = vmul.f32 %v2123_v52, %v3806_v45  ;;  %v2070_v32 = vadd.f32 %v2783_v55, %v2069_v22  ;;  %v2207_v18 = vmul.f32 1.442695, %v2195_v9 }
 0x7b6   : > { %v2162_v16 = vmul.f32 %v2154_v10, %v3799_v25  ;;  %v2217_v60 = vmul.f32 %v2785_v17, %v2177_v59  ;;  %v2209_v58 = vmul.f32 1.442695, %v2196_v27  ;;  %v1937_v22 = vmul.f32 0.5, %v3680_v48 }
 0x7b7   : > { %v2139_v50 = vadd.f32 1.4214138, %v2131_v20  ;;  %v2074_v26 = vsel %vm2073_vm1, %v2783_v55, %v2070_v32  ;;  %2295 = vmatmul.bf16.vlgmr.msra.gmra.mxu1 %v2255_v42  ;;  %2788 = vpow2.f32 %v2207_v18  ;;  %v1938_v11 = vmul.f32 0.5, %v3699_v29 }
 0x7b8   : > { %v2079_v51 = vsel %vm2076_vm2, %v2078_v12, %v2074_v26  ;;  %v2170_v55 = vadd.f32 0.2548296, %v2162_v16  ;;  %v2225_v3 = vsub.f32 1.0, %v2217_v60  ;;  %2790 = vpow2.f32 %v2209_v58 }
 0x7b9   : > { %v2147_v41 = vmul.f32 %v2139_v50, %v3806_v45  ;;  %v2116_v40 = vmul.f32 1.0614054, %v2079_v51  ;;  %vm1955_vm6 = vcmp.ge.f32.partialorder %v3734_v8, 0.0  ;;  %vm1956_vm7 = vcmp.ge.f32.partialorder %v3756_v21, 0.0 }
 0x7ba   : > { %v2178_v47 = vmul.f32 %v2170_v55, %v3799_v25  ;;  %v2233_v37 = vmul.f32 %v2225_v3, %v1961_v44  ;;  %v1963_v50 = vsel %vm1955_vm6, 1.0, %v2849_v46  ;;  %v1964_v29 = vsel %vm1956_vm7, 1.0, %v2849_v46 }
 0x7bb   : > { %v2155_v61 = vadd.f32 -0.28449672, %v2147_v41  ;;  %v2124_v39 = vadd.f32 -1.4531521, %v2116_v40  ;;  %v1939_v59 = vmul.f32 0.5, %v3725_v1 }
 0x7bc   : > { %v2218_v54 = vmul.f32 %v2787_v14, %v2178_v47  ;;  %v2241_v28 = vadd.f32 1.0, %v2233_v37 }
 0x7bd   : > { %v2163_v5 = vmul.f32 %v2155_v61, %v3806_v45  ;;  %v2132_v0 = vmul.f32 %v2124_v39, %v2079_v51  ;;  %v2789_v35 = vpop.eup %2788 }
 0x7be   : > { %v2226_v33 = vsub.f32 1.0, %v2218_v54  ;;  %v2249_v42 = vmul.f32 %v2241_v28, %v1937_v22 }
 0x7bf   : > { %v2171_v30 = vadd.f32 0.2548296, %v2163_v5  ;;  %v2140_v62 = vadd.f32 1.4214138, %v2132_v0 }
 0x7c0   : > { %v2234_v25 = vmul.f32 %v2226_v33, %v1962_v2 }
 0x7c1   : > { %v2148_v17 = vmul.f32 %v2140_v62, %v2079_v51  ;;  %v2179_v63 = vmul.f32 %v2171_v30, %v3806_v45  ;;  %v2791_v45 = vpop.eup %2790 }
 0x7c2   : > { %v2242_v57 = vadd.f32 1.0, %v2234_v25 }
 0x7c3   : > { %v2156_v4 = vadd.f32 -0.28449672, %v2148_v17  ;;  %v2219_v31 = vmul.f32 %v2789_v35, %v2179_v63 }
 0x7c4   : > { %v2250_v20 = vmul.f32 %v2242_v57, %v1938_v11 }
 0x7c5   : > { %v2164_v52 = vmul.f32 %v2156_v4, %v2079_v51  ;;  %v2227_v12 = vsub.f32 1.0, %v2219_v31 }
 0x7c6   : > { %v2256_v15 = vpack.c.bf16 %v2250_v20, %v2249_v42 }
 0x7c7   : > { %v2172_v43 = vadd.f32 0.2548296, %v2164_v52  ;;  %v2235_v9 = vmul.f32 %v2227_v12, %v1963_v50 }
 0x7c8   : > { %2300 = vmatmul.bf16.gmra.mxu1 %v2256_v15 }
 0x7c9   : > { %v2180_v32 = vmul.f32 %v2172_v43, %v2079_v51  ;;  %v2243_v10 = vadd.f32 1.0, %v2235_v9  ;;  %v1940_v51 = vmul.f32 0.5, %v3746_v36 }
 0x7cb   : > { %v2220_v19 = vmul.f32 %v2791_v45, %v2180_v32  ;;  %v2251_v41 = vmul.f32 %v2243_v10, %v1939_v59 }
 0x7cd   : > { %v2228_v48 = vsub.f32 1.0, %v2220_v19 }
 0x7cf   : > { %v2236_v26 = vmul.f32 %v2228_v48, %v1964_v29 }
 0x7d1   : > { %v2244_v53 = vadd.f32 1.0, %v2236_v26 }
 0x7d3   : > { %v2252_v8 = vmul.f32 %v2244_v53, %v1940_v51 }
 0x7d5   : > { %v2257_v40 = vpack.c.bf16 %v2252_v8, %v2251_v41 }
 0x7d8   : > { %2305 = vmatmul.bf16.gmra.mxu1 %v2257_v40 }
 0x7f0   : > { %v1930_v21 = vpop.f32.mrf.mxu0 }
 0x7f1   : > { %v3845_v16 = vadd.f32 %v3643_v34, %v1930_v21 }
 0x7f3   : > { %v3848_v60 = vmul.f32 0.70710677, %v3845_v16 }
 0x7f5   : > { %v1973_v61 = vand.u32 2147483647, %v3848_v60  ;;  %vm1957_vm15 = vcmp.ge.f32.partialorder %v3848_v60, 0.0 }
 0x7f7   : > { %v1981_v18 = vmul.f32 0.3275911, %v1973_v61  ;;  %v2189_v2 = vsub.f32 0.0, %v1973_v61 }
 0x7f8   : > { %v1932_v39 = vpop.f32.mrf.mxu0 }
 0x7f9   : > { %v1989_v27 = vadd.f32 1.0, %v1981_v18  ;;  %v3852_v36 = vadd.f32 %v3643_v34, %v1932_v39  ;;  %v2197_v11 = vmul.f32 %v2189_v2, %v1973_v61 }
 0x7fb   : > { %2792 = vrcp.f32 %v1989_v27  ;;  %v3855_v1 = vmul.f32 0.70710677, %v3852_v36  ;;  %v2092_v44 = vand.u32 2147483648, %v1989_v27  ;;  %v2090_v62 = vand.u32 2147483647, %v1989_v27 }
 0x7fc   : > { %vm2086_vm5 = vweird.f32 %v1989_v27  ;;  %v2211_v32 = vmul.f32 1.442695, %v2197_v11  ;;  %v1942_v60 = vmul.f32 0.5, %v3852_v36 }
 0x7fd   : > { %v1974_v55 = vand.u32 2147483647, %v3855_v1  ;;  %v2093_v34 = vor.u32 1.1754944e-38, %v2092_v44  ;;  %vm2091_vm10 = vcmp.eq.f32.partialorder %v2090_v62, 8.507059e+37  ;;  %vm1958_vm1 = vcmp.ge.f32.partialorder %v3855_v1, 0.0 }
 0x7fe   : > { %v2669_v1 = vld [vmem:[%s665_s23] ss:$0 sm:$0xff] }
 0x7ff   : > { %v1982_v3 = vmul.f32 0.3275911, %v1974_v55  ;;  %v2190_v12 = vsub.f32 0.0, %v1974_v55 }
 0x801   : > { %v2793_v5 = vpop.eup %2792  ;;  %v1990_v47 = vadd.f32 1.0, %v1982_v3  ;;  %v2198_v9 = vmul.f32 %v2190_v12, %v1974_v55  ;;  %v1965_v55 = vsel %vm1957_vm15, 1.0, %v2849_v46 }
 0x802   : > { %v2082_v0 = vmul.f32 %v2793_v5, %v1989_v27  ;;  %vm2087_vm8 = vweird.f32 %v2793_v5 }
 0x803   : > { %2794 = vrcp.f32 %v1990_v47  ;;  %vm2088_vm9 = vmor %vm2086_vm5, %vm2087_vm8  ;;  %v2107_v28 = vand.u32 2147483648, %v1990_v47  ;;  %v2105_v52 = vand.u32 2147483647, %v1990_v47  ;;  %vm2101_vm12 = vweird.f32 %v1990_v47 }
 0x804   : > { %v2083_v14 = vsub.f32 1.0, %v2082_v0  ;;  %2796 = vpow2.f32 %v2211_v32  ;;  %v2213_v51 = vmul.f32 1.442695, %v2198_v9 }
 0x805   : > { %v2108_v43 = vor.u32 1.1754944e-38, %v2107_v28  ;;  %vm2106_vm14 = vcmp.eq.f32.partialorder %v2105_v52, 8.507059e+37 }
 0x806   : > { %v2084_v30 = vmul.f32 %v2793_v5, %v2083_v14  ;;  %2798 = vpow2.f32 %v2213_v51 }
 0x808   : > { %v2085_v58 = vadd.f32 %v2793_v5, %v2084_v30  ;;  %v1941_v30 = vmul.f32 0.5, %v3845_v16 }
 0x809   : > { %v2795_v54 = vpop.eup %2794 }
 0x80a   : > { %v2089_v37 = vsel %vm2088_vm9, %v2793_v5, %v2085_v58  ;;  %v2097_v63 = vmul.f32 %v2795_v54, %v1990_v47  ;;  %vm2102_vm11 = vweird.f32 %v2795_v54  ;;  %v2797_v8 = vpop.eup %2796  ;;  %v1966_v47 = vsel %vm1958_vm1, 1.0, %v2849_v46 }
 0x80b   : > { %v2094_v17 = vsel %vm2091_vm10, %v2093_v34, %v2089_v37  ;;  %vm2103_vm13 = vmor %vm2101_vm12, %vm2102_vm11 }
 0x80c   : > { %v2117_v33 = vmul.f32 1.0614054, %v2094_v17  ;;  %v2098_v4 = vsub.f32 1.0, %v2097_v63  ;;  %v2799_v27 = vpop.eup %2798 }
 0x80e   : > { %v2125_v25 = vadd.f32 -1.4531521, %v2117_v33  ;;  %v2099_v35 = vmul.f32 %v2795_v54, %v2098_v4 }
 0x810   : > { %v2133_v22 = vmul.f32 %v2125_v25, %v2094_v17  ;;  %v2100_v31 = vadd.f32 %v2795_v54, %v2099_v35 }
 0x812   : > { %v2141_v57 = vadd.f32 1.4214138, %v2133_v22  ;;  %v2104_v42 = vsel %vm2103_vm13, %v2795_v54, %v2100_v31 }
 0x813   : > { %v2109_v45 = vsel %vm2106_vm14, %v2108_v43, %v2104_v42 }
 0x814   : > { %v2149_v20 = vmul.f32 %v2141_v57, %v2094_v17  ;;  %v2118_v15 = vmul.f32 1.0614054, %v2109_v45 }
 0x816   : > { %v2157_v19 = vadd.f32 -0.28449672, %v2149_v20  ;;  %v2126_v50 = vadd.f32 -1.4531521, %v2118_v15 }
 0x818   : > { %v2165_v48 = vmul.f32 %v2157_v19, %v2094_v17  ;;  %v2134_v29 = vmul.f32 %v2126_v50, %v2109_v45 }
 0x81a   : > { %v2173_v26 = vadd.f32 0.2548296, %v2165_v48  ;;  %v2142_v53 = vadd.f32 1.4214138, %v2134_v29 }
 0x81c   : > { %v2181_v10 = vmul.f32 %v2173_v26, %v2094_v17  ;;  %v2150_v59 = vmul.f32 %v2142_v53, %v2109_v45 }
 0x81e   : > { %v2221_v41 = vmul.f32 %v2797_v8, %v2181_v10  ;;  %v2158_v40 = vadd.f32 -0.28449672, %v2150_v59 }
 0x820   : > { %v2166_v21 = vmul.f32 %v2158_v40, %v2109_v45  ;;  %v2229_v61 = vsub.f32 1.0, %v2221_v41 }
 0x822   : > { %v2174_v18 = vadd.f32 0.2548296, %v2166_v21  ;;  %v2237_v3 = vmul.f32 %v2229_v61, %v1965_v55 }
 0x824   : > { %v2182_v39 = vmul.f32 %v2174_v18, %v2109_v45  ;;  %v2245_v14 = vadd.f32 1.0, %v2237_v3 }
 0x826   : > { %v2222_v5 = vmul.f32 %v2799_v27, %v2182_v39  ;;  %v2253_v58 = vmul.f32 %v2245_v14, %v1941_v30 }
 0x828   : > { %v2230_v0 = vsub.f32 1.0, %v2222_v5 }
 0x82a   : > { %v2238_v44 = vmul.f32 %v2230_v0, %v1966_v47 }
 0x82c   : > { %v2246_v62 = vadd.f32 1.0, %v2238_v44 }
 0x82e   : > { %v2254_v34 = vmul.f32 %v2246_v62, %v1942_v60 }
 0x830   : > { %v2258_v54 = vpack.c.bf16 %v2254_v34, %v2253_v58 }
 0x832   : > { %2310 = vmatmul.bf16.gmra.mxu1 %v2258_v54 }
 0x834   : > { %v2296_v37 = vpop.f32.mrf.mxu1 }
 0x835   : > { %v2297_v17 = vadd.f32 %v2669_v1, %v2296_v37 }
 0x837   : > { %v2316_v46 = vadd.f32 %v2297_v17, %v3464_v13 }
 0x839   : > { %2324 = vst.msk [vmem:[%s672_s19] sm:$0xff] %vm722_vm0, %v2316_v46 }
 0x83c   : > { %v2298_v16 = vpop.f32.mrf.mxu1 }
 0x83d   : > { %v2299_v36 = vadd.f32 %v2669_v1, %v2298_v16 }
 0x83f   : > { %v2317_v63 = vadd.f32 %v2299_v36, %v3471_v23 }
 0x841   : > { %2325 = vst.msk [vmem:[%s672_s19 + $0x8] sm:$0xff] %vm722_vm0, %v2317_v63 }
 0x845   : > { %v2301_v33 = vpop.f32.mrf.mxu1 }
 0x846   : > { %v2302_v2 = vadd.f32 %v2669_v1, %v2301_v33 }
 0x848   : > { %v2318_v4 = vadd.f32 %v2302_v2, %v3478_v7 }
 0x84a   : > { %2326 = vst.msk [vmem:[%s672_s19 + $0x10] sm:$0xff] %vm722_vm0, %v2318_v4 }
 0x84d   : > { %v2303_v25 = vpop.f32.mrf.mxu1 }
 0x84e   : > { %v2304_v28 = vadd.f32 %v2669_v1, %v2303_v25 }
 0x850   : > { %v2319_v35 = vadd.f32 %v2304_v28, %v3485_v38 }
 0x852   : > { %2327 = vst.msk [vmem:[%s672_s19 + $0x18] sm:$0xff] %vm722_vm0, %v2319_v35 }
 0x855   : > { %v2306_v13 = vpop.f32.mrf.mxu1 }
 0x856   : > { %v2307_v52 = vadd.f32 %v2669_v1, %v2306_v13 }
 0x858   : > { %v2320_v22 = vadd.f32 %v2307_v52, %v3492_v49 }
 0x85a   : > { %2328 = vst.msk [vmem:[%s672_s19 + $0x20] sm:$0xff] %vm722_vm0, %v2320_v22 }
 0x85d   : > { %v2308_v23 = vpop.f32.mrf.mxu1 }
 0x85e   : > { %v2309_v11 = vadd.f32 %v2669_v1, %v2308_v23 }
 0x860   : > { %v2321_v31 = vadd.f32 %v2309_v11, %v3499_v56 }
 0x862   : > { %2329 = vst.msk [vmem:[%s672_s19 + $0x28] sm:$0xff] %vm722_vm0, %v2321_v31 }
 0x8af   : > { %v2311_v7 = vpop.f32.mrf.mxu1 }
 0x8b0   : > { %v2312_v57 = vadd.f32 %v2669_v1, %v2311_v7 }
 0x8b2   : > { %v2322_v43 = vadd.f32 %v2312_v57, %v3514_v6 }
 0x8b4   : > { %2330 = vst.msk [vmem:[%s672_s19 + $0x30] sm:$0xff] %vm722_vm0, %v2322_v43 }
 0x8b7   : > { %v2313_v38 = vpop.f32.mrf.mxu1 }
 0x8b8   : > { %v2314_v42 = vadd.f32 %v2669_v1, %v2313_v38 }
 0x8ba   : > { %v2323_v20 = vadd.f32 %v2314_v42, %v3527_v24 }
 0x8bc   : > { %2331 = vst.msk [vmem:[%s672_s19 + $0x38] sm:$0xff] %vm722_vm0, %v2323_v20 }
 0x8bd PF: > { %s23_s29 = sadd.s32 1, %s2846_s29   ;;  %s3929_s25 = smov %s2838_s27 }
 0x8be   : > { %p20_p7 = scmp.ge.s32.totalorder %s23_s29, 8   ;;  %s3930_s26 = smov %s2842_s28 }
 0x8bf   : > { %s3931_s27 = smov %s3934_s30  ;;  %s3932_s28 = smov %s3938_s14 }
 0x8c0   :  { %22 = sbr.rel (!%p20_p7) target bundleno = 3 (0x3), region = 138 }

// kernel: encoder_forward.11
= control target key start
LH: loop header
LB: loop body
LE: loop exit
PB: predicated region body
PF: predicated region fallthrough
CT: control target
= control target key end

     0   :  { %s4089_s0 = inlined_call_operand.vmem [shape: f32[6,64,32], index: 0, kind: input, shape index: {}]   ;;  %s4090_s1 = inlined_call_operand.vmem [shape: f32[3,1,32], index: 1, kind: input, shape index: {}]   ;;  %s4091_s2 = inlined_call_operand.vmem [shape: f32[3,1,32], index: 2, kind: input, shape index: {}]   ;;  %s4092_s3 = inlined_call_operand.vmem [shape: f32[3,3,2,32,16], index: 3, kind: input, shape index: {}]   ;;  %s4093_s4 = inlined_call_operand.vmem [shape: f32[3,64,64], index: 4, kind: input, shape index: {}]   ;;  %s4094_s5 = inlined_call_operand.vmem [shape: f32[3,2,16,32], index: 5, kind: input, shape index: {}]   ;;  %s4095_s6 = inlined_call_operand.vmem [shape: f32[3,1,32], index: 6, kind: input, shape index: {}]   ;;  %s4096_s7 = inlined_call_operand.vmem [shape: f32[3,1,32], index: 7, kind: input, shape index: {}]   ;;  %s4097_s8 = inlined_call_operand.vmem [shape: f32[3,1,32], index: 8, kind: input, shape index: {}]   ;;  %s4098_s9 = inlined_call_operand.vmem [shape: f32[3,32,128], index: 9, kind: input, shape index: {}]   ;;  %s4099_s10 = inlined_call_operand.vmem [shape: f32[3,1,128], index: 10, kind: input, shape index: {}]   ;;  %s4100_s11 = inlined_call_operand.vmem [shape: f32[3,128,32], index: 11, kind: input, shape index: {}]   ;;  %s4101_s12 = inlined_call_operand.vmem [shape: f32[3,1,32], index: 12, kind: input, shape index: {}]   ;;  %s4102_s13 = inlined_call_operand.hbm [shape: f32[6,64,32], index: 13, kind: output, shape index: {}]  }
   0x1   :  { %4110 = sst [smem:[#allocation11_spill]] %s4089_s0 }
   0x2   :  { %4111 = sst [smem:[#allocation12_spill]] %s4090_s1 }
   0x3   :  { %4112 = sst [smem:[#allocation13_spill]] %s4091_s2 }
   0x4   :  { %18 = vsyncpa [#allocation3], 0 }
   0x5   :  { %20 = vsyncpa [#allocation3 + $0x1], 0  ;;  %s3027_s25 = smov 0   ;;  %s3029_s26 = smov 0  }
   0x6   :  { %s3031_s27 = smov 0   ;;  %s3033_s28 = smov 0  }
   0x7   :  { %s3035_s29 = smov 0   ;;  %s3037_s30 = smov 0  }
   0x8   :  { %s3039_s14 = smov 0   ;;  %s3041_s15 = smov 0  }
   0x9 LB: > { %4113 = sst [smem:[#allocation5_spill]] %s2923_s25  ;;  %s2542_s16 = sadd.s32 4294967295, %s2951_s15   ;;  %s2951_s15 = sphi %s3041_s15, %s26_s15   ;;  %s2947_s14 = sphi %s3039_s14, %s4139_s14   ;;  %s2943_s30 = sphi %s3037_s30, %s4143_s30   ;;  %s2939_s29 = sphi %s3035_s29, %s4138_s29   ;;  %s2935_s28 = sphi %s3033_s28, %s4137_s28   ;;  %s2931_s27 = sphi %s3031_s27, %s4142_s27   ;;  %s2927_s26 = sphi %s3029_s26, %s4141_s26   ;;  %s2923_s25 = sphi %s3027_s25, %s4140_s25  }
   0xa   : > { %4114 = sst [smem:[#allocation6_spill]] %s2943_s30  ;;  %s35_s17 = sadd.s32 1, %s2943_s30 }
   0xb   : > { %4115 = sst [smem:[#allocation7_spill]] %s2947_s14  ;;  %s38_s18 = sadd.s32 1, %s2947_s14 }
   0xc   : > { %p36_p0 = scmp.ge.s32.totalorder %s35_s17, 2  ;;  %s2546_s19 = sshll.u32 %s2947_s14, 1 }
   0xd   : > { %s2543_s20 = sadd.s32 4294967294, %s2951_s15   ;;  %s385_s21 = sadd.s32 %s2943_s30, %s2546_s19 }
   0xe   : > { %s4145_s17 = smov (%p36_p0, %s35_s17), 0  ;;  %s4147_s18 = smov (!%p36_p0, %s38_s18), %s2947_s14 }
   0xf   : > { %p401_p1 = scmp.ne.s32.totalorder %s2931_s27, %s2927_s26  ;;  %p402_p2 = scmp.eq.s32.totalorder %s2542_s16, 5 }
  0x10   : > { %p40_p3 = scmp.ge.s32.totalorder %s4147_s18, 3  ;;  %p407_p4 = scmp.ne.s32.totalorder %s2927_s26, %s2923_s25 }
  0x11   : > { %p3080_p5 = por %p402_p2, %p401_p1  ;;  %p408_p6 = scmp.eq.s32.totalorder %s2543_s20, 5 }
  0x12   : > { %s4149_s18 = smov (%p40_p3, %s4147_s18), 0  ;;  %p2550_p8 = scmp.ge.s32.totalorder %s2951_s15, 1 }
  0x13   : > { %s4116_s22 = scalar_select %p3080_p5, 1, 0 }
  0x14   : > { %4118 = sst [smem:[#allocation9_spill]] %s4149_s18  ;;  %p3086_p7 = por %p408_p6, %p407_p4 }
  0x15   : > { %4117 = sst [smem:[#allocation8_spill]] %s4116_s22  ;;  %s2547_s24 = sshll.u32 %s4149_s18, 1 }
  0x16   : > { %s4119_s23 = scalar_select %p3086_p7, 1, 0 }
  0x17   : > { %p520_p9 = scmp.lt.s32.totalorder %s2951_s15, 7  ;;  %s387_s19 = sadd.s32 %s2547_s24, %s4145_s17 }
  0x18   : > { %4120 = sst [smem:[#allocation10_spill]] %s4119_s23  ;;  %s391_s14 = sadd.s32 1, %s2931_s27 }
  0x19   : > { %s388_s16 = ssub.s32 %s385_s21, %s387_s19  ;;  %p521_p10 = pnand %p2550_p8, %p520_p9 }
  0x1a   : > { %p389_p11 = scmp.eq.s32.totalorder %s388_s16, 0  ;;  %s2552_s20 = sshll.u32 (!%p521_p10), %s2939_s29, 1 }
  0x1b   : > { %524 = sbr.rel (%p521_p10) target bundleno = 2259 (0x8d3), region = 72  ;;  %s3100_s25 = sadd.s32 (!%p521_p10), %s2935_s28, %s2552_s20 }
  0x1c   : > { %s3096_s30 = scalar_select %p389_p11, %s2931_s27, %s391_s14  }
  0x1d   : > { %p614_p12 = scmp.lt.s32.totalorder (!%p521_p10), %s3100_s25, 5  ;;  %s4121_s0 = sld [smem:[#allocation11_spill]] (!%p521_p10) }
  0x1e   : > { %p621_p13 = scmp.lt.s32.totalorder (!%p521_p10), %s2939_s29, 2  ;;  %s4122_s1 = sld [smem:[#allocation12_spill]] (!%p521_p10) }
  0x1f   : > { %s4123_s2 = sld [smem:[#allocation13_spill]] (!%p521_p10) }
  0x20   : > { %s615_s23 = scalar_select %p614_p12, %s3100_s25, 5  ;;  %vm716_vm0 = vcmask 261120   ;;  %v2953_v16 = vmov 32.0  }
  0x21   : > { %s4151_s29 = smov (!%p621_p13, %s2939_s29), 2  ;;  %2719 = vrcp.f32 %v2953_v16 }
  0x22   : > { %s2622_s22 = sshll.u32 %s615_s23, 6  ;;  %s2636_s16 = smul.u32 192, %s4151_s29 }
  0x23   : > { %s3107_s21 = scalar_lea.vmem %s4121_s0, %s2622_s22  ;;  %s2624_s14 = sshll.u32 %s4151_s29, 5 }
  0x24   : > { %v676_v0 = vld [vmem:[%s3107_s21 + $0x30] sm:$0xff]  ;;  %v674_v1 = vld [vmem:[%s3107_s21 + $0x20] sm:$0xff]  ;;  %v677_v6 = vld [vmem:[%s3107_s21 + $0x38] sm:$0xff]  ;;  %s623_s18 = scalar_lea.vmem %s4122_s1, %s4151_s29  ;;  %s3191_s28 = scalar_lea.vmem %s4092_s3, %s2636_s16 }
  0x25   : > { %v672_v2 = vld [vmem:[%s3107_s21 + $0x10] sm:$0xff]  ;;  %v735_v3 = vsel %vm716_vm0, %v676_v0, 0.0  ;;  %v729_v4 = vsel %vm716_vm0, %v674_v1, 0.0  ;;  %v675_v7 = vld [vmem:[%s3107_s21 + $0x28] sm:$0xff]  ;;  %v673_v8 = vld [vmem:[%s3107_s21 + $0x18] sm:$0xff]  ;;  %v738_v9 = vsel %vm716_vm0, %v677_v6, 0.0  ;;  %s626_s19 = scalar_lea.vmem %s4123_s2, %s4151_s29  ;;  %s3498_s23 = scalar_lea.vmem %s4094_s5, %s2624_s14 }
  0x26   : > { %v723_v5 = vsel %vm716_vm0, %v672_v2, 0.0  ;;  %736 = vadd.xlane.f32.xlu1 %v735_v3  ;;  %730 = vadd.xlane.f32.xlu0 %v729_v4  ;;  %v732_v10 = vsel %vm716_vm0, %v675_v7, 0.0  ;;  %v726_v11 = vsel %vm716_vm0, %v673_v8, 0.0  ;;  %v670_v12 = vld [vmem:[%s3107_s21] sm:$0xff]  ;;  %v671_v13 = vld [vmem:[%s3107_s21 + $0x8] sm:$0xff]  ;;  %v696_v3 = vld [vmem:[%s3191_s28 + $0x50] sm:$0xff]  ;;  %s644_s16 = scalar_lea.vmem %s4095_s6, %s4151_s29 }
  0x27   : > { %724 = vadd.xlane.f32.xlu2 %v723_v5  ;;  %v717_v14 = vsel %vm716_vm0, %v670_v12, 0.0  ;;  %v720_v15 = vsel %vm716_vm0, %v671_v13, 0.0  ;;  %v2720_v17 = vpop.eup %2719 }
  0x28   : > { %v742_v18 = vmul.f32 32.0, %v2720_v17  ;;  %vm746_vm1 = vweird.f32 %v2720_v17 }
  0x2a   : > { %v743_v19 = vsub.f32 1.0, %v742_v18 }
  0x2c   : > { %v744_v20 = vmul.f32 %v2720_v17, %v743_v19 }
  0x2e   : > { %739 = vadd.xlane.f32.xlu1 %v738_v9  ;;  %733 = vadd.xlane.f32.xlu0 %v732_v10  ;;  %v745_v21 = vadd.f32 %v2720_v17, %v744_v20  ;;  %v686_v10 = vld [vmem:[%s3191_s28] sm:$0xff] }
  0x2f   : > { %727 = vadd.xlane.f32.xlu2 %v726_v11  ;;  %v687_v11 = vld [vmem:[%s3191_s28 + $0x8] sm:$0xff] }
  0x30   : > { %v3137_v22 = vsel %vm746_vm1, %v2720_v17, %v745_v21 }
  0x36   : > { %718 = vadd.xlane.f32.xlu0 %v717_v14  ;;  %721 = vadd.xlane.f32.xlu1 %v720_v15  ;;  %v695_v14 = vld [vmem:[%s3191_s28 + $0x48] sm:$0xff] }
  0x99   : > { %v737_v23 = vpop.xlane.xlu1 %736  ;;  %v731_v24 = vpop.xlane.xlu0 %730 }
  0x9a   : > { %v754_v25 = vmul.f32 %v3137_v22, %v737_v23  ;;  %v752_v26 = vmul.f32 %v3137_v22, %v731_v24  ;;  %v725_v27 = vpop.xlane.xlu2 %724 }
  0x9b   : > { %v750_v36 = vmul.f32 %v3137_v22, %v725_v27 }
  0x9c   : > { %v3141_v28 = vsub.f32 %v676_v0, %v754_v25  ;;  %v3143_v29 = vsub.f32 %v674_v1, %v752_v26  ;;  %v688_v1 = vld [vmem:[%s3191_s28 + $0x10] sm:$0xff] }
  0x9d   : > { %v3161_v44 = vsub.f32 %v672_v2, %v750_v36  ;;  %v689_v2 = vld [vmem:[%s3191_s28 + $0x18] sm:$0xff] }
  0x9e   : > { %v768_v30 = vmul.f32 %v3143_v29, %v3143_v29  ;;  %v770_v31 = vmul.f32 %v3141_v28, %v3141_v28  ;;  %v939_v5 = vpack.c.bf16 %v689_v2, %v688_v1 }
  0x9f   : > { %v766_v55 = vmul.f32 %v3161_v44, %v3161_v44 }
  0xa0   : > { %v784_v32 = vsel %vm716_vm0, %v768_v30, 0.0  ;;  %v790_v33 = vsel %vm716_vm0, %v770_v31, 0.0  ;;  %2629 = vmatpush.bf16.msra.mxu2 %v939_v5  ;;  %2628 = vmatpush.bf16.msra.mxu1 %v939_v5 }
  0xa1   : > { %v740_v34 = vpop.xlane.xlu1 %739  ;;  %v734_v35 = vpop.xlane.xlu0 %733  ;;  %785 = vadd.xlane.f32.xlu2 %v784_v32  ;;  %791 = vadd.xlane.f32.xlu1 %v790_v33  ;;  %v778_v58 = vsel %vm716_vm0, %v766_v55, 0.0 }
  0xa2   : > { %v755_v37 = vmul.f32 %v3137_v22, %v740_v34  ;;  %v753_v38 = vmul.f32 %v3137_v22, %v734_v35  ;;  %v728_v39 = vpop.xlane.xlu2 %727  ;;  %962 = vmatpush.bf16.msra.mxu0 %v939_v5 }
  0xa3   : > { %v751_v40 = vmul.f32 %v3137_v22, %v728_v39 }
  0xa4   : > { %v3155_v41 = vsub.f32 %v677_v6, %v755_v37  ;;  %v3157_v42 = vsub.f32 %v675_v7, %v753_v38  ;;  %v697_v6 = vld [vmem:[%s3191_s28 + $0x58] sm:$0xff] }
  0xa5   : > { %v3159_v43 = vsub.f32 %v673_v8, %v751_v40  ;;  %v941_v7 = vpack.c.bf16 %v697_v6, %v696_v3  ;;  %v3256_v6 = vld [vmem:[%s623_s18] ss:$0 sm:$0xff] }
  0xa6   : > { %v771_v45 = vmul.f32 %v3155_v41, %v3155_v41  ;;  %v769_v46 = vmul.f32 %v3157_v42, %v3157_v42 }
  0xa7   : > { %v767_v47 = vmul.f32 %v3159_v43, %v3159_v43  ;;  %2633 = vmatpush.bf16.msra.mxu3 %v941_v7 }
  0xa8   : > { %v793_v48 = vsel %vm716_vm0, %v771_v45, 0.0  ;;  %v787_v49 = vsel %vm716_vm0, %v769_v46, 0.0 }
  0xa9   : > { %794 = vadd.xlane.f32.xlu2 %v793_v48  ;;  %v781_v50 = vsel %vm716_vm0, %v767_v47, 0.0  ;;  %788 = vadd.xlane.f32.xlu0 %v787_v49  ;;  %v719_v51 = vpop.xlane.xlu0 %718  ;;  %v722_v52 = vpop.xlane.xlu1 %721 }
  0xaa   : > { %782 = vadd.xlane.f32.xlu1 %v781_v50  ;;  %v748_v53 = vmul.f32 %v3137_v22, %v719_v51  ;;  %v749_v54 = vmul.f32 %v3137_v22, %v722_v52 }
  0xac   : > { %v3176_v56 = vsub.f32 %v670_v12, %v748_v53  ;;  %v3178_v57 = vsub.f32 %v671_v13, %v749_v54  ;;  %v694_v12 = vld [vmem:[%s3191_s28 + $0x40] sm:$0xff]  ;;  %v938_v13 = vpack.c.bf16 %v687_v11, %v686_v10 }
  0xad   : > { %v940_v15 = vpack.c.bf16 %v695_v14, %v694_v12  ;;  %v690_v14 = vld [vmem:[%s3191_s28 + $0x20] sm:$0xff] }
  0xae   : > { %v764_v59 = vmul.f32 %v3176_v56, %v3176_v56  ;;  %v765_v61 = vmul.f32 %v3178_v57, %v3178_v57  ;;  %2631 = vmatpush.bf16.msra.mxu2 %v938_v13  ;;  %2630 = vmatpush.bf16.msra.mxu1 %v938_v13 }
  0xaf   : > { %2635 = vmatpush.bf16.msra.mxu3 %v940_v15  ;;  %963 = vmatpush.bf16.msra.mxu0 %v938_v13 }
  0xb0   : > { %v772_v60 = vsel %vm716_vm0, %v764_v59, 0.0  ;;  %v775_v62 = vsel %vm716_vm0, %v765_v61, 0.0 }
  0xb1   : > { %779 = vadd.xlane.f32.xlu0 %v778_v58  ;;  %773 = vadd.xlane.f32.xlu2 %v772_v60 }
  0xb2   : > { %2632 = vmatpush.bf16.msrb.mxu1 %v941_v7 }
  0xb3   : > { %1003 = vmatpush.bf16.msrb.mxu0 %v941_v7 }
  0xb6   : > { %2634 = vmatpush.bf16.msrb.mxu1 %v940_v15 }
  0xb7   : > { %1004 = vmatpush.bf16.msrb.mxu0 %v940_v15 }
  0xb9   : > { %776 = vadd.xlane.f32.xlu0 %v775_v62 }
 0x114   : > { %v786_v63 = vpop.xlane.xlu2 %785  ;;  %v792_v0 = vpop.xlane.xlu1 %791 }
 0x115   : > { %v800_v4 = vmul.f32 %v786_v63, %v3137_v22  ;;  %v802_v9 = vmul.f32 %v792_v0, %v3137_v22 }
 0x117   : > { %v3198_v8 = vadd.f32 1e-05, %v800_v4  ;;  %v3206_v16 = vadd.f32 1e-05, %v802_v9 }
 0x119   : > { %2721 = vrsqrt.f32 %v3198_v8  ;;  %vm858_vm3 = vweird.f32 %v3198_v8  ;;  %vm878_vm5 = vweird.f32 %v3206_v16 }
 0x11a   : > { %2723 = vrsqrt.f32 %v3206_v16 }
 0x11c   : > { %v795_v17 = vpop.xlane.xlu2 %794  ;;  %v789_v18 = vpop.xlane.xlu0 %788 }
 0x11d   : > { %v803_v19 = vmul.f32 %v795_v17, %v3137_v22  ;;  %v783_v20 = vpop.xlane.xlu1 %782  ;;  %v801_v21 = vmul.f32 %v789_v18, %v3137_v22  ;;  %v704_v18 = vld [vmem:[%s3191_s28 + $0x90] sm:$0xff] }
 0x11e   : > { %v799_v23 = vmul.f32 %v783_v20, %v3137_v22  ;;  %v3285_v20 = vld [vmem:[%s626_s19] ss:$0 sm:$0xff]  ;;  %s2623_s19 = sshll.u32 %s4151_s29, 6 }
 0x11f   : > { %v2722_v24 = vpop.eup %2721  ;;  %v3211_v25 = vadd.f32 1e-05, %v803_v19  ;;  %v809_v26 = vadd.f32 1e-05, %v801_v21  ;;  %v705_v19 = vld [vmem:[%s3191_s28 + $0x98] sm:$0xff]  ;;  %s3432_s24 = scalar_lea.vmem %s4093_s4, %s2623_s19  ;;  %s666_s19 = scalar_lea.vmem %s4101_s12, %s4151_s29 }
 0x120   : > { %v853_v27 = vmul.f32 %v2722_v24, %v3198_v8  ;;  %v3215_v30 = vadd.f32 1e-05, %v799_v23  ;;  %v3221_v37 = vpop.eup %2723  ;;  %vm859_vm2 = vweird.f32 %v2722_v24 }
 0x121   : > { %2725 = vrsqrt.f32 %v3211_v25  ;;  %v873_v51 = vmul.f32 %v3221_v37, %v3206_v16  ;;  %vm860_vm4 = vmor %vm858_vm3, %vm859_vm2  ;;  %vm868_vm9 = vweird.f32 %v809_v26  ;;  %vm879_vm10 = vweird.f32 %v3221_v37 }
 0x122   : > { %v854_v31 = vmul.f32 %v2722_v24, %v853_v27  ;;  %2727 = vrsqrt.f32 %v3215_v30  ;;  %vm848_vm7 = vweird.f32 %v3215_v30  ;;  %vm888_vm11 = vweird.f32 %v3211_v25 }
 0x123   : > { %2729 = vrsqrt.f32 %v809_v26  ;;  %v874_v62 = vmul.f32 %v3221_v37, %v873_v51 }
 0x124   : > { %v855_v32 = vmul.f32 0.5, %v854_v31  ;;  %v774_v33 = vpop.xlane.xlu2 %773  ;;  %v780_v34 = vpop.xlane.xlu0 %779  ;;  %v702_v31 = vld [vmem:[%s3191_s28 + $0x80] sm:$0xff] }
 0x125   : > { %v796_v35 = vmul.f32 %v774_v33, %v3137_v22  ;;  %v798_v36 = vmul.f32 %v780_v34, %v3137_v22  ;;  %v875_v9 = vmul.f32 0.5, %v874_v62 }
 0x126   : > { %v856_v38 = vsub.f32 1.5, %v855_v32  ;;  %v703_v32 = vld [vmem:[%s3191_s28 + $0x88] sm:$0xff] }
 0x127   : > { %v3223_v39 = vpop.eup %2725  ;;  %v3225_v40 = vadd.f32 1e-05, %v796_v35  ;;  %v3231_v47 = vadd.f32 1e-05, %v798_v36  ;;  %v876_v27 = vsub.f32 1.5, %v875_v9 }
 0x128   : > { %v3227_v45 = vpop.eup %2727  ;;  %v883_v46 = vmul.f32 %v3223_v39, %v3211_v25  ;;  %v857_v50 = vmul.f32 %v2722_v24, %v856_v38  ;;  %vm889_vm13 = vweird.f32 %v3223_v39 }
 0x129   : > { %v2730_v48 = vpop.eup %2729  ;;  %v843_v49 = vmul.f32 %v3227_v45, %v3215_v30  ;;  %2731 = vrsqrt.f32 %v3225_v40  ;;  %vm849_vm8 = vweird.f32 %v3227_v45  ;;  %vm818_vm15 = vweird.f32 %v3225_v40  ;;  %vm3303_vm2 = vmor %vm888_vm11, %vm889_vm13 }
 0x12a   : > { %v863_v52 = vmul.f32 %v2730_v48, %v809_v26  ;;  %v884_v54 = vmul.f32 %v3223_v39, %v883_v46  ;;  %2733 = vrsqrt.f32 %v3231_v47  ;;  %v861_v61 = vsel %vm860_vm4, %v2722_v24, %v857_v50  ;;  %vm3274_vm14 = vmor %vm848_vm7, %vm849_vm8 }
 0x12b   : > { %v844_v53 = vmul.f32 %v3227_v45, %v843_v49  ;;  %vm869_vm6 = vweird.f32 %v2730_v48  ;;  %v896_v7 = vmul.f32 %v861_v61, %v3143_v29  ;;  %v943_v26 = vpack.c.bf16 %v705_v19, %v704_v18  ;;  %vm3327_vm7 = vmor %vm878_vm5, %vm879_vm10 }
 0x12c   : > { %v864_v55 = vmul.f32 %v2730_v48, %v863_v52  ;;  %v777_v58 = vpop.xlane.xlu0 %776  ;;  %v885_v3 = vmul.f32 0.5, %v884_v54  ;;  %vm870_vm12 = vmor %vm868_vm9, %vm869_vm6  ;;  %vm838_vm3 = vweird.f32 %v3231_v47  ;;  %v877_v52 = vmul.f32 %v3221_v37, %v876_v27 }
 0x12d   : > { %v845_v59 = vmul.f32 0.5, %v844_v53  ;;  %v797_v60 = vmul.f32 %v777_v58, %v3137_v22  ;;  %v907_v21 = vmul.f32 %v3256_v6, %v896_v7  ;;  %1036 = vmatpush.bf16.msrb.mxu2 %v943_v26  ;;  %vm1063_vm11 = vcmask 130048  }
 0x12e   : > { %v865_v63 = vmul.f32 0.5, %v864_v55  ;;  %v886_v13 = vsub.f32 1.5, %v885_v3 }
 0x12f   : > { %v3244_v0 = vpop.eup %2731  ;;  %v846_v1 = vsub.f32 1.5, %v845_v59  ;;  %v3246_v2 = vadd.f32 1e-05, %v797_v60  ;;  %v918_v49 = vadd.f32 %v3285_v20, %v907_v21 }
 0x130   : > { %v866_v4 = vsub.f32 1.5, %v865_v63  ;;  %v813_v5 = vmul.f32 %v3244_v0, %v3225_v40  ;;  %v3262_v8 = vpop.eup %2733  ;;  %vm819_vm1 = vweird.f32 %v3244_v0  ;;  %v887_v38 = vmul.f32 %v3223_v39, %v886_v13  ;;  %v693_v13 = vld [vmem:[%s3191_s28 + $0x38] sm:$0xff] }
 0x131   : > { %2735 = vrsqrt.f32 %v3246_v2  ;;  %v847_v29 = vmul.f32 %v3227_v45, %v846_v1  ;;  %v833_v12 = vmul.f32 %v3262_v8, %v3231_v47  ;;  %vm3316_vm4 = vmor %vm818_vm15, %vm819_vm1  ;;  %vm839_vm6 = vweird.f32 %v3262_v8 }
 0x132   : > { %v867_v10 = vmul.f32 %v2730_v48, %v866_v4  ;;  %v814_v11 = vmul.f32 %v3244_v0, %v813_v5  ;;  %vm828_vm8 = vweird.f32 %v3246_v2  ;;  %vm840_vm5 = vmor %vm838_vm3, %vm839_vm6 }
 0x133   : > { %v834_v24 = vmul.f32 %v3262_v8, %v833_v12  ;;  %v851_v34 = vsel %vm3274_vm14, %v3227_v45, %v847_v29 }
 0x134   : > { %v871_v15 = vsel %vm870_vm12, %v2730_v48, %v867_v10  ;;  %v815_v17 = vmul.f32 0.5, %v814_v11  ;;  %v895_v53 = vmul.f32 %v851_v34, %v3159_v43  ;;  %v891_v43 = vsel %vm3303_vm2, %v3223_v39, %v887_v38 }
 0x135   : > { %v897_v23 = vmul.f32 %v871_v15, %v3157_v42  ;;  %v835_v36 = vmul.f32 0.5, %v834_v24  ;;  %v942_v42 = vpack.c.bf16 %v703_v32, %v702_v31  ;;  %v881_v39 = vsel %vm3327_vm7, %v3221_v37, %v877_v52 }
 0x136   : > { %v816_v30 = vsub.f32 1.5, %v815_v17  ;;  %v906_v61 = vmul.f32 %v3256_v6, %v895_v53  ;;  %v899_v63 = vmul.f32 %v891_v43, %v3155_v41  ;;  %v898_v4 = vmul.f32 %v881_v39, %v3141_v28  ;;  %v691_v17 = vld [vmem:[%s3191_s28 + $0x28] sm:$0xff] }
 0x137   : > { %v2736_v33 = vpop.eup %2735  ;;  %v908_v35 = vmul.f32 %v3256_v6, %v897_v23  ;;  %v836_v51 = vsub.f32 1.5, %v835_v36  ;;  %1037 = vmatpush.bf16.msrb.mxu2 %v942_v42  ;;  %v1313_v18 = vpack.c.bf16 %v691_v17, %v690_v14  ;;  %vm1117_vm12 = vcmask 523264  }
 0x138   : > { %v817_v48 = vmul.f32 %v3244_v0, %v816_v30  ;;  %v823_v45 = vmul.f32 %v2736_v33, %v3246_v2  ;;  %vm829_vm9 = vweird.f32 %v2736_v33  ;;  %v917_v5 = vadd.f32 %v3285_v20, %v906_v61 }
 0x139   : > { %v919_v50 = vadd.f32 %v3285_v20, %v908_v35  ;;  %v837_v58 = vmul.f32 %v3262_v8, %v836_v51  ;;  %vm830_vm10 = vmor %vm828_vm8, %vm829_vm9  ;;  %v909_v2 = vmul.f32 %v3256_v6, %v898_v4 }
 0x13a   : > { %v824_v54 = vmul.f32 %v2736_v33, %v823_v45  ;;  %v821_v59 = vsel %vm3316_vm4, %v3244_v0, %v817_v48 }
 0x13b   : > { %v3331_v40 = vpack.c.bf16 %v919_v50, %v918_v49  ;;  %v841_v60 = vsel %vm840_vm5, %v3262_v8, %v837_v58  ;;  %v892_v0 = vmul.f32 %v821_v59, %v3176_v56 }
 0x13c   : > { %v825_v16 = vmul.f32 0.5, %v824_v54  ;;  %v894_v62 = vmul.f32 %v841_v60, %v3161_v44  ;;  %v910_v44 = vmul.f32 %v3256_v6, %v899_v63 }
 0x13d   : > { %2566 = vmatmul.msk.bf16.vlgmr.msra.gmra.mxu2 %vm716_vm0, %v3331_v40  ;;  %2570 = vmatmul.msk.bf16.vlgmr.msra.gmra.mxu3 %vm716_vm0, %v3331_v40  ;;  %v903_v8 = vmul.f32 %v3256_v6, %v892_v0  ;;  %v700_v0 = vld [vmem:[%s3191_s28 + $0x70] sm:$0xff] }
 0x13e   : > { %v826_v47 = vsub.f32 1.5, %v825_v16  ;;  %v905_v1 = vmul.f32 %v3256_v6, %v894_v62  ;;  %v921_v28 = vadd.f32 %v3285_v20, %v910_v44 }
 0x13f   : > { %v914_v10 = vadd.f32 %v3285_v20, %v903_v8 }
 0x140   : > { %v827_v3 = vmul.f32 %v2736_v33, %v826_v47  ;;  %v916_v37 = vadd.f32 %v3285_v20, %v905_v1  ;;  %v701_v1 = vld [vmem:[%s3191_s28 + $0x78] sm:$0xff] }
 0x142   : > { %v831_v7 = vsel %vm830_vm10, %v2736_v33, %v827_v3  ;;  %v3364_v56 = vpack.c.bf16 %v917_v5, %v916_v37  ;;  %v1316_v3 = vpack.c.bf16 %v701_v1, %v700_v0  ;;  %v698_v5 = vld [vmem:[%s3191_s28 + $0x60] sm:$0xff]  ;;  %v699_v37 = vld [vmem:[%s3191_s28 + $0x68] sm:$0xff] }
 0x143   : > { %v893_v41 = vmul.f32 %v831_v7, %v3178_v57  ;;  %v920_v57 = vadd.f32 %v3285_v20, %v909_v2  ;;  %v1315_v44 = vpack.c.bf16 %v699_v37, %v698_v5 }
 0x144   : > { %2565 = vmatmul.msk.bf16.vlgmr.msra.gmra.mxu1 %vm716_vm0, %v3364_v56 }
 0x145   : > { %v904_v9 = vmul.f32 %v3256_v6, %v893_v41  ;;  %v3376_v12 = vpack.c.bf16 %v921_v28, %v920_v57  ;;  %v692_v6 = vld [vmem:[%s3191_s28 + $0x30] sm:$0xff] }
 0x146   : > { %v1314_v15 = vpack.c.bf16 %v693_v13, %v692_v6  ;;  %v3435_v13 = vld [vmem:[%s3432_s24] sm:$0xff] }
 0x147   : > { %v915_v11 = vadd.f32 %v3285_v20, %v904_v9 }
 0x148   : > { %1325 = vmatpush.bf16.msra.mxu2 %v1314_v15 }
 0x149   : > { %v3374_v29 = vpack.c.bf16 %v915_v11, %v914_v10 }
 0x14b   : > { %2564 = vmatmul.msk.bf16.vlgmr.msra.gmra.mxu0 %vm716_vm0, %v3374_v29 }
 0x14c   : > { %1326 = vmatpush.bf16.msra.mxu2 %v1313_v18  ;;  %v3440_v18 = vld [vmem:[%s3432_s24 + $0x8] sm:$0xff] }
 0x14d   : > { %2567 = vmatmul.msk.bf16.gmra.mxu2 %vm716_vm0, %v3376_v12  ;;  %2571 = vmatmul.msk.bf16.gmra.mxu3 %vm716_vm0, %v3376_v12 }
 0x154   : > { %2569 = vmatmul.msk.bf16.vlgmr.msrb.gmra.mxu1 %vm716_vm0, %v3364_v56 }
 0x15b   : > { %2568 = vmatmul.msk.bf16.vlgmr.msrb.gmra.mxu0 %vm716_vm0, %v3374_v29 }
 0x15d   : > { %2572 = vmatmul.msk.bf16.vlgmr.msrb.gmra.mxu2 %vm716_vm0, %v3374_v29 }
 0x16d   : > { %2573 = vmatmul.msk.bf16.gmra.mxu2 %vm716_vm0, %v3364_v56 }
 0x17d   : > { %2574 = vmatmul.msk.bf16.gmra.mxu2 %vm716_vm0, %v3331_v40 }
 0x18d   : > { %2575 = vmatmul.msk.bf16.gmra.mxu2 %vm716_vm0, %v3376_v12 }
 0x19d   : > { %2588 = vmatmul.msk.bf16.vlgmr.msra.gmra.mxu2 %vm716_vm0, %v3374_v29 }
 0x1ad   : > { %2589 = vmatmul.msk.bf16.gmra.mxu2 %vm716_vm0, %v3364_v56 }
 0x1bd   : > { %2590 = vmatmul.msk.bf16.gmra.mxu2 %vm716_vm0, %v3331_v40 }
 0x1c0   : > { %v975_v19 = vpop.f32.mrf.mxu2  ;;  %v1016_v20 = vpop.f32.mrf.mxu3 }
 0x1c1   : > { %v970_v21 = vpop.f32.mrf.mxu1  ;;  %v989_v7 = vmul.f32 0.25, %v975_v19 }
 0x1c2   : > { %v987_v61 = vmul.f32 0.25, %v970_v21 }
 0x1c8   : > { %v977_v23 = vpop.f32.mrf.mxu2  ;;  %v1018_v24 = vpop.f32.mrf.mxu3 }
 0x1c9   : > { %v965_v26 = vpop.f32.mrf.mxu0  ;;  %v972_v27 = vpop.f32.mrf.mxu1  ;;  %v1028_v38 = vpack.c.bf16 %v1018_v24, %v1016_v20  ;;  %v990_v4 = vmul.f32 0.25, %v977_v23  ;;  %v3445_v23 = vld [vmem:[%s3432_s24 + $0x10] sm:$0xff] }
 0x1ca   : > { %v985_v43 = vmul.f32 0.25, %v965_v26  ;;  %v988_v39 = vmul.f32 0.25, %v972_v27 }
 0x1cb   : > { %v1083_v45 = vsel %vm1063_vm11, %v1028_v38, 0  ;;  %v995_v41 = vpack.c.bf16 %v990_v4, %v989_v7  ;;  %v3469_v38 = vld [vmem:[%s3432_s24 + $0x28] sm:$0xff] }
 0x1cc   : > { %v994_v47 = vpack.c.bf16 %v988_v39, %v987_v61  ;;  %v710_v39 = vld [vmem:[%s3498_s23] sm:$0xff]  ;;  %v711_v61 = vld [vmem:[%s3498_s23 + $0x8] sm:$0xff] }
 0x1cd   : > { %2591 = vmatmul.msk.bf16.gmra.mxu2 %vm716_vm0, %v3376_v12 }
 0x1d0   : > { %v980_v30 = vpop.f32.mrf.mxu2  ;;  %v1021_v31 = vpop.f32.mrf.mxu3 }
 0x1d1   : > { %v967_v32 = vpop.f32.mrf.mxu0  ;;  %v1011_v36 = vpop.f32.mrf.mxu1  ;;  %v991_v57 = vmul.f32 0.25, %v980_v30  ;;  %v3453_v30 = vld [vmem:[%s3432_s24 + $0x18] sm:$0xff] }
 0x1d2   : > { %v986_v58 = vmul.f32 0.25, %v967_v32 }
 0x1d4   : > { %v993_v16 = vpack.c.bf16 %v986_v58, %v985_v43 }
 0x1d8   : > { %v982_v33 = vpop.f32.mrf.mxu2  ;;  %v1023_v34 = vpop.f32.mrf.mxu3 }
 0x1d9   : > { %v1029_v35 = vpack.c.bf16 %v1023_v34, %v1021_v31  ;;  %v1006_v48 = vpop.f32.mrf.mxu0  ;;  %v1013_v49 = vpop.f32.mrf.mxu1  ;;  %v992_v10 = vmul.f32 0.25, %v982_v33  ;;  %v3461_v34 = vld [vmem:[%s3432_s24 + $0x20] sm:$0xff] }
 0x1da   : > { %v1027_v50 = vpack.c.bf16 %v1013_v49, %v1011_v36  ;;  %v3477_v49 = vld [vmem:[%s3432_s24 + $0x30] sm:$0xff] }
 0x1db   : > { %v1086_v42 = vsel %vm1063_vm11, %v1029_v35, 0  ;;  %v996_v6 = vpack.c.bf16 %v992_v10, %v991_v57 }
 0x1dc   : > { %1092 = vmatpush.bf16.xpose.msrb.mxu3 %v1086_v42  ;;  %v1080_v51 = vsel %vm1063_vm11, %v1027_v50, 0 }
 0x1e0   : > { %v1039_v46 = vpop.f32.mrf.mxu2 }
 0x1e1   : > { %v1008_v52 = vpop.f32.mrf.mxu0 }
 0x1e2   : > { %v1026_v53 = vpack.c.bf16 %v1008_v52, %v1006_v48  ;;  %v3485_v52 = vld [vmem:[%s3432_s24 + $0x38] sm:$0xff]  ;;  %s655_s24 = scalar_lea.vmem %s4098_s9, %s2624_s14 }
 0x1e4   : > { %1093 = vmatpush.bf16.xpose.msrb.mxu3 %v1083_v45  ;;  %v1077_v55 = vsel %vm1063_vm11, %v1026_v53, 0 }
 0x1e8   : > { %v1041_v25 = vpop.f32.mrf.mxu2 }
 0x1e9   : > { %v1059_v11 = vpack.c.bf16 %v1041_v25, %v1039_v46 }
 0x1ec   : > { %1094 = vmatpush.bf16.xpose.msrb.mxu3 %v1080_v51 }
 0x1f0   : > { %v1044_v54 = vpop.f32.mrf.mxu2 }
 0x1f4   : > { %1095 = vmatpush.bf16.xpose.msrb.mxu3 %v1077_v55 }
 0x1f8   : > { %v1046_v59 = vpop.f32.mrf.mxu2 }
 0x1f9   : > { %v1060_v28 = vpack.c.bf16 %v1046_v59, %v1044_v54 }
 0x1fb   : > { %2576 = vmatmul.msk.bf16.vlgmr.msrb.gmra.mxu3 %vm1063_vm11, %v993_v16 }
 0x1fc   : > { %1366 = vmatpush.bf16.msra.mxu3 %v1316_v3 }
 0x200   : > { %v1049_v60 = vpop.f32.mrf.mxu2  ;;  %1367 = vmatpush.bf16.msra.mxu3 %v1315_v44 }
 0x208   : > { %v1051_v62 = vpop.f32.mrf.mxu2 }
 0x209   : > { %v1061_v9 = vpack.c.bf16 %v1051_v62, %v1049_v60  ;;  %v1263_v62 = vpack.c.bf16 %v711_v61, %v710_v39 }
 0x20b   : > { %2577 = vmatmul.msk.bf16.gmra.mxu3 %vm1063_vm11, %v994_v47  ;;  %1283 = vmatpush.bf16.msra.mxu1 %v1263_v62 }
 0x210   : > { %v1054_v63 = vpop.f32.mrf.mxu2 }
 0x218   : > { %v1056_v8 = vpop.f32.mrf.mxu2 }
 0x219   : > { %v1062_v2 = vpack.c.bf16 %v1056_v8, %v1054_v63 }
 0x21b   : > { %2578 = vmatmul.msk.bf16.gmra.mxu3 %vm1063_vm11, %v995_v41  ;;  %1210 = vmatpush.bf16.msra.mxu0 %v1062_v2 }
 0x21f   : > { %1211 = vmatpush.bf16.msra.mxu0 %v1061_v9 }
 0x223   : > { %1212 = vmatpush.bf16.msra.mxu0 %v1060_v28 }
 0x227   : > { %1213 = vmatpush.bf16.msra.mxu0 %v1059_v11 }
 0x22b   : > { %2579 = vmatmul.msk.bf16.gmra.mxu3 %vm1063_vm11, %v996_v6 }
 0x23b   : > { %2592 = vmatmul.msk.bf16.vlgmr.msra.gmra.mxu3 %vm716_vm0, %v3374_v29 }
 0x24b   : > { %2593 = vmatmul.msk.bf16.gmra.mxu3 %vm716_vm0, %v3364_v56 }
 0x25b   : > { %2594 = vmatmul.msk.bf16.gmra.mxu3 %vm716_vm0, %v3331_v40 }
 0x26b   : > { %2595 = vmatmul.msk.bf16.gmra.mxu3 %vm716_vm0, %v3376_v12 }
 0x27e   : > { %v1097_v14 = vpop.f32.mrf.mxu3 }
 0x27f   : > { %v1098_v15 = vadd.f32 %v1097_v14, %v3435_v13 }
 0x281   : > { %v1118_v17 = vsel %vm1117_vm12, %v1098_v15, -inf }
 0x282   : > { %1119 = vmax.xlane.f32.xlu1 %v1118_v17 }
 0x286   : > { %v1099_v19 = vpop.f32.mrf.mxu3 }
 0x287   : > { %v1100_v20 = vadd.f32 %v1099_v19, %v3440_v18 }
 0x289   : > { %v1121_v21 = vsel %vm1117_vm12, %v1100_v20, -inf }
 0x28a   : > { %1122 = vmax.xlane.f32.xlu2 %v1121_v21 }
 0x28e   : > { %v1102_v24 = vpop.f32.mrf.mxu3 }
 0x28f   : > { %v3448_v26 = vadd.f32 %v1102_v24, %v3445_v23 }
 0x291   : > { %v1124_v27 = vsel %vm1117_vm12, %v3448_v26, -inf }
 0x292   : > { %1125 = vmax.xlane.f32.xlu0 %v1124_v27 }
 0x296   : > { %v1104_v31 = vpop.f32.mrf.mxu3 }
 0x297   : > { %v3456_v32 = vadd.f32 %v1104_v31, %v3453_v30 }
 0x299   : > { %v1127_v33 = vsel %vm1117_vm12, %v3456_v32, -inf }
 0x29a   : > { %1128 = vmax.xlane.f32.xlu1 %v1127_v33 }
 0x29e   : > { %v1107_v35 = vpop.f32.mrf.mxu3 }
 0x29f   : > { %v3464_v36 = vadd.f32 %v1107_v35, %v3461_v34 }
 0x2a1   : > { %v1130_v42 = vsel %vm1117_vm12, %v3464_v36, -inf }
 0x2a2   : > { %1131 = vmax.xlane.f32.xlu2 %v1130_v42 }
 0x2a6   : > { %v1109_v46 = vpop.f32.mrf.mxu3 }
 0x2a7   : > { %v3472_v48 = vadd.f32 %v1109_v46, %v3469_v38 }
 0x2a9   : > { %v1133_v45 = vsel %vm1117_vm12, %v3472_v48, -inf }
 0x2aa   : > { %1134 = vmax.xlane.f32.xlu0 %v1133_v45 }
 0x2ae   : > { %v1112_v50 = vpop.f32.mrf.mxu3 }
 0x2af   : > { %v3480_v25 = vadd.f32 %v1112_v50, %v3477_v49 }
 0x2b1   : > { %v1136_v51 = vsel %vm1117_vm12, %v3480_v25, -inf }
 0x2b2   : > { %1137 = vmax.xlane.f32.xlu1 %v1136_v51  ;;  %v708_v51 = vld [vmem:[%s3191_s28 + $0xb0] sm:$0xff] }
 0x2b6   : > { %v1114_v53 = vpop.f32.mrf.mxu3 }
 0x2b7   : > { %v3488_v54 = vadd.f32 %v1114_v53, %v3485_v52  ;;  %v709_v53 = vld [vmem:[%s3191_s28 + $0xb8] sm:$0xff] }
 0x2b9   : > { %v1139_v55 = vsel %vm1117_vm12, %v3488_v54, -inf }
 0x2ba   : > { %1140 = vmax.xlane.f32.xlu2 %v1139_v55  ;;  %v706_v55 = vld [vmem:[%s3191_s28 + $0xa0] sm:$0xff] }
 0x2be   : > { %v1369_v58 = vpop.f32.mrf.mxu3 }
 0x2c6   : > { %v1371_v43 = vpop.f32.mrf.mxu3 }
 0x2c7   : > { %v1389_v59 = vpack.c.bf16 %v1371_v43, %v1369_v58  ;;  %v1318_v58 = vpack.c.bf16 %v709_v53, %v708_v51  ;;  %v707_v43 = vld [vmem:[%s3191_s28 + $0xa8] sm:$0xff] }
 0x2c9   : > { %1399 = vmatpush.bf16.msrb.mxu0 %v1318_v58 }
 0x2ce   : > { %v1374_v16 = vpop.f32.mrf.mxu3 }
 0x2d6   : > { %v1376_v60 = vpop.f32.mrf.mxu3 }
 0x2d7   : > { %v1390_v11 = vpack.c.bf16 %v1376_v60, %v1374_v16  ;;  %v1317_v60 = vpack.c.bf16 %v707_v43, %v706_v55 }
 0x2d9   : > { %v1442_v19 = vsel %vm1063_vm11, %v1390_v11, 0  ;;  %1400 = vmatpush.bf16.msrb.mxu0 %v1317_v60 }
 0x2de   : > { %v1379_v47 = vpop.f32.mrf.mxu3 }
 0x2e6   : > { %v1381_v63 = vpop.f32.mrf.mxu3 }
 0x2e7   : > { %v1391_v44 = vpack.c.bf16 %v1381_v63, %v1379_v47 }
 0x2e9   : > { %v1445_v28 = vsel %vm1063_vm11, %v1391_v44, 0 }
 0x2ee   : > { %v1384_v0 = vpop.f32.mrf.mxu3 }
 0x2f5   : > { %v1120_v1 = vpop.xlane.xlu1 %1119 }
 0x2f6   : > { %v1142_v3 = vsub.f32 %v1098_v15, %v1120_v1  ;;  %v1386_v4 = vpop.f32.mrf.mxu3 }
 0x2f7   : > { %v1392_v5 = vpack.c.bf16 %v1386_v4, %v1384_v0 }
 0x2f8   : > { %v1150_v37 = vmul.f32 1.442695, %v1142_v3 }
 0x2f9   : > { %v1448_v7 = vsel %vm1063_vm11, %v1392_v5, 0 }
 0x2fa   : > { %2737 = vpow2.f32 %v1150_v37  ;;  %1454 = vmatpush.bf16.xpose.msrb.mxu1 %v1448_v7 }
 0x2fd   : > { %v1123_v8 = vpop.xlane.xlu2 %1122 }
 0x2fe   : > { %v1143_v41 = vsub.f32 %v1100_v20, %v1123_v8 }
 0x300   : > { %v2738_v2 = vpop.eup %2737  ;;  %v1152_v9 = vmul.f32 1.442695, %v1143_v41 }
 0x301   : > { %v1166_v10 = vsel %vm1117_vm12, %v2738_v2, 0.0 }
 0x302   : > { %2739 = vpow2.f32 %v1152_v9  ;;  %1455 = vmatpush.bf16.xpose.msrb.mxu1 %v1445_v28  ;;  %1167 = vadd.xlane.f32.xlu0 %v1166_v10 }
 0x305   : > { %v1126_v57 = vpop.xlane.xlu0 %1125 }
 0x306   : > { %v1144_v6 = vsub.f32 %v3448_v26, %v1126_v57  ;;  %v1439_v26 = vsel %vm1063_vm11, %v1389_v59, 0 }
 0x308   : > { %v2740_v14 = vpop.eup %2739  ;;  %v1154_v15 = vmul.f32 1.442695, %v1144_v6 }
 0x309   : > { %v1190_v17 = vpack.c.bf16 %v2740_v14, %v2738_v2  ;;  %v1169_v20 = vsel %vm1117_vm12, %v2740_v14, 0.0 }
 0x30a   : > { %2741 = vpow2.f32 %v1154_v15  ;;  %1456 = vmatpush.bf16.xpose.msrb.mxu1 %v1442_v19  ;;  %1170 = vadd.xlane.f32.xlu1 %v1169_v20 }
 0x30b   : > { %2580 = vmatmul.msk.bf16.vlgmr.msra.gmra.mxu0 %vm1117_vm12, %v1190_v17 }
 0x30d   : > { %v1129_v21 = vpop.xlane.xlu1 %1128 }
 0x30e   : > { %v1145_v24 = vsub.f32 %v3456_v32, %v1129_v21 }
 0x310   : > { %v2742_v27 = vpop.eup %2741  ;;  %v1156_v31 = vmul.f32 1.442695, %v1145_v24 }
 0x311   : > { %v1172_v33 = vsel %vm1117_vm12, %v2742_v27, 0.0 }
 0x312   : > { %2743 = vpow2.f32 %v1156_v31  ;;  %1457 = vmatpush.bf16.xpose.msrb.mxu1 %v1439_v26  ;;  %1173 = vadd.xlane.f32.xlu2 %v1172_v33 }
 0x315   : > { %v1132_v35 = vpop.xlane.xlu2 %1131 }
 0x316   : > { %v1146_v42 = vsub.f32 %v3464_v36, %v1132_v35 }
 0x318   : > { %v2744_v46 = vpop.eup %2743  ;;  %v1158_v45 = vmul.f32 1.442695, %v1146_v42 }
 0x319   : > { %v1175_v32 = vsel %vm1117_vm12, %v2744_v46, 0.0  ;;  %v1191_v50 = vpack.c.bf16 %v2744_v46, %v2742_v27 }
 0x31a   : > { %2745 = vpow2.f32 %v1158_v45  ;;  %1176 = vadd.xlane.f32.xlu0 %v1175_v32 }
 0x31b   : > { %2581 = vmatmul.msk.bf16.gmra.mxu0 %vm1117_vm12, %v1191_v50 }
 0x31d   : > { %v1135_v59 = vpop.xlane.xlu0 %1134 }
 0x31e   : > { %v1147_v16 = vsub.f32 %v3472_v48, %v1135_v59 }
 0x320   : > { %v2746_v36 = vpop.eup %2745  ;;  %v1160_v39 = vmul.f32 1.442695, %v1147_v16  ;;  %v1328_v16 = vpop.f32.mrf.mxu2 }
 0x321   : > { %v1178_v61 = vsel %vm1117_vm12, %v2746_v36, 0.0 }
 0x322   : > { %2747 = vpow2.f32 %v1160_v39  ;;  %1179 = vadd.xlane.f32.xlu1 %v1178_v61 }
 0x325   : > { %v1138_v62 = vpop.xlane.xlu1 %1137 }
 0x326   : > { %v1148_v47 = vsub.f32 %v3480_v25, %v1138_v62 }
 0x328   : > { %v2748_v63 = vpop.eup %2747  ;;  %v1162_v0 = vmul.f32 1.442695, %v1148_v47  ;;  %v1330_v62 = vpop.f32.mrf.mxu2 }
 0x329   : > { %v1181_v1 = vsel %vm1117_vm12, %v2748_v63, 0.0  ;;  %v1192_v3 = vpack.c.bf16 %v2748_v63, %v2746_v36 }
 0x32a   : > { %2749 = vpow2.f32 %v1162_v0  ;;  %1182 = vadd.xlane.f32.xlu2 %v1181_v1 }
 0x32b   : > { %2582 = vmatmul.msk.bf16.gmra.mxu0 %vm1117_vm12, %v1192_v3 }
 0x32d   : > { %v1141_v48 = vpop.xlane.xlu2 %1140 }
 0x32e   : > { %v1149_v4 = vsub.f32 %v3488_v54, %v1141_v48 }
 0x330   : > { %v2750_v5 = vpop.eup %2749  ;;  %v1164_v37 = vmul.f32 1.442695, %v1149_v4  ;;  %v1333_v48 = vpop.f32.mrf.mxu2  ;;  %v1349_v4 = vmul.f32 0.25, %v1330_v62 }
 0x331   : > { %v1184_v7 = vsel %vm1117_vm12, %v2750_v5, 0.0 }
 0x332   : > { %2751 = vpow2.f32 %v1164_v37  ;;  %1185 = vadd.xlane.f32.xlu0 %v1184_v7  ;;  %v1348_v37 = vmul.f32 0.25, %v1328_v16 }
 0x334   : > { %v1356_v7 = vpack.c.bf16 %v1349_v4, %v1348_v37 }
 0x338   : > { %v2752_v44 = vpop.eup %2751 }
 0x339   : > { %v1187_v25 = vsel %vm1117_vm12, %v2752_v44, 0.0  ;;  %v1193_v8 = vpack.c.bf16 %v2752_v44, %v2750_v5  ;;  %v1335_v44 = vpop.f32.mrf.mxu2 }
 0x33a   : > { %1188 = vadd.xlane.f32.xlu1 %v1187_v25 }
 0x33b   : > { %2583 = vmatmul.msk.bf16.gmra.mxu0 %vm1117_vm12, %v1193_v8 }
 0x341   : > { %v1338_v8 = vpop.f32.mrf.mxu2 }
 0x34b   : > { %2596 = vmatmul.msk.bf16.vlgmr.msrb.gmra.mxu0 %vm716_vm0, %v3374_v29 }
 0x35b   : > { %2597 = vmatmul.msk.bf16.gmra.mxu0 %vm716_vm0, %v3364_v56 }
 0x36b   : > { %2598 = vmatmul.msk.bf16.gmra.mxu0 %vm716_vm0, %v3331_v40 }
 0x375   : > { %v1168_v54 = vpop.xlane.xlu0 %1167 }
 0x376   : > { %v1235_v2 = vmax.f32 %v1168_v54, 1e-30  ;;  %v1351_v54 = vmul.f32 0.25, %v1335_v44 }
 0x378   : > { %2753 = vrcp.f32 %v1235_v2  ;;  %v1350_v2 = vmul.f32 0.25, %v1333_v48 }
 0x37b   : > { %2599 = vmatmul.msk.bf16.gmra.mxu0 %vm716_vm0, %v3376_v12 }
 0x37d   : > { %v1171_v41 = vpop.xlane.xlu1 %1170 }
 0x37e   : > { %v1236_v9 = vmax.f32 %v1171_v41, 1e-30  ;;  %v2754_v10 = vpop.eup %2753 }
 0x380   : > { %2755 = vrcp.f32 %v1236_v9  ;;  %v1357_v9 = vpack.c.bf16 %v1351_v54, %v1350_v2 }
 0x385   : > { %v1174_v40 = vpop.xlane.xlu2 %1173 }
 0x386   : > { %v2756_v29 = vpop.eup %2755  ;;  %v1237_v12 = vmax.f32 %v1174_v40, 1e-30 }
 0x388   : > { %v1215_v28 = vpop.f32.mrf.mxu0  ;;  %2757 = vrcp.f32 %v1237_v12 }
 0x389   : > { %v1251_v11 = vmul.f32 %v2754_v10, %v1215_v28  ;;  %v1340_v28 = vpop.f32.mrf.mxu2 }
 0x38d   : > { %v1177_v6 = vpop.xlane.xlu0 %1176 }
 0x38e   : > { %v1238_v15 = vmax.f32 %v1177_v6, 1e-30  ;;  %v2758_v19 = vpop.eup %2757 }
 0x390   : > { %v1217_v56 = vpop.f32.mrf.mxu0  ;;  %2759 = vrcp.f32 %v1238_v15 }
 0x391   : > { %v1252_v57 = vmul.f32 %v2756_v29, %v1217_v56  ;;  %v1353_v29 = vmul.f32 0.25, %v1340_v28 }
 0x393   : > { %v1259_v14 = vpack.c.bf16 %v1252_v57, %v1251_v11  ;;  %v1352_v11 = vmul.f32 0.25, %v1338_v8  ;;  %v1343_v57 = vpop.f32.mrf.mxu2 }
 0x395   : > { %2584 = vmatmul.msk.bf16.vlgmr.msra.gmra.mxu1 %vm1063_vm11, %v1259_v14  ;;  %v1180_v31 = vpop.xlane.xlu1 %1179  ;;  %v1358_v40 = vpack.c.bf16 %v1353_v29, %v1352_v11 }
 0x396   : > { %v2760_v20 = vpop.eup %2759  ;;  %v1239_v35 = vmax.f32 %v1180_v31, 1e-30 }
 0x398   : > { %v1220_v17 = vpop.f32.mrf.mxu0  ;;  %2761 = vrcp.f32 %v1239_v35 }
 0x399   : > { %v1253_v24 = vmul.f32 %v2758_v19, %v1220_v17  ;;  %v1354_v17 = vmul.f32 0.25, %v1343_v57 }
 0x39b   : > { %v1345_v14 = vpop.f32.mrf.mxu2 }
 0x39c   : > { %v1355_v12 = vmul.f32 0.25, %v1345_v14 }
 0x39d   : > { %v1183_v26 = vpop.xlane.xlu2 %1182 }
 0x39e   : > { %v1240_v42 = vmax.f32 %v1183_v26, 1e-30  ;;  %v2762_v45 = vpop.eup %2761 }
 0x3a0   : > { %v1222_v21 = vpop.f32.mrf.mxu0  ;;  %2763 = vrcp.f32 %v1240_v42 }
 0x3a1   : > { %v1254_v27 = vmul.f32 %v2760_v20, %v1222_v21  ;;  %v1359_v20 = vpack.c.bf16 %v1355_v12, %v1354_v17 }
 0x3a3   : > { %v1260_v33 = vpack.c.bf16 %v1254_v27, %v1253_v24 }
 0x3a5   : > { %2585 = vmatmul.msk.bf16.gmra.mxu1 %vm1063_vm11, %v1260_v33  ;;  %v1186_v55 = vpop.xlane.xlu0 %1185 }
 0x3a6   : > { %v2764_v32 = vpop.eup %2763  ;;  %v1241_v59 = vmax.f32 %v1186_v55, 1e-30 }
 0x3a8   : > { %v1225_v46 = vpop.f32.mrf.mxu0  ;;  %2765 = vrcp.f32 %v1241_v59 }
 0x3a9   : > { %v1255_v51 = vmul.f32 %v2762_v45, %v1225_v46 }
 0x3ad   : > { %v1189_v58 = vpop.xlane.xlu1 %1188 }
 0x3ae   : > { %v1242_v60 = vmax.f32 %v1189_v58, 1e-30  ;;  %v2766_v39 = vpop.eup %2765 }
 0x3b0   : > { %v1227_v50 = vpop.f32.mrf.mxu0  ;;  %2767 = vrcp.f32 %v1242_v60 }
 0x3b1   : > { %v1256_v53 = vmul.f32 %v2764_v32, %v1227_v50  ;;  %v3567_v32 = vld [vmem:[%s644_s16] ss:$0 sm:$0xff]  ;;  %v2849_v50 = vld [vmem:[%s3107_s21 + $0x38] sm:$0xff]  ;;  %s650_s16 = scalar_lea.vmem %s4097_s8, %s4151_s29 }
 0x3b3   : > { %v1261_v43 = vpack.c.bf16 %v1256_v53, %v1255_v51  ;;  %v937_v51 = vadd.f32 %v2849_v50, %v3567_v32 }
 0x3b5   : > { %2586 = vmatmul.msk.bf16.gmra.mxu1 %vm1063_vm11, %v1261_v43 }
 0x3b6   : > { %v2768_v61 = vpop.eup %2767 }
 0x3b8   : > { %v1230_v36 = vpop.f32.mrf.mxu0 }
 0x3b9   : > { %v1257_v63 = vmul.f32 %v2766_v39, %v1230_v36 }
 0x3c0   : > { %v1232_v47 = vpop.f32.mrf.mxu0 }
 0x3c1   : > { %v1258_v0 = vmul.f32 %v2768_v61, %v1232_v47 }
 0x3c3   : > { %v1262_v1 = vpack.c.bf16 %v1258_v0, %v1257_v63 }
 0x3c5   : > { %2587 = vmatmul.msk.bf16.gmra.mxu1 %vm1063_vm11, %v1262_v1 }
 0x3c8   : > { %v1402_v3 = vpop.f32.mrf.mxu0 }
 0x3d0   : > { %v1404_v5 = vpop.f32.mrf.mxu0 }
 0x3d1   : > { %v1422_v27 = vpack.c.bf16 %v1404_v5, %v1402_v3 }
 0x3d5   : > { %2600 = vmatmul.msk.bf16.vlgmr.msrb.gmra.mxu1 %vm1063_vm11, %v1356_v7 }
 0x3d8   : > { %v1407_v25 = vpop.f32.mrf.mxu0 }
 0x3e0   : > { %v1409_v41 = vpop.f32.mrf.mxu0 }
 0x3e1   : > { %v1423_v24 = vpack.c.bf16 %v1409_v41, %v1407_v25 }
 0x3e5   : > { %2601 = vmatmul.msk.bf16.gmra.mxu1 %vm1063_vm11, %v1357_v9 }
 0x3e8   : > { %v1412_v10 = vpop.f32.mrf.mxu0 }
 0x3f0   : > { %v1414_v56 = vpop.f32.mrf.mxu0 }
 0x3f1   : > { %v1424_v21 = vpack.c.bf16 %v1414_v56, %v1412_v10 }
 0x3f5   : > { %2602 = vmatmul.msk.bf16.gmra.mxu1 %vm1063_vm11, %v1358_v40 }
 0x3f8   : > { %v1417_v6 = vpop.f32.mrf.mxu0 }
 0x400   : > { %v1419_v15 = vpop.f32.mrf.mxu0 }
 0x401   : > { %v1425_v19 = vpack.c.bf16 %v1419_v15, %v1417_v6 }
 0x403   : > { %1571 = vmatpush.bf16.msrb.mxu2 %v1425_v19 }
 0x405   : > { %2603 = vmatmul.msk.bf16.gmra.mxu1 %vm1063_vm11, %v1359_v20 }
 0x407   : > { %1572 = vmatpush.bf16.msrb.mxu2 %v1424_v21 }
 0x40b   : > { %1573 = vmatpush.bf16.msrb.mxu2 %v1423_v24  ;;  %v712_v24 = vld [vmem:[%s3498_s23 + $0x10] sm:$0xff] }
 0x40f   : > { %1574 = vmatpush.bf16.msrb.mxu2 %v1422_v27  ;;  %v713_v27 = vld [vmem:[%s3498_s23 + $0x18] sm:$0xff]  ;;  %s647_s23 = scalar_lea.vmem %s4096_s7, %s4151_s29 }
 0x410   : > { %v1624_v50 = vpack.c.bf16 %v713_v27, %v712_v24 }
 0x412   : > { %v3548_v31 = vpop.f32.mrf.mxu1  ;;  %1644 = vmatpush.bf16.msrb.mxu3 %v1624_v50 }
 0x41a   : > { %v3550_v26 = vpop.f32.mrf.mxu1 }
 0x422   : > { %v3552_v33 = vpop.f32.mrf.mxu1 }
 0x42a   : > { %v3554_v35 = vpop.f32.mrf.mxu1 }
 0x432   : > { %v3556_v42 = vpop.f32.mrf.mxu1 }
 0x43a   : > { %v3558_v46 = vpop.f32.mrf.mxu1 }
 0x442   : > { %v3560_v45 = vpop.f32.mrf.mxu1 }
 0x44a   : > { %v1302_v53 = vpop.f32.mrf.mxu1 }
 0x44b   : > { %v3571_v55 = vadd.f32 %v1302_v53, %v937_v51 }
 0x452   : > { %v1459_v58 = vpop.f32.mrf.mxu1 }
 0x453   : > { %v1460_v43 = vadd.f32 %v1459_v58, %v3435_v13 }
 0x455   : > { %v1479_v59 = vsel %vm1117_vm12, %v1460_v43, -inf }
 0x456   : > { %1480 = vmax.xlane.f32.xlu2 %v1479_v59 }
 0x45a   : > { %v1461_v16 = vpop.f32.mrf.mxu1 }
 0x45b   : > { %v1462_v60 = vadd.f32 %v1461_v16, %v3440_v18 }
 0x45d   : > { %v1482_v36 = vsel %vm1117_vm12, %v1462_v60, -inf }
 0x45e   : > { %1483 = vmax.xlane.f32.xlu0 %v1482_v36 }
 0x462   : > { %v1464_v39 = vpop.f32.mrf.mxu1 }
 0x463   : > { %v1465_v61 = vadd.f32 %v1464_v39, %v3445_v23 }
 0x465   : > { %v1485_v62 = vsel %vm1117_vm12, %v1465_v61, -inf }
 0x466   : > { %1486 = vmax.xlane.f32.xlu1 %v1485_v62 }
 0x46a   : > { %v1466_v47 = vpop.f32.mrf.mxu1 }
 0x46b   : > { %v1467_v63 = vadd.f32 %v1466_v47, %v3453_v30 }
 0x46d   : > { %v1488_v13 = vsel %vm1117_vm12, %v1467_v63, -inf }
 0x46e   : > { %1489 = vmax.xlane.f32.xlu2 %v1488_v13 }
 0x472   : > { %v1469_v0 = vpop.f32.mrf.mxu1 }
 0x473   : > { %v1470_v1 = vadd.f32 %v1469_v0, %v3461_v34 }
 0x475   : > { %v1491_v18 = vsel %vm1117_vm12, %v1470_v1, -inf }
 0x476   : > { %1492 = vmax.xlane.f32.xlu0 %v1491_v18 }
 0x47a   : > { %v1471_v3 = vpop.f32.mrf.mxu1 }
 0x47b   : > { %v1472_v48 = vadd.f32 %v1471_v3, %v3469_v38 }
 0x47d   : > { %v1494_v23 = vsel %vm1117_vm12, %v1472_v48, -inf }
 0x47e   : > { %1495 = vmax.xlane.f32.xlu1 %v1494_v23 }
 0x482   : > { %v1474_v4 = vpop.f32.mrf.mxu1 }
 0x483   : > { %v1475_v5 = vadd.f32 %v1474_v4, %v3477_v49 }
 0x485   : > { %v1497_v30 = vsel %vm1117_vm12, %v1475_v5, -inf }
 0x486   : > { %1498 = vmax.xlane.f32.xlu2 %v1497_v30 }
 0x48a   : > { %v1476_v37 = vpop.f32.mrf.mxu1 }
 0x48b   : > { %v1477_v7 = vadd.f32 %v1476_v37, %v3485_v52 }
 0x48d   : > { %v1500_v34 = vsel %vm1117_vm12, %v1477_v7, -inf }
 0x48e   : > { %1501 = vmax.xlane.f32.xlu0 %v1500_v34 }
 0x4c9   : > { %v1481_v44 = vpop.xlane.xlu2 %1480 }
 0x4ca   : > { %v1503_v25 = vsub.f32 %v1460_v43, %v1481_v44 }
 0x4cc   : > { %v1511_v8 = vmul.f32 1.442695, %v1503_v25 }
 0x4ce   : > { %2769 = vpow2.f32 %v1511_v8 }
 0x4d1   : > { %v1484_v38 = vpop.xlane.xlu0 %1483 }
 0x4d2   : > { %v1504_v54 = vsub.f32 %v1462_v60, %v1484_v38 }
 0x4d4   : > { %v2770_v41 = vpop.eup %2769  ;;  %v1513_v2 = vmul.f32 1.442695, %v1504_v54 }
 0x4d5   : > { %v1527_v9 = vsel %vm1117_vm12, %v2770_v41, 0.0 }
 0x4d6   : > { %2771 = vpow2.f32 %v1513_v2  ;;  %1528 = vadd.xlane.f32.xlu1 %v1527_v9 }
 0x4d9   : > { %v1487_v49 = vpop.xlane.xlu1 %1486 }
 0x4da   : > { %v1505_v28 = vsub.f32 %v1465_v61, %v1487_v49 }
 0x4dc   : > { %v2772_v10 = vpop.eup %2771  ;;  %v1515_v29 = vmul.f32 1.442695, %v1505_v28 }
 0x4dd   : > { %v1551_v52 = vpack.c.bf16 %v2772_v10, %v2770_v41  ;;  %v1530_v56 = vsel %vm1117_vm12, %v2772_v10, 0.0 }
 0x4de   : > { %2773 = vpow2.f32 %v1515_v29  ;;  %1531 = vadd.xlane.f32.xlu2 %v1530_v56 }
 0x4df   : > { %2604 = vmatmul.msk.bf16.vlgmr.msrb.gmra.mxu2 %vm1117_vm12, %v1551_v52 }
 0x4e1   : > { %v1490_v11 = vpop.xlane.xlu2 %1489 }
 0x4e2   : > { %v1506_v57 = vsub.f32 %v1467_v63, %v1490_v11 }
 0x4e4   : > { %v2774_v40 = vpop.eup %2773  ;;  %v1517_v6 = vmul.f32 1.442695, %v1506_v57 }
 0x4e5   : > { %v1533_v14 = vsel %vm1117_vm12, %v2774_v40, 0.0 }
 0x4e6   : > { %2775 = vpow2.f32 %v1517_v6  ;;  %1534 = vadd.xlane.f32.xlu0 %v1533_v14 }
 0x4e9   : > { %v1493_v12 = vpop.xlane.xlu0 %1492 }
 0x4ea   : > { %v1507_v15 = vsub.f32 %v1470_v1, %v1493_v12 }
 0x4ec   : > { %v2776_v17 = vpop.eup %2775  ;;  %v1519_v19 = vmul.f32 1.442695, %v1507_v15 }
 0x4ed   : > { %v1536_v20 = vsel %vm1117_vm12, %v2776_v17, 0.0  ;;  %v1552_v21 = vpack.c.bf16 %v2776_v17, %v2774_v40 }
 0x4ee   : > { %2777 = vpow2.f32 %v1519_v19  ;;  %1537 = vadd.xlane.f32.xlu1 %v1536_v20 }
 0x4ef   : > { %2605 = vmatmul.msk.bf16.gmra.mxu2 %vm1117_vm12, %v1552_v21 }
 0x4f1   : > { %v1496_v51 = vpop.xlane.xlu1 %1495 }
 0x4f2   : > { %v1508_v53 = vsub.f32 %v1472_v48, %v1496_v51 }
 0x4f4   : > { %v2778_v58 = vpop.eup %2777  ;;  %v1521_v43 = vmul.f32 1.442695, %v1508_v53 }
 0x4f5   : > { %v1539_v59 = vsel %vm1117_vm12, %v2778_v58, 0.0 }
 0x4f6   : > { %2779 = vpow2.f32 %v1521_v43  ;;  %1540 = vadd.xlane.f32.xlu2 %v1539_v59 }
 0x4f9   : > { %v1499_v16 = vpop.xlane.xlu2 %1498 }
 0x4fa   : > { %v1509_v60 = vsub.f32 %v1475_v5, %v1499_v16 }
 0x4fc   : > { %v2780_v36 = vpop.eup %2779  ;;  %v1523_v39 = vmul.f32 1.442695, %v1509_v60 }
 0x4fd   : > { %v1542_v61 = vsel %vm1117_vm12, %v2780_v36, 0.0  ;;  %v1553_v62 = vpack.c.bf16 %v2780_v36, %v2778_v58 }
 0x4fe   : > { %2781 = vpow2.f32 %v1523_v39  ;;  %1543 = vadd.xlane.f32.xlu0 %v1542_v61  ;;  %v2850_v61 = vld [vmem:[%s3107_s21] sm:$0xff] }
 0x4ff   : > { %2606 = vmatmul.msk.bf16.gmra.mxu2 %vm1117_vm12, %v1553_v62  ;;  %v930_v62 = vadd.f32 %v2850_v61, %v3567_v32 }
 0x501   : > { %v1502_v47 = vpop.xlane.xlu0 %1501 }
 0x502   : > { %v1510_v63 = vsub.f32 %v1477_v7, %v1502_v47  ;;  %v1305_v47 = vadd.f32 %v3548_v31, %v930_v62 }
 0x504   : > { %v2782_v13 = vpop.eup %2781  ;;  %v1525_v0 = vmul.f32 1.442695, %v1510_v63 }
 0x505   : > { %v1545_v1 = vsel %vm1117_vm12, %v2782_v13, 0.0 }
 0x506   : > { %2783 = vpow2.f32 %v1525_v0  ;;  %1546 = vadd.xlane.f32.xlu1 %v1545_v1  ;;  %v2851_v0 = vld [vmem:[%s3107_s21 + $0x8] sm:$0xff] }
 0x507   : > { %v931_v1 = vadd.f32 %v2851_v0, %v3567_v32 }
 0x50c   : > { %v2784_v18 = vpop.eup %2783 }
 0x50d   : > { %v1548_v3 = vsel %vm1117_vm12, %v2784_v18, 0.0  ;;  %v1554_v48 = vpack.c.bf16 %v2784_v18, %v2782_v13 }
 0x50e   : > { %1549 = vadd.xlane.f32.xlu2 %v1548_v3  ;;  %v1306_v3 = vadd.f32 %v3550_v26, %v931_v1 }
 0x50f   : > { %2607 = vmatmul.msk.bf16.gmra.mxu2 %vm1117_vm12, %v1554_v48 }
 0x549   : > { %v1529_v23 = vpop.xlane.xlu1 %1528 }
 0x54a   : > { %v1596_v5 = vmax.f32 %v1529_v23, 1e-30 }
 0x54c   : > { %2785 = vrcp.f32 %v1596_v5 }
 0x551   : > { %v1532_v4 = vpop.xlane.xlu2 %1531 }
 0x552   : > { %v1597_v30 = vmax.f32 %v1532_v4, 1e-30  ;;  %v2786_v7 = vpop.eup %2785  ;;  %v2852_v4 = vld [vmem:[%s3107_s21 + $0x10] sm:$0xff] }
 0x553   : > { %v932_v31 = vadd.f32 %v2852_v4, %v3567_v32 }
 0x554   : > { %2787 = vrcp.f32 %v1597_v30 }
 0x555   : > { %v1307_v30 = vadd.f32 %v3552_v33, %v932_v31 }
 0x559   : > { %v1535_v38 = vpop.xlane.xlu0 %1534 }
 0x55a   : > { %v2788_v34 = vpop.eup %2787  ;;  %v1598_v2 = vmax.f32 %v1535_v38, 1e-30 }
 0x55c   : > { %2789 = vrcp.f32 %v1598_v2 }
 0x561   : > { %v1538_v54 = vpop.xlane.xlu1 %1537 }
 0x562   : > { %v1576_v37 = vpop.f32.mrf.mxu2  ;;  %v1599_v9 = vmax.f32 %v1538_v54, 1e-30  ;;  %v2790_v28 = vpop.eup %2789  ;;  %v2854_v54 = vld [vmem:[%s3107_s21 + $0x20] sm:$0xff] }
 0x563   : > { %v1612_v25 = vmul.f32 %v2786_v7, %v1576_v37  ;;  %v934_v33 = vadd.f32 %v2854_v54, %v3567_v32 }
 0x564   : > { %2791 = vrcp.f32 %v1599_v9 }
 0x565   : > { %v1309_v2 = vadd.f32 %v3556_v42, %v934_v33 }
 0x569   : > { %v1541_v11 = vpop.xlane.xlu2 %1540 }
 0x56a   : > { %v1578_v44 = vpop.f32.mrf.mxu2  ;;  %v2792_v10 = vpop.eup %2791  ;;  %v1600_v6 = vmax.f32 %v1541_v11, 1e-30  ;;  %v2856_v11 = vld [vmem:[%s3107_s21 + $0x30] sm:$0xff] }
 0x56b   : > { %v1613_v8 = vmul.f32 %v2788_v34, %v1578_v44  ;;  %v2853_v34 = vld [vmem:[%s3107_s21 + $0x18] sm:$0xff] }
 0x56c   : > { %2793 = vrcp.f32 %v1600_v6  ;;  %v933_v26 = vadd.f32 %v2853_v34, %v3567_v32 }
 0x56d   : > { %v1620_v41 = vpack.c.bf16 %v1613_v8, %v1612_v25 }
 0x56e   : > { %v1308_v25 = vadd.f32 %v3554_v35, %v933_v26 }
 0x56f   : > { %2608 = vmatmul.msk.bf16.vlgmr.msrb.gmra.mxu3 %vm1063_vm11, %v1620_v41 }
 0x571   : > { %v1544_v57 = vpop.xlane.xlu0 %1543 }
 0x572   : > { %v1581_v49 = vpop.f32.mrf.mxu2  ;;  %v1601_v14 = vmax.f32 %v1544_v57, 1e-30  ;;  %v2794_v15 = vpop.eup %2793  ;;  %v936_v57 = vadd.f32 %v2856_v11, %v3567_v32 }
 0x573   : > { %v1614_v52 = vmul.f32 %v2790_v28, %v1581_v49  ;;  %v2855_v28 = vld [vmem:[%s3107_s21 + $0x28] sm:$0xff]  ;;  %s658_s21 = scalar_lea.vmem %s4099_s10, %s4151_s29 }
 0x574   : > { %2795 = vrcp.f32 %v1601_v14  ;;  %v935_v35 = vadd.f32 %v2855_v28, %v3567_v32 }
 0x579   : > { %v1547_v24 = vpop.xlane.xlu1 %1546 }
 0x57a   : > { %v1583_v29 = vpop.f32.mrf.mxu2  ;;  %v2796_v17 = vpop.eup %2795  ;;  %v1602_v51 = vmax.f32 %v1547_v24, 1e-30 }
 0x57b   : > { %v1615_v56 = vmul.f32 %v2792_v10, %v1583_v29  ;;  %v1310_v29 = vadd.f32 %v3558_v46, %v935_v35 }
 0x57c   : > { %2797 = vrcp.f32 %v1602_v51 }
 0x57d   : > { %v1621_v40 = vpack.c.bf16 %v1615_v56, %v1614_v52 }
 0x57f   : > { %2609 = vmatmul.msk.bf16.gmra.mxu3 %vm1063_vm11, %v1621_v40  ;;  %v1311_v40 = vadd.f32 %v3560_v45, %v936_v57 }
 0x581   : > { %v1550_v27 = vpop.xlane.xlu2 %1549 }
 0x582   : > { %v1586_v12 = vpop.f32.mrf.mxu2  ;;  %v1603_v53 = vmax.f32 %v1550_v27, 1e-30  ;;  %v2798_v43 = vpop.eup %2797 }
 0x583   : > { %v1616_v20 = vmul.f32 %v2794_v15, %v1586_v12 }
 0x584   : > { %2799 = vrcp.f32 %v1603_v53 }
 0x58a   : > { %v1588_v19 = vpop.f32.mrf.mxu2  ;;  %v2800_v59 = vpop.eup %2799 }
 0x58b   : > { %v1617_v21 = vmul.f32 %v2796_v17, %v1588_v19 }
 0x58d   : > { %v1622_v50 = vpack.c.bf16 %v1617_v21, %v1616_v20 }
 0x58f   : > { %2610 = vmatmul.msk.bf16.gmra.mxu3 %vm1063_vm11, %v1622_v50 }
 0x592   : > { %v1591_v58 = vpop.f32.mrf.mxu2 }
 0x593   : > { %v1618_v60 = vmul.f32 %v2798_v43, %v1591_v58 }
 0x59a   : > { %v1593_v16 = vpop.f32.mrf.mxu2 }
 0x59b   : > { %v1619_v36 = vmul.f32 %v2800_v59, %v1593_v16 }
 0x59d   : > { %v1623_v39 = vpack.c.bf16 %v1619_v36, %v1618_v60 }
 0x59f   : > { %2611 = vmatmul.msk.bf16.gmra.mxu3 %vm1063_vm11, %v1623_v39 }
 0x5f2   : > { %v1646_v63 = vpop.f32.mrf.mxu3 }
 0x5f3   : > { %v3610_v13 = vadd.f32 %v1646_v63, %v1305_v47 }
 0x5f5   : > { %v1676_v18 = vsel %vm716_vm0, %v3610_v13, 0.0 }
 0x5f6   : > { %1677 = vadd.xlane.f32.xlu0 %v1676_v18 }
 0x5fa   : > { %v1648_v48 = vpop.f32.mrf.mxu3 }
 0x5fb   : > { %v3617_v23 = vadd.f32 %v1648_v48, %v1306_v3 }
 0x5fd   : > { %v1679_v5 = vsel %vm716_vm0, %v3617_v23, 0.0 }
 0x5fe   : > { %1680 = vadd.xlane.f32.xlu1 %v1679_v5 }
 0x602   : > { %v1651_v37 = vpop.f32.mrf.mxu3 }
 0x603   : > { %v3624_v7 = vadd.f32 %v1651_v37, %v1307_v30 }
 0x605   : > { %v1682_v44 = vsel %vm716_vm0, %v3624_v7, 0.0 }
 0x606   : > { %1683 = vadd.xlane.f32.xlu2 %v1682_v44 }
 0x60a   : > { %v1653_v8 = vpop.f32.mrf.mxu3 }
 0x60b   : > { %v3631_v38 = vadd.f32 %v1653_v8, %v1308_v25  ;;  %v1880_v25 = vld [vmem:[%s655_s24 + $0x10] sm:$0xff]  ;;  %v1881_v8 = vld [vmem:[%s655_s24 + $0x18] sm:$0xff] }
 0x60c   : > { %v1883_v54 = vpack.c.bf16 %v1881_v8, %v1880_v25 }
 0x60d   : > { %v1685_v41 = vsel %vm716_vm0, %v3631_v38, 0.0 }
 0x60e   : > { %1686 = vadd.xlane.f32.xlu0 %v1685_v41  ;;  %1906 = vmatpush.bf16.msra.mxu0 %v1883_v54 }
 0x612   : > { %v1656_v9 = vpop.f32.mrf.mxu3 }
 0x613   : > { %v3638_v49 = vadd.f32 %v1656_v9, %v1309_v2  ;;  %v1878_v2 = vld [vmem:[%s655_s24] sm:$0xff]  ;;  %v1879_v9 = vld [vmem:[%s655_s24 + $0x8] sm:$0xff] }
 0x614   : > { %v1882_v35 = vpack.c.bf16 %v1879_v9, %v1878_v2 }
 0x615   : > { %v1688_v10 = vsel %vm716_vm0, %v3638_v49, 0.0 }
 0x616   : > { %1689 = vadd.xlane.f32.xlu1 %v1688_v10  ;;  %1907 = vmatpush.bf16.msra.mxu0 %v1882_v35 }
 0x61a   : > { %v1658_v52 = vpop.f32.mrf.mxu3 }
 0x61b   : > { %v3645_v56 = vadd.f32 %v1658_v52, %v1310_v29 }
 0x61d   : > { %v1691_v42 = vsel %vm716_vm0, %v3645_v56, 0.0 }
 0x61e   : > { %1692 = vadd.xlane.f32.xlu2 %v1691_v42 }
 0x622   : > { %v1661_v46 = vpop.f32.mrf.mxu3 }
 0x623   : > { %v3660_v6 = vadd.f32 %v1661_v46, %v1311_v40 }
 0x625   : > { %v1694_v32 = vsel %vm716_vm0, %v3660_v6, 0.0 }
 0x626   : > { %1695 = vadd.xlane.f32.xlu2 %v1694_v32 }
 0x62a   : > { %v1663_v19 = vpop.f32.mrf.mxu3 }
 0x62b   : > { %v3673_v24 = vadd.f32 %v1663_v19, %v3571_v55 }
 0x62d   : > { %v1697_v53 = vsel %vm716_vm0, %v3673_v24, 0.0 }
 0x669   : > { %v1678_v14 = vpop.xlane.xlu0 %1677 }
 0x66a   : > { %v1700_v12 = vmul.f32 %v1678_v14, %v3137_v22 }
 0x66c   : > { %v3666_v45 = vsub.f32 %v3610_v13, %v1700_v12 }
 0x66e   : > { %v1716_v15 = vmul.f32 %v3666_v45, %v3666_v45 }
 0x670   : > { %v1724_v17 = vsel %vm716_vm0, %v1716_v15, 0.0 }
 0x671   : > { %v1681_v20 = vpop.xlane.xlu1 %1680  ;;  %1725 = vadd.xlane.f32.xlu0 %v1724_v17 }
 0x672   : > { %v1701_v21 = vmul.f32 %v1681_v20, %v3137_v22 }
 0x674   : > { %v3676_v27 = vsub.f32 %v3617_v23, %v1701_v21 }
 0x676   : > { %v1717_v50 = vmul.f32 %v3676_v27, %v3676_v27 }
 0x678   : > { %v1727_v51 = vsel %vm716_vm0, %v1717_v50, 0.0 }
 0x679   : > { %1728 = vadd.xlane.f32.xlu1 %v1727_v51  ;;  %v1684_v58 = vpop.xlane.xlu2 %1683  ;;  %1698 = vadd.xlane.f32.xlu0 %v1697_v53 }
 0x67a   : > { %v1702_v43 = vmul.f32 %v1684_v58, %v3137_v22 }
 0x67c   : > { %v3685_v59 = vsub.f32 %v3624_v7, %v1702_v43 }
 0x67e   : > { %v1718_v55 = vmul.f32 %v3685_v59, %v3685_v59 }
 0x680   : > { %v1730_v16 = vsel %vm716_vm0, %v1718_v55, 0.0 }
 0x681   : > { %v1687_v60 = vpop.xlane.xlu0 %1686  ;;  %1731 = vadd.xlane.f32.xlu1 %v1730_v16 }
 0x682   : > { %v1703_v36 = vmul.f32 %v1687_v60, %v3137_v22 }
 0x684   : > { %v3692_v39 = vsub.f32 %v3631_v38, %v1703_v36 }
 0x686   : > { %v1719_v61 = vmul.f32 %v3692_v39, %v3692_v39 }
 0x688   : > { %v1733_v62 = vsel %vm716_vm0, %v1719_v61, 0.0 }
 0x689   : > { %v1690_v47 = vpop.xlane.xlu1 %1689  ;;  %1734 = vadd.xlane.f32.xlu2 %v1733_v62  ;;  %v3739_v62 = vld [vmem:[%s647_s23] ss:$0 sm:$0xff] }
 0x68a   : > { %v1704_v63 = vmul.f32 %v1690_v47, %v3137_v22 }
 0x68c   : > { %v3699_v0 = vsub.f32 %v3638_v49, %v1704_v63 }
 0x68e   : > { %v1720_v1 = vmul.f32 %v3699_v0, %v3699_v0 }
 0x690   : > { %v1736_v18 = vsel %vm716_vm0, %v1720_v1, 0.0 }
 0x691   : > { %v1693_v3 = vpop.xlane.xlu2 %1692  ;;  %1737 = vadd.xlane.f32.xlu0 %v1736_v18 }
 0x692   : > { %v1705_v48 = vmul.f32 %v1693_v3, %v3137_v22 }
 0x694   : > { %v3706_v4 = vsub.f32 %v3645_v56, %v1705_v48 }
 0x696   : > { %v1721_v31 = vmul.f32 %v3706_v4, %v3706_v4 }
 0x698   : > { %v1739_v5 = vsel %vm716_vm0, %v1721_v31, 0.0  ;;  %v3747_v31 = vld [vmem:[%s650_s16] ss:$0 sm:$0xff]  ;;  %s2626_s16 = sshll.u32 %s4151_s29, 7  ;;  %s2627_s29 = sshll.u32 %s3100_s25, 6 }
 0x699   : > { %1740 = vadd.xlane.f32.xlu1 %v1739_v5  ;;  %v1696_v30 = vpop.xlane.xlu2 %1695  ;;  %s3795_s18 = scalar_lea.vmem %s4100_s11, %s2626_s16  ;;  %s2340_s28 = scalar_lea.hbm %s4102_s13, %s2627_s29 }
 0x69a   : > { %v1706_v37 = vmul.f32 %v1696_v30, %v3137_v22 }
 0x69c   : > { %v3713_v34 = vsub.f32 %v3660_v6, %v1706_v37 }
 0x69e   : > { %v1722_v26 = vmul.f32 %v3713_v34, %v3713_v34 }
 0x6a0   : > { %v1742_v44 = vsel %vm716_vm0, %v1722_v26, 0.0 }
 0x6a1   : > { %1743 = vadd.xlane.f32.xlu2 %v1742_v44 }
 0x6e4   : > { %v1726_v33 = vpop.xlane.xlu0 %1725 }
 0x6e5   : > { %v1748_v41 = vmul.f32 %v1726_v33, %v3137_v22 }
 0x6e7   : > { %v1756_v28 = vadd.f32 1e-05, %v1748_v41 }
 0x6e9   : > { %2801 = vrsqrt.f32 %v1756_v28  ;;  %vm1770_vm14 = vweird.f32 %v1756_v28 }
 0x6ec   : > { %v1729_v10 = vpop.xlane.xlu1 %1728  ;;  %v1699_v29 = vpop.xlane.xlu0 %1698 }
 0x6ed   : > { %v1749_v52 = vmul.f32 %v1729_v10, %v3137_v22  ;;  %v1707_v11 = vmul.f32 %v1699_v29, %v3137_v22 }
 0x6ef   : > { %v2802_v57 = vpop.eup %2801  ;;  %v1757_v42 = vadd.f32 1e-05, %v1749_v52  ;;  %v3727_v40 = vsub.f32 %v3673_v24, %v1707_v11 }
 0x6f0   : > { %v1765_v46 = vmul.f32 %v2802_v57, %v1756_v28  ;;  %vm1771_vm13 = vweird.f32 %v2802_v57 }
 0x6f1   : > { %2803 = vrsqrt.f32 %v1757_v42  ;;  %v1723_v32 = vmul.f32 %v3727_v40, %v3727_v40  ;;  %vm1772_vm15 = vmor %vm1770_vm14, %vm1771_vm13  ;;  %vm1780_vm2 = vweird.f32 %v1757_v42 }
 0x6f2   : > { %v1766_v14 = vmul.f32 %v2802_v57, %v1765_v46 }
 0x6f3   : > { %v1745_v12 = vsel %vm716_vm0, %v1723_v32, 0.0 }
 0x6f4   : > { %v1767_v15 = vmul.f32 0.5, %v1766_v14  ;;  %v1732_v17 = vpop.xlane.xlu1 %1731  ;;  %1746 = vadd.xlane.f32.xlu0 %v1745_v12 }
 0x6f5   : > { %v1750_v19 = vmul.f32 %v1732_v17, %v3137_v22 }
 0x6f6   : > { %v1768_v20 = vsub.f32 1.5, %v1767_v15 }
 0x6f7   : > { %v2804_v21 = vpop.eup %2803  ;;  %v1758_v50 = vadd.f32 1e-05, %v1750_v19 }
 0x6f8   : > { %v1769_v51 = vmul.f32 %v2802_v57, %v1768_v20  ;;  %v1775_v53 = vmul.f32 %v2804_v21, %v1757_v42  ;;  %vm1781_vm1 = vweird.f32 %v2804_v21 }
 0x6f9   : > { %2805 = vrsqrt.f32 %v1758_v50  ;;  %vm1782_vm3 = vmor %vm1780_vm2, %vm1781_vm1  ;;  %vm1790_vm6 = vweird.f32 %v1758_v50 }
 0x6fa   : > { %v1776_v58 = vmul.f32 %v2804_v21, %v1775_v53  ;;  %v1773_v43 = vsel %vm1772_vm15, %v2802_v57, %v1769_v51 }
 0x6fb   : > { %v1844_v47 = vmul.f32 %v1773_v43, %v3666_v45 }
 0x6fc   : > { %v1777_v55 = vmul.f32 0.5, %v1776_v58  ;;  %v1735_v16 = vpop.xlane.xlu2 %1734 }
 0x6fd   : > { %v1751_v60 = vmul.f32 %v1735_v16, %v3137_v22  ;;  %v1855_v5 = vmul.f32 %v3739_v62, %v1844_v47 }
 0x6fe   : > { %v1778_v36 = vsub.f32 1.5, %v1777_v55 }
 0x6ff   : > { %v2806_v61 = vpop.eup %2805  ;;  %v1759_v63 = vadd.f32 1e-05, %v1751_v60  ;;  %v1866_v54 = vadd.f32 %v3747_v31, %v1855_v5 }
 0x700   : > { %v1779_v1 = vmul.f32 %v2804_v21, %v1778_v36  ;;  %v1785_v18 = vmul.f32 %v2806_v61, %v1758_v50  ;;  %vm1791_vm4 = vweird.f32 %v2806_v61 }
 0x701   : > { %2807 = vrsqrt.f32 %v1759_v63  ;;  %vm1792_vm7 = vmor %vm1790_vm6, %vm1791_vm4  ;;  %vm1800_vm5 = vweird.f32 %v1759_v63 }
 0x702   : > { %v1783_v3 = vsel %vm1782_vm3, %v2804_v21, %v1779_v1  ;;  %v1786_v48 = vmul.f32 %v2806_v61, %v1785_v18 }
 0x703   : > { %v1845_v30 = vmul.f32 %v1783_v3, %v3676_v27 }
 0x704   : > { %v1787_v45 = vmul.f32 0.5, %v1786_v48  ;;  %v1738_v37 = vpop.xlane.xlu0 %1737 }
 0x705   : > { %v1856_v26 = vmul.f32 %v3739_v62, %v1845_v30  ;;  %v1752_v44 = vmul.f32 %v1738_v37, %v3137_v22 }
 0x706   : > { %v1788_v25 = vsub.f32 1.5, %v1787_v45 }
 0x707   : > { %v2808_v8 = vpop.eup %2807  ;;  %v1867_v33 = vadd.f32 %v3747_v31, %v1856_v26  ;;  %v1760_v41 = vadd.f32 1e-05, %v1752_v44 }
 0x708   : > { %v1789_v2 = vmul.f32 %v2806_v61, %v1788_v25  ;;  %v1795_v27 = vmul.f32 %v2808_v8, %v1759_v63  ;;  %vm1801_vm8 = vweird.f32 %v2808_v8 }
 0x709   : > { %2809 = vrsqrt.f32 %v1760_v41  ;;  %v1874_v9 = vpack.c.bf16 %v1867_v33, %v1866_v54  ;;  %vm1802_vm9 = vmor %vm1800_vm5, %vm1801_vm8  ;;  %vm1810_vm11 = vweird.f32 %v1760_v41 }
 0x70a   : > { %v1796_v28 = vmul.f32 %v2808_v8, %v1795_v27  ;;  %v1793_v35 = vsel %vm1792_vm7, %v2806_v61, %v1789_v2 }
 0x70b   : > { %2612 = vmatmul.msk.bf16.vlgmr.msra.gmra.mxu0 %vm716_vm0, %v1874_v9  ;;  %v1846_v42 = vmul.f32 %v1793_v35, %v3685_v59 }
 0x70c   : > { %v1797_v10 = vmul.f32 0.5, %v1796_v28  ;;  %v1741_v29 = vpop.xlane.xlu1 %1740 }
 0x70d   : > { %v1753_v52 = vmul.f32 %v1741_v29, %v3137_v22  ;;  %v1857_v19 = vmul.f32 %v3739_v62, %v1846_v42 }
 0x70e   : > { %v1798_v11 = vsub.f32 1.5, %v1797_v10 }
 0x70f   : > { %v2810_v57 = vpop.eup %2809  ;;  %v1761_v46 = vadd.f32 1e-05, %v1753_v52  ;;  %v1868_v53 = vadd.f32 %v3747_v31, %v1857_v19 }
 0x710   : > { %v1799_v32 = vmul.f32 %v2808_v8, %v1798_v11  ;;  %v1805_v14 = vmul.f32 %v2810_v57, %v1760_v41  ;;  %vm1811_vm10 = vweird.f32 %v2810_v57 }
 0x711   : > { %2811 = vrsqrt.f32 %v1761_v46  ;;  %vm1812_vm12 = vmor %vm1810_vm11, %vm1811_vm10  ;;  %vm1820_vm14 = vweird.f32 %v1761_v46 }
 0x712   : > { %v1803_v12 = vsel %vm1802_vm9, %v2808_v8, %v1799_v32  ;;  %v1806_v15 = vmul.f32 %v2810_v57, %v1805_v14 }
 0x713   : > { %v1847_v17 = vmul.f32 %v1803_v12, %v3692_v39 }
 0x714   : > { %v1807_v20 = vmul.f32 0.5, %v1806_v15  ;;  %v1744_v45 = vpop.xlane.xlu2 %1743  ;;  %v2268_v15 = vld [vmem:[%s3795_s18 + $0x78] sm:$0xff] }
 0x715   : > { %v1858_v21 = vmul.f32 %v3739_v62, %v1847_v17 }
 0x716   : > { %v1808_v50 = vsub.f32 1.5, %v1807_v20 }
 0x717   : > { %v2812_v51 = vpop.eup %2811  ;;  %v1869_v59 = vadd.f32 %v3747_v31, %v1858_v21  ;;  %v2265_v21 = vld [vmem:[%s3795_s18 + $0x60] sm:$0xff] }
 0x718   : > { %v1809_v58 = vmul.f32 %v2810_v57, %v1808_v50  ;;  %v1815_v43 = vmul.f32 %v2812_v51, %v1761_v46  ;;  %vm1821_vm13 = vweird.f32 %v2812_v51  ;;  %v2266_v50 = vld [vmem:[%s3795_s18 + $0x68] sm:$0xff] }
 0x719   : > { %v1875_v55 = vpack.c.bf16 %v1869_v59, %v1868_v53  ;;  %vm1822_vm15 = vmor %vm1820_vm14, %vm1821_vm13  ;;  %v2275_v53 = vpack.c.bf16 %v2266_v50, %v2265_v21 }
 0x71a   : > { %v1816_v16 = vmul.f32 %v2812_v51, %v1815_v43  ;;  %v1813_v39 = vsel %vm1812_vm12, %v2810_v57, %v1809_v58 }
 0x71b   : > { %2613 = vmatmul.msk.bf16.gmra.mxu0 %vm716_vm0, %v1875_v55  ;;  %v1848_v61 = vmul.f32 %v1813_v39, %v3699_v0  ;;  %v1754_v0 = vmul.f32 %v1744_v45, %v3137_v22  ;;  %v2263_v55 = vld [vmem:[%s3795_s18 + $0x50] sm:$0xff] }
 0x71c   : > { %v1817_v60 = vmul.f32 0.5, %v1816_v16  ;;  %v2264_v16 = vld [vmem:[%s3795_s18 + $0x58] sm:$0xff]  ;;  %v2259_v45 = vld [vmem:[%s3795_s18 + $0x30] sm:$0xff] }
 0x71d   : > { %v1859_v18 = vmul.f32 %v3739_v62, %v1848_v61  ;;  %v1762_v37 = vadd.f32 1e-05, %v1754_v0  ;;  %v2261_v61 = vld [vmem:[%s3795_s18 + $0x40] sm:$0xff]  ;;  %v2260_v0 = vld [vmem:[%s3795_s18 + $0x38] sm:$0xff] }
 0x71e   : > { %v1818_v36 = vsub.f32 1.5, %v1817_v60  ;;  %v2274_v60 = vpack.c.bf16 %v2264_v16, %v2263_v55 }
 0x71f   : > { %v1870_v48 = vadd.f32 %v3747_v31, %v1859_v18  ;;  %2813 = vrsqrt.f32 %v1762_v37  ;;  %vm1830_vm2 = vweird.f32 %v1762_v37 }
 0x720   : > { %v1819_v47 = vmul.f32 %v2812_v51, %v1818_v36 }
 0x722   : > { %v1823_v63 = vsel %vm1822_vm15, %v2812_v51, %v1819_v47  ;;  %v2262_v47 = vld [vmem:[%s3795_s18 + $0x48] sm:$0xff] }
 0x723   : > { %v1849_v1 = vmul.f32 %v1823_v63, %v3706_v4  ;;  %v2273_v63 = vpack.c.bf16 %v2262_v47, %v2261_v61 }
 0x725   : > { %v1860_v3 = vmul.f32 %v3739_v62, %v1849_v1  ;;  %v2814_v26 = vpop.eup %2813 }
 0x726   : > { %v1825_v44 = vmul.f32 %v2814_v26, %v1762_v37  ;;  %vm1831_vm1 = vweird.f32 %v2814_v26 }
 0x727   : > { %v1871_v5 = vadd.f32 %v3747_v31, %v1860_v3  ;;  %vm1832_vm3 = vmor %vm1830_vm2, %vm1831_vm1 }
 0x728   : > { %v1826_v25 = vmul.f32 %v2814_v26, %v1825_v44 }
 0x729   : > { %v1876_v30 = vpack.c.bf16 %v1871_v5, %v1870_v48 }
 0x72a   : > { %v1827_v33 = vmul.f32 0.5, %v1826_v25 }
 0x72b   : > { %2614 = vmatmul.msk.bf16.gmra.mxu0 %vm716_vm0, %v1876_v30 }
 0x72c   : > { %v1828_v41 = vsub.f32 1.5, %v1827_v33  ;;  %v2257_v33 = vld [vmem:[%s3795_s18 + $0x20] sm:$0xff] }
 0x72e   : > { %v1829_v27 = vmul.f32 %v2814_v26, %v1828_v41  ;;  %v2258_v41 = vld [vmem:[%s3795_s18 + $0x28] sm:$0xff] }
 0x730   : > { %v1833_v35 = vsel %vm1832_vm3, %v2814_v26, %v1829_v27  ;;  %v2272_v26 = vpack.c.bf16 %v2260_v0, %v2259_v45 }
 0x731   : > { %v1850_v52 = vmul.f32 %v1833_v35, %v3713_v34  ;;  %v3789_v34 = vld [vmem:[%s658_s21] ss:$0 sm:$0xff]  ;;  %s609_s21 = sand.u32 1, %s2927_s26  }
 0x732   : > { %s2551_s24 = sshll.u32 %s609_s21, 6  ;;  %s2327_s25 = scalar_lea.sflag [#allocation3], %s609_s21 }
 0x733   : > { %v1861_v42 = vmul.f32 %v3739_v62, %v1850_v52  ;;  %s4019_s14 = scalar_lea.vmem [#allocation2], %s2551_s24 }
 0x734   : > { %s2341_s16 = sshll.u32 %s4019_s14, 4  ;;  %s2342_s16 = int_to_ptr.vmem [resolvable:$true] %s2341_s16 }
 0x735   : > { %v1872_v32 = vadd.f32 %v3747_v31, %v1861_v42  ;;  %v2256_v42 = vld [vmem:[%s3795_s18 + $0x18] sm:$0xff] }
 0x767   : > { %v1747_v4 = vpop.xlane.xlu0 %1746 }
 0x768   : > { %v1755_v8 = vmul.f32 %v1747_v4, %v3137_v22 }
 0x76a   : > { %v1763_v54 = vadd.f32 1e-05, %v1755_v8 }
 0x76c   : > { %2815 = vrsqrt.f32 %v1763_v54  ;;  %vm1840_vm6 = vweird.f32 %v1763_v54 }
 0x772   : > { %v2816_v2 = vpop.eup %2815 }
 0x773   : > { %v1835_v9 = vmul.f32 %v2816_v2, %v1763_v54  ;;  %vm1841_vm4 = vweird.f32 %v2816_v2 }
 0x774   : > { %vm1842_vm7 = vmor %vm1840_vm6, %vm1841_vm4 }
 0x775   : > { %v1836_v28 = vmul.f32 %v2816_v2, %v1835_v9 }
 0x777   : > { %v1837_v10 = vmul.f32 0.5, %v1836_v28  ;;  %v2271_v28 = vpack.c.bf16 %v2258_v41, %v2257_v33 }
 0x779   : > { %v1838_v29 = vsub.f32 1.5, %v1837_v10 }
 0x77b   : > { %v1839_v22 = vmul.f32 %v2816_v2, %v1838_v29 }
 0x77d   : > { %v1843_v11 = vsel %vm1842_vm7, %v2816_v2, %v1839_v22 }
 0x77e   : > { %v1851_v57 = vmul.f32 %v1843_v11, %v3727_v40 }
 0x780   : > { %v1862_v46 = vmul.f32 %v3739_v62, %v1851_v57  ;;  %v2255_v57 = vld [vmem:[%s3795_s18 + $0x10] sm:$0xff] }
 0x782   : > { %v1873_v14 = vadd.f32 %v3747_v31, %v1862_v46  ;;  %v2267_v31 = vld [vmem:[%s3795_s18 + $0x70] sm:$0xff] }
 0x783   : > { %v2276_v19 = vpack.c.bf16 %v2268_v15, %v2267_v31  ;;  %v2270_v15 = vpack.c.bf16 %v2256_v42, %v2255_v57 }
 0x784   : > { %v1877_v12 = vpack.c.bf16 %v1873_v14, %v1872_v32 }
 0x785   : > { %2281 = vmatpush.bf16.msra.mxu1 %v2276_v19 }
 0x786   : > { %2615 = vmatmul.msk.bf16.gmra.mxu0 %vm716_vm0, %v1877_v12 }
 0x788   : > { %v1909_v40 = vpop.f32.mrf.mxu0 }
 0x789   : > { %v3798_v62 = vadd.f32 %v3789_v34, %v1909_v40  ;;  %2282 = vmatpush.bf16.msra.mxu1 %v2275_v53  ;;  %v2254_v53 = vld [vmem:[%s3795_s18 + $0x8] sm:$0xff] }
 0x78b   : > { %v3803_v17 = vmul.f32 0.70710677, %v3798_v62 }
 0x78d   : > { %v3806_v20 = vand.u32 2147483647, %v3803_v17  ;;  %2283 = vmatpush.bf16.msra.mxu1 %v2274_v60  ;;  %vm1945_vm2 = vcmp.ge.f32.partialorder %v3803_v17, 0.0 }
 0x78f   : > { %v1969_v51 = vmul.f32 0.3275911, %v3806_v20  ;;  %v2177_v11 = vsub.f32 0.0, %v3806_v20 }
 0x790   : > { %v1911_v59 = vpop.f32.mrf.mxu0 }
 0x791   : > { %v1977_v58 = vadd.f32 1.0, %v1969_v51  ;;  %v3812_v43 = vadd.f32 %v3789_v34, %v1911_v59  ;;  %2284 = vmatpush.bf16.msra.mxu1 %v2273_v63  ;;  %v2185_v21 = vmul.f32 %v2177_v11, %v3806_v20  ;;  %v2253_v51 = vld [vmem:[%s3795_s18] sm:$0xff]  ;;  %s2877_s18 = scalar_lea.hbm %s4102_s13, 384 }
 0x792   : > { %v2269_v55 = vpack.c.bf16 %v2254_v53, %v2253_v51 }
 0x793   : > { %2817 = vrcp.f32 %v1977_v58  ;;  %v3817_v39 = vmul.f32 0.70710677, %v3812_v43  ;;  %v1996_v25 = vand.u32 2147483648, %v1977_v58  ;;  %v1994_v54 = vand.u32 2147483647, %v1977_v58 }
 0x794   : > { %vm1990_vm5 = vweird.f32 %v1977_v58  ;;  %v2193_v45 = vmul.f32 1.442695, %v2185_v21 }
 0x795   : > { %v3820_v36 = vand.u32 2147483647, %v3817_v39  ;;  %2285 = vmatpush.bf16.msra.mxu1 %v2272_v26  ;;  %v1997_v35 = vor.u32 1.1754944e-38, %v1996_v25  ;;  %vm1995_vm10 = vcmp.eq.f32.partialorder %v1994_v54, 8.507059e+37  ;;  %vm1946_vm7 = vcmp.ge.f32.partialorder %v3817_v39, 0.0 }
 0x797   : > { %v1970_v1 = vmul.f32 0.3275911, %v3820_v36  ;;  %v2178_v60 = vsub.f32 0.0, %v3820_v36 }
 0x798   : > { %v1914_v18 = vpop.f32.mrf.mxu0 }
 0x799   : > { %v2818_v3 = vpop.eup %2817  ;;  %v3826_v48 = vadd.f32 %v3789_v34, %v1914_v18  ;;  %v3828_v30 = vadd.f32 1.0, %v1970_v1  ;;  %2286 = vmatpush.bf16.msra.mxu1 %v2271_v28  ;;  %v2186_v33 = vmul.f32 %v2178_v60, %v3820_v36 }
 0x79a   : > { %v1986_v5 = vmul.f32 %v2818_v3, %v1977_v58  ;;  %vm1991_vm8 = vweird.f32 %v2818_v3 }
 0x79b   : > { %v3833_v37 = vmul.f32 0.70710677, %v3826_v48  ;;  %2819 = vrcp.f32 %v3828_v30  ;;  %vm1992_vm9 = vmor %vm1990_vm5, %vm1991_vm8  ;;  %v2009_v40 = vand.u32 2147483647, %v3828_v30  ;;  %v2011_v50 = vand.u32 2147483648, %v3828_v30 }
 0x79c   : > { %v1987_v44 = vsub.f32 1.0, %v1986_v5  ;;  %vm2005_vm12 = vweird.f32 %v3828_v30  ;;  %v2195_v57 = vmul.f32 1.442695, %v2186_v33 }
 0x79d   : > { %v3837_v4 = vand.u32 2147483647, %v3833_v37  ;;  %2287 = vmatpush.bf16.msra.mxu1 %v2270_v15  ;;  %vm2010_vm14 = vcmp.eq.f32.partialorder %v2009_v40, 8.507059e+37 }
 0x79e   : > { %v1988_v8 = vmul.f32 %v2818_v3, %v1987_v44 }
 0x79f   : > { %v1971_v2 = vmul.f32 0.3275911, %v3837_v4 }
 0x7a0   : > { %v1989_v27 = vadd.f32 %v2818_v3, %v1988_v8  ;;  %v1916_v9 = vpop.f32.mrf.mxu0 }
 0x7a1   : > { %v3842_v10 = vadd.f32 1.0, %v1971_v2  ;;  %v3845_v29 = vadd.f32 %v3789_v34, %v1916_v9  ;;  %v2820_v52 = vpop.eup %2819  ;;  %2288 = vmatpush.bf16.msra.mxu1 %v2269_v55 }
 0x7a2   : > { %v1993_v22 = vsel %vm1992_vm9, %v2818_v3, %v1989_v27  ;;  %v2001_v32 = vmul.f32 %v2820_v52, %v3828_v30  ;;  %vm2006_vm11 = vweird.f32 %v2820_v52  ;;  %v2012_v3 = vor.u32 1.1754944e-38, %v2011_v50 }
 0x7a3   : > { %v3850_v46 = vsel %vm1995_vm10, %v1997_v35, %v1993_v22  ;;  %2821 = vrcp.f32 %v3842_v10  ;;  %v3857_v31 = vmul.f32 0.70710677, %v3845_v29  ;;  %vm2007_vm13 = vmor %vm2005_vm12, %vm2006_vm11  ;;  %v2026_v42 = vand.u32 2147483648, %v3842_v10 }
 0x7a4   : > { %v2105_v14 = vmul.f32 1.0614054, %v3850_v46  ;;  %v2002_v12 = vsub.f32 1.0, %v2001_v32  ;;  %vm2020_vm1 = vweird.f32 %v3842_v10 }
 0x7a5   : > { %v3864_v58 = vand.u32 2147483647, %v3857_v31 }
 0x7a6   : > { %v2113_v19 = vadd.f32 -1.4531521, %v2105_v14  ;;  %v2003_v59 = vmul.f32 %v2820_v52, %v2002_v12  ;;  %v2024_v12 = vand.u32 2147483647, %v3842_v10 }
 0x7a7   : > { %v1972_v20 = vmul.f32 0.3275911, %v3864_v58 }
 0x7a8   : > { %v2121_v16 = vmul.f32 %v2113_v19, %v3850_v46  ;;  %v1919_v61 = vpop.f32.mrf.mxu0  ;;  %v2004_v63 = vadd.f32 %v2820_v52, %v2003_v59  ;;  %v2179_v19 = vsub.f32 0.0, %v3837_v4  ;;  %vm2025_vm4 = vcmp.eq.f32.partialorder %v2024_v12, 8.507059e+37 }
 0x7a9   : > { %v2822_v47 = vpop.eup %2821  ;;  %v3871_v1 = vadd.f32 %v3789_v34, %v1919_v61  ;;  %v3874_v26 = vadd.f32 1.0, %v1972_v20  ;;  %v3918_v20 = vmul.f32 0.5, %v3798_v62 }
 0x7aa   : > { %v2129_v18 = vadd.f32 1.4214138, %v2121_v16  ;;  %v2016_v5 = vmul.f32 %v2822_v47, %v3842_v10  ;;  %v2008_v0 = vsel %vm2007_vm13, %v2820_v52, %v2004_v63  ;;  %vm2021_vm15 = vweird.f32 %v2822_v47 }
 0x7ab   : > { %v3877_v25 = vsel %vm2010_vm14, %v2012_v3, %v2008_v0  ;;  %v3880_v8 = vmul.f32 0.70710677, %v3871_v1  ;;  %2823 = vrcp.f32 %v3874_v26  ;;  %vm3904_vm3 = vmor %vm2020_vm1, %vm2021_vm15  ;;  %v2027_v16 = vor.u32 1.1754944e-38, %v2026_v42 }
 0x7ac   : > { %v2137_v44 = vmul.f32 %v2129_v18, %v3850_v46  ;;  %v2017_v30 = vsub.f32 1.0, %v2016_v5  ;;  %v2106_v54 = vmul.f32 1.0614054, %v3877_v25  ;;  %2825 = vpow2.f32 %v2193_v45 }
 0x7ad   : > { %v3886_v27 = vand.u32 2147483647, %v3880_v8  ;;  %v2187_v5 = vmul.f32 %v2179_v19, %v3837_v4  ;;  %v2039_v62 = vand.u32 2147483647, %v3874_v26  ;;  %vm2035_vm8 = vweird.f32 %v3874_v26 }
 0x7ae   : > { %v2145_v41 = vadd.f32 -0.28449672, %v2137_v44  ;;  %v2018_v2 = vmul.f32 %v2822_v47, %v2017_v30  ;;  %v2114_v9 = vadd.f32 -1.4531521, %v2106_v54  ;;  %v2041_v54 = vand.u32 2147483648, %v3874_v26 }
 0x7af   : > { %v1973_v35 = vmul.f32 0.3275911, %v3886_v27  ;;  %vm2040_vm9 = vcmp.eq.f32.partialorder %v2039_v62, 8.507059e+37 }
 0x7b0   : > { %v2153_v28 = vmul.f32 %v2145_v41, %v3850_v46  ;;  %v1921_v52 = vpop.f32.mrf.mxu0  ;;  %v2019_v22 = vadd.f32 %v2822_v47, %v2018_v2  ;;  %v2122_v11 = vmul.f32 %v2114_v9, %v3877_v25  ;;  %v1930_v9 = vmul.f32 0.5, %v3812_v43 }
 0x7b1   : > { %v3892_v36 = vadd.f32 %v3789_v34, %v1921_v52  ;;  %v3896_v14 = vadd.f32 1.0, %v1973_v35  ;;  %v2824_v40 = vpop.eup %2823  ;;  %v2197_v35 = vmul.f32 1.442695, %v2187_v5  ;;  %v2180_v52 = vsub.f32 0.0, %v3864_v58 }
 0x7b2   : > { %v2161_v32 = vadd.f32 0.2548296, %v2153_v28  ;;  %v2130_v15 = vadd.f32 1.4214138, %v2122_v11  ;;  %v2031_v53 = vmul.f32 %v2824_v40, %v3874_v26  ;;  %v2023_v10 = vsel %vm3904_vm3, %v2822_v47, %v2019_v22  ;;  %v2826_v59 = vpop.eup %2825 }
 0x7b3   : > { %v3902_v21 = vmul.f32 0.70710677, %v3892_v36  ;;  %2827 = vrcp.f32 %v3896_v14  ;;  %v3923_v47 = vsel %vm2025_vm4, %v2027_v16, %v2023_v10  ;;  %vm2036_vm6 = vweird.f32 %v2824_v40 }
 0x7b4   : > { %v2169_v51 = vmul.f32 %v2161_v32, %v3850_v46  ;;  %v2138_v55 = vmul.f32 %v2130_v15, %v3877_v25  ;;  %v2032_v61 = vsub.f32 1.0, %v2031_v53  ;;  %v2954_v46 = vmov -1.0   ;;  %vm2037_vm5 = vmor %vm2035_vm8, %vm2036_vm6 }
 0x7b5   : > { %v3915_v63 = vand.u32 2147483647, %v3902_v21  ;;  %v1953_v18 = vsel %vm1945_vm2, 1.0, %v2954_v46  ;;  %2829 = vpow2.f32 %v2195_v57  ;;  %v2107_v2 = vmul.f32 1.0614054, %v3923_v47 }
 0x7b6   : > { %v2209_v60 = vmul.f32 %v2826_v59, %v2169_v51  ;;  %v2146_v3 = vadd.f32 -0.28449672, %v2138_v55  ;;  %v2033_v45 = vmul.f32 %v2824_v40, %v2032_v61  ;;  %v2056_v57 = vand.u32 2147483648, %v3896_v14 }
 0x7b7   : > { %v1974_v0 = vmul.f32 0.3275911, %v3915_v63  ;;  %v2042_v12 = vor.u32 1.1754944e-38, %v2041_v54  ;;  %v2115_v15 = vadd.f32 -1.4531521, %v2107_v2  ;;  %v1954_v51 = vsel %vm1946_vm7, 1.0, %v2954_v46 }
 0x7b8   : > { %v2217_v44 = vsub.f32 1.0, %v2209_v60  ;;  %v2154_v30 = vmul.f32 %v2146_v3, %v3877_v25  ;;  %v2034_v17 = vadd.f32 %v2824_v40, %v2033_v45  ;;  %v2054_v26 = vand.u32 2147483647, %v3896_v14 }
 0x7b9   : > { %v2828_v33 = vpop.eup %2827  ;;  %v3930_v41 = vadd.f32 1.0, %v1974_v0  ;;  %v2123_v53 = vmul.f32 %v2115_v15, %v3923_v47  ;;  %vm2050_vm11 = vweird.f32 %v3896_v14  ;;  %v2188_v60 = vmul.f32 %v2180_v52, %v3864_v58 }
 0x7ba   : > { %v2162_v4 = vadd.f32 0.2548296, %v2154_v30  ;;  %v2046_v28 = vmul.f32 %v2828_v33, %v3896_v14  ;;  %v2225_v42 = vmul.f32 %v2217_v44, %v1953_v18  ;;  %v2038_v32 = vsel %vm2037_vm5, %v2824_v40, %v2034_v17 }
 0x7bb   : > { %2831 = vrcp.f32 %v3930_v41  ;;  %v2830_v43 = vpop.eup %2829  ;;  %vm2051_vm10 = vweird.f32 %v2828_v33  ;;  %v2057_v61 = vor.u32 1.1754944e-38, %v2056_v57  ;;  %v2131_v18 = vadd.f32 1.4214138, %v2123_v53 }
 0x7bc   : > { %v2170_v22 = vmul.f32 %v2162_v4, %v3877_v25  ;;  %v2047_v11 = vsub.f32 1.0, %v2046_v28  ;;  %2833 = vpow2.f32 %v2197_v35  ;;  %v3945_v25 = vsel %vm2040_vm9, %v2042_v12, %v2038_v32  ;;  %vm2052_vm12 = vmor %vm2050_vm11, %vm2051_vm10 }
 0x7bd   : > { %v2108_v40 = vmul.f32 1.0614054, %v3945_v25  ;;  %v2233_v16 = vadd.f32 1.0, %v2225_v42  ;;  %vm2055_vm13 = vcmp.eq.f32.partialorder %v2054_v26, 8.507059e+37  ;;  %v2181_v0 = vsub.f32 0.0, %v3886_v27 }
 0x7be   : > { %v2210_v19 = vmul.f32 %v2830_v43, %v2170_v22  ;;  %v2048_v50 = vmul.f32 %v2828_v33, %v2047_v11  ;;  %v2139_v44 = vmul.f32 %v2131_v18, %v3923_v47  ;;  %v2069_v54 = vand.u32 2147483647, %v3930_v41 }
 0x7bf   : > { %v2116_v14 = vadd.f32 -1.4531521, %v2108_v40  ;;  %v2071_v2 = vand.u32 2147483648, %v3930_v41  ;;  %v2199_v11 = vmul.f32 1.442695, %v2188_v60  ;;  %vm2065_vm15 = vweird.f32 %v3930_v41 }
 0x7c0   : > { %v2218_v10 = vsub.f32 1.0, %v2210_v19  ;;  %v2049_v59 = vadd.f32 %v2828_v33, %v2048_v50  ;;  %v2147_v28 = vadd.f32 -0.28449672, %v2139_v44  ;;  %vm2070_vm2 = vcmp.eq.f32.partialorder %v2069_v54, 8.507059e+37 }
 0x7c1   : > { %v2832_v55 = vpop.eup %2831  ;;  %v2124_v4 = vmul.f32 %v2116_v14, %v3945_v25  ;;  %v2072_v12 = vor.u32 1.1754944e-38, %v2071_v2  ;;  %v2182_v53 = vsub.f32 0.0, %v3915_v63  ;;  %2835 = vpow2.f32 %v2199_v11 }
 0x7c2   : > { %v2226_v39 = vmul.f32 %v2218_v10, %v1954_v51  ;;  %v2053_v3 = vsel %vm2052_vm12, %v2828_v33, %v2049_v59  ;;  %v2061_v5 = vmul.f32 %v2832_v55, %v3930_v41  ;;  %v2834_v17 = vpop.eup %2833  ;;  %v2241_v33 = vmul.f32 %v2233_v16, %v3918_v20 }
 0x7c3   : > { %v3952_v45 = vsel %vm2055_vm13, %v2057_v61, %v2053_v3  ;;  %vm2066_vm14 = vweird.f32 %v2832_v55  ;;  %v2132_v57 = vadd.f32 1.4214138, %v2124_v4  ;;  %v2155_v43 = vmul.f32 %v2147_v28, %v3923_v47 }
 0x7c4   : > { %v2234_v30 = vadd.f32 1.0, %v2226_v39  ;;  %v2109_v62 = vmul.f32 1.0614054, %v3952_v45  ;;  %v2062_v58 = vsub.f32 1.0, %v2061_v5  ;;  %vm2067_vm1 = vmor %vm2065_vm15, %vm2066_vm14  ;;  %vm1947_vm3 = vcmp.ge.f32.partialorder %v3833_v37, 0.0 }
 0x7c5   : > { %v2140_v15 = vmul.f32 %v2132_v57, %v3945_v25  ;;  %v2163_v19 = vadd.f32 0.2548296, %v2155_v43  ;;  %v1955_v44 = vsel %vm1947_vm3, 1.0, %v2954_v46  ;;  %vm1948_vm4 = vcmp.ge.f32.partialorder %v3857_v31, 0.0 }
 0x7c6   : > { %v2242_v35 = vmul.f32 %v2234_v30, %v1930_v9  ;;  %v2117_v52 = vadd.f32 -1.4531521, %v2109_v62  ;;  %v2063_v22 = vmul.f32 %v2832_v55, %v2062_v58  ;;  %v2189_v9 = vmul.f32 %v2181_v0, %v3886_v27 }
 0x7c7   : > { %v2148_v10 = vadd.f32 -0.28449672, %v2140_v15  ;;  %v2171_v59 = vmul.f32 %v2163_v19, %v3923_v47  ;;  %v2190_v27 = vmul.f32 %v2182_v53, %v3915_v63  ;;  %v2836_v14 = vpop.eup %2835  ;;  %v1956_v2 = vsel %vm1948_vm4, 1.0, %v2954_v46 }
 0x7c8   : > { %v2249_v42 = vpack.c.bf16 %v2242_v35, %v2241_v33  ;;  %v2125_v20 = vmul.f32 %v2117_v52, %v3952_v45  ;;  %v2064_v32 = vadd.f32 %v2832_v55, %v2063_v22  ;;  %v2201_v18 = vmul.f32 1.442695, %v2189_v9 }
 0x7c9   : > { %v2156_v16 = vmul.f32 %v2148_v10, %v3945_v25  ;;  %v2211_v60 = vmul.f32 %v2834_v17, %v2171_v59  ;;  %v2203_v58 = vmul.f32 1.442695, %v2190_v27  ;;  %v1931_v22 = vmul.f32 0.5, %v3826_v48 }
 0x7ca   : > { %v2133_v50 = vadd.f32 1.4214138, %v2125_v20  ;;  %v2068_v26 = vsel %vm2067_vm1, %v2832_v55, %v2064_v32  ;;  %2289 = vmatmul.bf16.vlgmr.msra.gmra.mxu1 %v2249_v42  ;;  %2837 = vpow2.f32 %v2201_v18  ;;  %v1932_v11 = vmul.f32 0.5, %v3845_v29 }
 0x7cb   : > { %v2073_v51 = vsel %vm2070_vm2, %v2072_v12, %v2068_v26  ;;  %v2164_v55 = vadd.f32 0.2548296, %v2156_v16  ;;  %v2219_v3 = vsub.f32 1.0, %v2211_v60  ;;  %2839 = vpow2.f32 %v2203_v58 }
 0x7cc   : > { %v2141_v41 = vmul.f32 %v2133_v50, %v3952_v45  ;;  %v2110_v40 = vmul.f32 1.0614054, %v2073_v51  ;;  %vm1949_vm6 = vcmp.ge.f32.partialorder %v3880_v8, 0.0  ;;  %vm1950_vm7 = vcmp.ge.f32.partialorder %v3902_v21, 0.0 }
 0x7cd   : > { %v2172_v47 = vmul.f32 %v2164_v55, %v3945_v25  ;;  %v2227_v37 = vmul.f32 %v2219_v3, %v1955_v44  ;;  %v1957_v50 = vsel %vm1949_vm6, 1.0, %v2954_v46  ;;  %v1958_v29 = vsel %vm1950_vm7, 1.0, %v2954_v46 }
 0x7ce   : > { %v2149_v61 = vadd.f32 -0.28449672, %v2141_v41  ;;  %v2118_v39 = vadd.f32 -1.4531521, %v2110_v40  ;;  %v1933_v59 = vmul.f32 0.5, %v3871_v1 }
 0x7cf   : > { %v2212_v54 = vmul.f32 %v2836_v14, %v2172_v47  ;;  %v2235_v28 = vadd.f32 1.0, %v2227_v37 }
 0x7d0   : > { %v2157_v5 = vmul.f32 %v2149_v61, %v3952_v45  ;;  %v2126_v0 = vmul.f32 %v2118_v39, %v2073_v51  ;;  %v2838_v35 = vpop.eup %2837 }
 0x7d1   : > { %v2220_v33 = vsub.f32 1.0, %v2212_v54  ;;  %v2243_v42 = vmul.f32 %v2235_v28, %v1931_v22 }
 0x7d2   : > { %v2165_v30 = vadd.f32 0.2548296, %v2157_v5  ;;  %v2134_v62 = vadd.f32 1.4214138, %v2126_v0 }
 0x7d3   : > { %v2228_v25 = vmul.f32 %v2220_v33, %v1956_v2 }
 0x7d4   : > { %v2142_v17 = vmul.f32 %v2134_v62, %v2073_v51  ;;  %v2173_v63 = vmul.f32 %v2165_v30, %v3952_v45  ;;  %v2840_v45 = vpop.eup %2839 }
 0x7d5   : > { %v2236_v57 = vadd.f32 1.0, %v2228_v25 }
 0x7d6   : > { %v2150_v4 = vadd.f32 -0.28449672, %v2142_v17  ;;  %v2213_v31 = vmul.f32 %v2838_v35, %v2173_v63 }
 0x7d7   : > { %v2244_v20 = vmul.f32 %v2236_v57, %v1932_v11 }
 0x7d8   : > { %v2158_v52 = vmul.f32 %v2150_v4, %v2073_v51  ;;  %v2221_v12 = vsub.f32 1.0, %v2213_v31 }
 0x7d9   : > { %v2250_v15 = vpack.c.bf16 %v2244_v20, %v2243_v42 }
 0x7da   : > { %v2166_v43 = vadd.f32 0.2548296, %v2158_v52  ;;  %v2229_v9 = vmul.f32 %v2221_v12, %v1957_v50 }
 0x7db   : > { %2294 = vmatmul.bf16.gmra.mxu1 %v2250_v15 }
 0x7dc   : > { %v2174_v32 = vmul.f32 %v2166_v43, %v2073_v51  ;;  %v2237_v10 = vadd.f32 1.0, %v2229_v9  ;;  %v1934_v51 = vmul.f32 0.5, %v3892_v36 }
 0x7de   : > { %v2214_v19 = vmul.f32 %v2840_v45, %v2174_v32  ;;  %v2245_v41 = vmul.f32 %v2237_v10, %v1933_v59 }
 0x7e0   : > { %v2222_v48 = vsub.f32 1.0, %v2214_v19 }
 0x7e2   : > { %v2230_v26 = vmul.f32 %v2222_v48, %v1958_v29 }
 0x7e4   : > { %v2238_v53 = vadd.f32 1.0, %v2230_v26 }
 0x7e6   : > { %v2246_v8 = vmul.f32 %v2238_v53, %v1934_v51 }
 0x7e8   : > { %v2251_v40 = vpack.c.bf16 %v2246_v8, %v2245_v41 }
 0x7eb   : > { %2299 = vmatmul.bf16.gmra.mxu1 %v2251_v40 }
 0x803   : > { %v1924_v21 = vpop.f32.mrf.mxu0 }
 0x804   : > { %v3991_v16 = vadd.f32 %v3789_v34, %v1924_v21 }
 0x806   : > { %v3994_v60 = vmul.f32 0.70710677, %v3991_v16 }
 0x808   : > { %v1967_v61 = vand.u32 2147483647, %v3994_v60  ;;  %vm1951_vm15 = vcmp.ge.f32.partialorder %v3994_v60, 0.0  ;;  %v1935_v60 = vmul.f32 0.5, %v3991_v16 }
 0x80a   : > { %v1975_v18 = vmul.f32 0.3275911, %v1967_v61  ;;  %v2183_v2 = vsub.f32 0.0, %v1967_v61 }
 0x80b   : > { %v1926_v39 = vpop.f32.mrf.mxu0 }
 0x80c   : > { %v1983_v27 = vadd.f32 1.0, %v1975_v18  ;;  %v3998_v36 = vadd.f32 %v3789_v34, %v1926_v39  ;;  %v2191_v11 = vmul.f32 %v2183_v2, %v1967_v61 }
 0x80e   : > { %2841 = vrcp.f32 %v1983_v27  ;;  %v4001_v1 = vmul.f32 0.70710677, %v3998_v36  ;;  %v2086_v44 = vand.u32 2147483648, %v1983_v27  ;;  %v2084_v62 = vand.u32 2147483647, %v1983_v27 }
 0x80f   : > { %vm2080_vm5 = vweird.f32 %v1983_v27  ;;  %v2205_v32 = vmul.f32 1.442695, %v2191_v11 }
 0x810   : > { %v1968_v55 = vand.u32 2147483647, %v4001_v1  ;;  %v2087_v34 = vor.u32 1.1754944e-38, %v2086_v44  ;;  %vm2085_vm10 = vcmp.eq.f32.partialorder %v2084_v62, 8.507059e+37  ;;  %vm1952_vm1 = vcmp.ge.f32.partialorder %v4001_v1, 0.0 }
 0x811   : > { %v2718_v1 = vld [vmem:[%s666_s19] ss:$0 sm:$0xff]  ;;  %s2343_s19 = sshll.u32 %s2340_s28, 4  ;;  %s2344_s19 = int_to_ptr.hbm [resolvable:$true] %s2343_s19 }
 0x812   : > { %v1976_v3 = vmul.f32 0.3275911, %v1968_v55  ;;  %v2184_v12 = vsub.f32 0.0, %v1968_v55  ;;  %s2871_s20 = sshra.s32 %s2344_s19, 4  ;;  %s2872_s20 = int_to_ptr.hbm [resolvable:$true] %s2871_s20 }
 0x813   : > { %s2873_s24 = scalar_lea.hbm %s2872_s20, 64  ;;  %p2878_p3 = scmp.lt.s32.totalorder %s2872_s20, %s4102_s13 }
 0x814   : > { %v2842_v5 = vpop.eup %2841  ;;  %v1984_v47 = vadd.f32 1.0, %v1976_v3  ;;  %v2192_v9 = vmul.f32 %v2184_v12, %v1968_v55  ;;  %v1959_v55 = vsel %vm1951_vm15, 1.0, %v2954_v46  ;;  %p2874_p0 = scmp.ne.s32.totalorder %s2872_s20, %s2873_s24  ;;  %p2879_p4 = scmp.lt.s32.totalorder %s2877_s18, %s2873_s24 }
 0x815   : > { %v2076_v0 = vmul.f32 %v2842_v5, %v1983_v27  ;;  %vm2081_vm8 = vweird.f32 %v2842_v5 }
 0x816   : > { %2843 = vrcp.f32 %v1984_v47  ;;  %vm2082_vm9 = vmor %vm2080_vm5, %vm2081_vm8  ;;  %v2101_v28 = vand.u32 2147483648, %v1984_v47  ;;  %v2099_v52 = vand.u32 2147483647, %v1984_v47  ;;  %vm2095_vm12 = vweird.f32 %v1984_v47  ;;  %p2875_p1 = pnand %p2874_p0, %p3080_p5  ;;  %p2880_p6 = por %p2879_p4, %p2878_p3 }
 0x817   : > { %v2077_v14 = vsub.f32 1.0, %v2076_v0  ;;  %2845 = vpow2.f32 %v2205_v32  ;;  %v2207_v51 = vmul.f32 1.442695, %v2192_v9 }
 0x818   : > { %v2102_v43 = vor.u32 1.1754944e-38, %v2101_v28  ;;  %vm2100_vm14 = vcmp.eq.f32.partialorder %v2099_v52, 8.507059e+37  ;;  %p2876_p2 = pneg %p2875_p1 }
 0x819   : > { %v2078_v30 = vmul.f32 %v2842_v5, %v2077_v14  ;;  %2847 = vpow2.f32 %v2207_v51 }
 0x81a   : > { %p2881_p8 = pnand %p2880_p6, %p2876_p2 }
 0x81b   : > { %v2079_v58 = vadd.f32 %v2842_v5, %v2078_v30  ;;  %v1936_v30 = vmul.f32 0.5, %v3998_v36 }
 0x81c   : > { %v2844_v54 = vpop.eup %2843 }
 0x81d   : > { %v2083_v37 = vsel %vm2082_vm9, %v2842_v5, %v2079_v58  ;;  %v2091_v63 = vmul.f32 %v2844_v54, %v1984_v47  ;;  %vm2096_vm11 = vweird.f32 %v2844_v54  ;;  %v2846_v8 = vpop.eup %2845  ;;  %v1960_v47 = vsel %vm1952_vm1, 1.0, %v2954_v46 }
 0x81e   : > { %v2088_v17 = vsel %vm2085_vm10, %v2087_v34, %v2083_v37  ;;  %vm2097_vm13 = vmor %vm2095_vm12, %vm2096_vm11 }
 0x81f   : > { %v2111_v33 = vmul.f32 1.0614054, %v2088_v17  ;;  %v2092_v4 = vsub.f32 1.0, %v2091_v63  ;;  %v2848_v27 = vpop.eup %2847 }
 0x821   : > { %v2119_v25 = vadd.f32 -1.4531521, %v2111_v33  ;;  %v2093_v35 = vmul.f32 %v2844_v54, %v2092_v4 }
 0x823   : > { %v2127_v22 = vmul.f32 %v2119_v25, %v2088_v17  ;;  %v2094_v31 = vadd.f32 %v2844_v54, %v2093_v35 }
 0x825   : > { %v2135_v57 = vadd.f32 1.4214138, %v2127_v22  ;;  %v2098_v42 = vsel %vm2097_vm13, %v2844_v54, %v2094_v31 }
 0x826   : > { %v2103_v45 = vsel %vm2100_vm14, %v2102_v43, %v2098_v42 }
 0x827   : > { %v2143_v20 = vmul.f32 %v2135_v57, %v2088_v17  ;;  %v2112_v15 = vmul.f32 1.0614054, %v2103_v45 }
 0x829   : > { %v2151_v19 = vadd.f32 -0.28449672, %v2143_v20  ;;  %v2120_v50 = vadd.f32 -1.4531521, %v2112_v15 }
 0x82b   : > { %v2159_v48 = vmul.f32 %v2151_v19, %v2088_v17  ;;  %v2128_v29 = vmul.f32 %v2120_v50, %v2103_v45 }
 0x82d   : > { %v2167_v26 = vadd.f32 0.2548296, %v2159_v48  ;;  %v2136_v53 = vadd.f32 1.4214138, %v2128_v29 }
 0x82f   : > { %v2175_v10 = vmul.f32 %v2167_v26, %v2088_v17  ;;  %v2144_v59 = vmul.f32 %v2136_v53, %v2103_v45 }
 0x831   : > { %v2215_v41 = vmul.f32 %v2846_v8, %v2175_v10  ;;  %v2152_v40 = vadd.f32 -0.28449672, %v2144_v59 }
 0x833   : > { %v2160_v21 = vmul.f32 %v2152_v40, %v2103_v45  ;;  %v2223_v61 = vsub.f32 1.0, %v2215_v41 }
 0x835   : > { %v2168_v18 = vadd.f32 0.2548296, %v2160_v21  ;;  %v2231_v3 = vmul.f32 %v2223_v61, %v1959_v55 }
 0x837   : > { %v2176_v39 = vmul.f32 %v2168_v18, %v2103_v45  ;;  %v2239_v14 = vadd.f32 1.0, %v2231_v3 }
 0x839   : > { %v2216_v5 = vmul.f32 %v2848_v27, %v2176_v39  ;;  %v2247_v58 = vmul.f32 %v2239_v14, %v1935_v60 }
 0x83b   : > { %v2224_v0 = vsub.f32 1.0, %v2216_v5 }
 0x83d   : > { %v2232_v44 = vmul.f32 %v2224_v0, %v1960_v47 }
 0x83f   : > { %v2240_v62 = vadd.f32 1.0, %v2232_v44 }
 0x841   : > { %v2248_v34 = vmul.f32 %v2240_v62, %v1936_v30 }
 0x843   : > { %v2252_v54 = vpack.c.bf16 %v2248_v34, %v2247_v58 }
 0x845   : > { %2304 = vmatmul.bf16.gmra.mxu1 %v2252_v54 }
 0x847   : > { %v2290_v46 = vpop.f32.mrf.mxu1 }
 0x848   : > { %v2291_v37 = vadd.f32 %v2718_v1, %v2290_v46 }
 0x84a   : > { %v2310_v17 = vadd.f32 %v2291_v37, %v3610_v13 }
 0x84c   : > { %2318 = vst.msk [vmem:[%s4019_s14] sm:$0xff] %vm716_vm0, %v2310_v17 }
 0x84f   : > { %v2292_v16 = vpop.f32.mrf.mxu1 }
 0x850   : > { %v2293_v36 = vadd.f32 %v2718_v1, %v2292_v16 }
 0x852   : > { %v2311_v63 = vadd.f32 %v2293_v36, %v3617_v23 }
 0x854   : > { %2319 = vst.msk [vmem:[%s4019_s14 + $0x8] sm:$0xff] %vm716_vm0, %v2311_v63 }
 0x858   : > { %v2295_v33 = vpop.f32.mrf.mxu1 }
 0x859   : > { %v2296_v2 = vadd.f32 %v2718_v1, %v2295_v33 }
 0x85b   : > { %v2312_v13 = vadd.f32 %v2296_v2, %v3624_v7 }
 0x85d   : > { %2320 = vst.msk [vmem:[%s4019_s14 + $0x10] sm:$0xff] %vm716_vm0, %v2312_v13 }
 0x860   : > { %v2297_v4 = vpop.f32.mrf.mxu1 }
 0x861   : > { %v2298_v25 = vadd.f32 %v2718_v1, %v2297_v4 }
 0x863   : > { %v2313_v28 = vadd.f32 %v2298_v25, %v3631_v38 }
 0x865   : > { %2321 = vst.msk [vmem:[%s4019_s14 + $0x18] sm:$0xff] %vm716_vm0, %v2313_v28 }
 0x868   : > { %v2300_v35 = vpop.f32.mrf.mxu1 }
 0x869   : > { %v2301_v23 = vadd.f32 %v2718_v1, %v2300_v35 }
 0x86b   : > { %v2314_v52 = vadd.f32 %v2301_v23, %v3638_v49 }
 0x86d   : > { %2322 = vst.msk [vmem:[%s4019_s14 + $0x20] sm:$0xff] %vm716_vm0, %v2314_v52 }
 0x870   : > { %v2302_v22 = vpop.f32.mrf.mxu1 }
 0x871   : > { %v2303_v11 = vadd.f32 %v2718_v1, %v2302_v22 }
 0x873   : > { %v2315_v7 = vadd.f32 %v2303_v11, %v3645_v56 }
 0x875   : > { %2323 = vst.msk [vmem:[%s4019_s14 + $0x28] sm:$0xff] %vm716_vm0, %v2315_v7 }
 0x8c2   : > { %v2305_v31 = vpop.f32.mrf.mxu1 }
 0x8c3   : > { %v2306_v38 = vadd.f32 %v2718_v1, %v2305_v31 }
 0x8c5   : > { %v2316_v49 = vadd.f32 %v2306_v38, %v3660_v6 }
 0x8c7   : > { %2324 = vst.msk [vmem:[%s4019_s14 + $0x30] sm:$0xff] %vm716_vm0, %v2316_v49 }
 0x8ca   : > { %v2307_v57 = vpop.f32.mrf.mxu1 }
 0x8cb   : > { %v2308_v56 = vadd.f32 %v2718_v1, %v2307_v57 }
 0x8cd   : > { %v2317_v43 = vadd.f32 %v2308_v56, %v3673_v24 }
 0x8cf   : > { %2325 = vst.msk [vmem:[%s4019_s14 + $0x38] sm:$0xff] %vm716_vm0, %v2317_v43 }
 0x8d0   : > { %2884 = shalt.err (!%p2881_p8)
}
 0x8d1   : > { %s2955_s21 = smov 128   ;;  %s2956_s14 = smov 8  }
 0x8d2   : > { %2637 = dma.vmem_to_hbm [thread:$0]  (%p3080_p5), %s2342_s16, 1024, %s2344_s19, %s2327_s25, %s2955_s21, %s2955_s21, %s2956_s14  }
 0x8d3 PF: > { %s4135_s1 = sld [smem:[#allocation5_spill]]  ;;  %p2643_p9 = scmp.ge.s32.totalorder %s2951_s15, 2 }
 0x8d5   : > { %p2640_p10 = pnand %p2643_p9, %p3086_p7 }
 0x8d7   : > { %p2641_p11 = pneg %p2640_p10 }
 0x8d9   : > { %s2358_s29 = sand.u32 1, %s4135_s1  }
 0x8da   : > { %s2359_s0 = scalar_lea.sflag [#allocation3], %s2358_s29 }
 0x8db   : > { %2918 = dma.done.wait (%p2641_p11), %s2359_s0, 1024  }
 0x8dc   : > { %2920 = vsyncadd (%p2641_p11), %s2359_s0, 4294966272  ;;  %s26_s15 = sadd.s32 1, %s2951_s15   ;;  %s4137_s28 = sld [smem:[#allocation6_spill]] }
 0x8dd   : > { %p23_p12 = scmp.ge.s32.totalorder %s26_s15, 8   ;;  %s4138_s29 = sld [smem:[#allocation7_spill]] }
 0x8de   : > { %s4139_s14 = sld [smem:[#allocation9_spill]]  ;;  %s4140_s25 = smov %s2927_s26 }
 0x8df   : > { %s4141_s26 = smov %s2931_s27  ;;  %s4142_s27 = smov %s3096_s30 }
 0x8e0   : > { %s4143_s30 = smov %s4145_s17  ;;  %25 = sbr.rel (!%p23_p12) target bundleno = 9 (0x9), region = 143 }
 0x8e5   :  { %2365 = vsyncpa [#allocation3], 1 }
 0x8e6   :  { %2367 = vsyncpa [#allocation3 + $0x1], 1 }

</bundles_post_ra>
